<compile_context>
chip_gen: v6e
topology: v6e:2x2x1
jax: 0.10.0
libtpu: 0.0.40
codegen_flags: <defaults>
</compile_context>

<pallas_src>
import functools

import jax
import jax.numpy as jnp
from jax.experimental import pallas as pl
from jax.experimental.pallas import tpu as pltpu


# ------------------------------ helpers ------------------------------------

def _round_up(x, m):
    return ((x + m - 1) // m) * m


def _pick_tile_rows(H, Wp, target_rows=1024):
    """Largest divisor th of H with th*Wp flattened rows <= target (>= 1 row)."""
    th = 1
    for cand in range(1, H + 1):
        if H % cand == 0 and cand * Wp <= target_rows:
            th = cand
    return th


# ----------------------------- Pallas kernels ------------------------------

def _conv_core(x_ref, w_ref, Wp, TP):
    """3x3 conv as 9 shifted accumulating MXU matmuls on the VMEM-resident tile.

    x_ref: (1, 1, TIN, Cin) bf16 -- row-flattened padded image tile with halo.
    w_ref: (9, Cin, Cp)     bf16 -- 3x3 taps flattened (BN scale already folded).
    Returns f32 accumulator of shape (TP, Cp).

    The tile is upcast to f32 once so the shifted windows are static slices of a
    32-bit layout; each window is cast back to bf16 right before the dot so the
    MXU runs its native bf16 path with f32 accumulation.  The casts are VPU work,
    which has plenty of slack in this store/DMA-bound regime.
    """
    x32 = x_ref[0, 0].astype(jnp.float32)              # (TIN, Cin)
    cp = w_ref.shape[2]
    acc = jnp.zeros((TP, cp), jnp.float32)
    for t in range(9):
        off = (t // 3) * Wp + (t % 3)                  # static shift: dy*Wp + dx
        win = x32[off:off + TP, :].astype(jnp.bfloat16)
        acc = acc + jnp.dot(win, w_ref[t], preferred_element_type=jnp.float32)
    return acc


def _conv_bn_relu_kernel(x_ref, w_ref, s_ref, o_ref, *, Wp, TP):
    # s_ref: (1, Cp) f32 BN shift (incl. conv bias); o_ref: (1, 1, TP, Cp) bf16.
    acc = _conv_core(x_ref, w_ref, Wp, TP)
    o_ref[0, 0] = jnp.maximum(acc + s_ref[...], 0.0).astype(o_ref.dtype)


def _conv_bn_relu_deconv_kernel(x_ref, w_ref, s_ref, wd_ref, bd_ref, o_ref, *, Wp, TP):
    # Fused conv3x3+BN+ReLU (activation kept on-chip) followed by
    # ConvTranspose2d(k=2, s=2) whose 4 non-overlapping taps are merged into a
    # single matmul with a lane-dense (padded-to-128) output.
    # wd_ref: (Cmid, Dp) bf16; bd_ref: (1, Dp) f32; o_ref: (1, 1, TP, Dp) f32.
    acc = _conv_core(x_ref, w_ref, Wp, TP)
    h = jnp.maximum(acc + s_ref[...], 0.0).astype(jnp.bfloat16)
    y = jnp.dot(h, wd_ref[...], preferred_element_type=jnp.float32) + bd_ref[...]
    o_ref[0, 0] = y.astype(o_ref.dtype)


# ------------------------------ wrappers ------------------------------------

def _conv_stage(x_nhwc, w9, shift, wd=None, bd=None):
    """One spatially tiled conv3x3(+BN+ReLU)[+ConvTranspose 2x2] pallas_call.

    x_nhwc: (N, H, W, Cin);  w9: (9, Cin, Cp) bf16;  shift: (Cp,) f32
    wd/bd : optional merged-tap deconv weight (Cp, Dp) bf16 and bias (Dp,) f32.
    Returns (N, H, W, Cp) bf16 (conv only) or (N, H, W, Dp) f32 (fused deconv).
    """
    N, H, W, Cin = x_nhwc.shape
    Wp = W + 2
    th = _pick_tile_rows(H, Wp)          # image rows per tile (divides H)
    nH = H // th
    TP, TIN = th * Wp, (th + 3) * Wp     # output / input flat rows per tile

    # zero-pad (1 top, 2 bottom, 1 left, 1 right), row-flatten, build halo'd tiles.
    xp = jnp.pad(x_nhwc.astype(jnp.bfloat16), ((0, 0), (1, 2), (1, 1), (0, 0)))
    X = xp.reshape(N, (H + 3) * Wp, Cin)
    Xt = jnp.stack([X[:, j * th * Wp: j * th * Wp + TIN, :] for j in range(nH)],
                   axis=1)               # (N, nH, TIN, Cin)

    Cp = w9.shape[2]
    cparams = pltpu.CompilerParams(
        dimension_semantics=("parallel", "parallel"),
        vmem_limit_bytes=32 * 1024 * 1024)

    if wd is None:
        kernel = functools.partial(_conv_bn_relu_kernel, Wp=Wp, TP=TP)
        out = pl.pallas_call(
            kernel,
            out_shape=jax.ShapeDtypeStruct((N, nH, TP, Cp), jnp.bfloat16),
            grid=(N, nH),
            in_specs=[
                pl.BlockSpec((1, 1, TIN, Cin), lambda n, j: (n, j, 0, 0)),
                pl.BlockSpec((9, Cin, Cp), lambda n, j: (0, 0, 0)),
                pl.BlockSpec((1, Cp), lambda n, j: (0, 0)),
            ],
            out_specs=pl.BlockSpec((1, 1, TP, Cp), lambda n, j: (n, j, 0, 0)),
            compiler_params=cparams,
        )(Xt, w9, shift.reshape(1, Cp))
        Cl = Cp
    else:
        Dp = wd.shape[1]
        kernel = functools.partial(_conv_bn_relu_deconv_kernel, Wp=Wp, TP=TP)
        out = pl.pallas_call(
            kernel,
            out_shape=jax.ShapeDtypeStruct((N, nH, TP, Dp), jnp.float32),
            grid=(N, nH),
            in_specs=[
                pl.BlockSpec((1, 1, TIN, Cin), lambda n, j: (n, j, 0, 0)),
                pl.BlockSpec((9, Cin, Cp), lambda n, j: (0, 0, 0)),
                pl.BlockSpec((1, Cp), lambda n, j: (0, 0)),
                pl.BlockSpec((Cp, Dp), lambda n, j: (0, 0)),
                pl.BlockSpec((1, Dp), lambda n, j: (0, 0)),
            ],
            out_specs=pl.BlockSpec((1, 1, TP, Dp), lambda n, j: (n, j, 0, 0)),
            compiler_params=cparams,
        )(Xt, w9, shift.reshape(1, Cp), wd, bd.reshape(1, Dp))
        Cl = Dp

    # (N, nH, th*Wp, Cl) -> (N, H, Wp, Cl); drop the 2 garbage padded-width cols.
    return out.reshape(N, H, Wp, Cl)[:, :, :W, :]


def upsample_forward(params, x_nchw, eps=1e-5):
    """Forward pass of the PyTorch `Upsample` module. Input/output are NCHW f32."""
    x = jnp.transpose(x_nchw, (0, 2, 3, 1))            # NCHW -> NHWC
    N, H, W, Cin = x.shape
    Cmid = params["w1"].shape[0]
    Cout = params["wt"].shape[1]
    C1p = _round_up(Cmid, 128)       # lane-dense conv1 output channels
    Dp = _round_up(4 * Cout, 128)    # lane-dense merged-tap deconv output width

    # conv1: fold BN1 scale into weights, pad output channels to C1p (zeros).
    s1 = params["bn1_g"] / jnp.sqrt(params["bn1_v"] + eps)
    w1 = jnp.transpose(params["w1"], (2, 3, 1, 0)).reshape(9, Cin, Cmid) * s1
    w1 = jnp.pad(w1, ((0, 0), (0, 0), (0, C1p - Cmid))).astype(jnp.bfloat16)
    shift1 = jnp.pad((params["b1"] - params["bn1_m"]) * s1 + params["bn1_b"],
                     (0, C1p - Cmid)).astype(jnp.float32)

    # conv2: input channels padded to C1p (extra rows are zero), BN2 scale folded.
    s2 = params["bn2_g"] / jnp.sqrt(params["bn2_v"] + eps)
    w2 = jnp.transpose(params["w2"], (2, 3, 1, 0)).reshape(9, Cmid, Cmid) * s2
    w2 = jnp.pad(w2, ((0, 0), (0, C1p - Cmid), (0, 0))).astype(jnp.bfloat16)
    shift2 = ((params["b2"] - params["bn2_m"]) * s2 + params["bn2_b"]).astype(jnp.float32)

    # deconv: 4 non-overlapping taps merged into one (Cmid, 4*Cout) matrix,
    # columns ordered tap-major (tap = ky*2 + kx), padded to Dp.
    wd = jnp.transpose(params["wt"], (2, 3, 0, 1)).reshape(4, Cmid, Cout)
    wd = jnp.transpose(wd, (1, 0, 2)).reshape(Cmid, 4 * Cout)
    wd = jnp.pad(wd, ((0, 0), (0, Dp - 4 * Cout))).astype(jnp.bfloat16)
    bd = jnp.pad(jnp.tile(params["bt"], 4), (0, Dp - 4 * Cout)).astype(jnp.float32)

    h1 = _conv_stage(x, w1, shift1)                     # (N, H, W, C1p) bf16
    ye = _conv_stage(h1, w2, shift2, wd=wd, bd=bd)      # (N, H, W, Dp)  f32

    # interleave the 4 taps into the 2x-upsampled grid: out[2h+ky, 2w+kx]
    y = ye[..., :4 * Cout].reshape(N, H, W, 2, 2, Cout)
    y = y.transpose(0, 1, 3, 2, 4, 5).reshape(N, 2 * H, 2 * W, Cout)
    return jnp.transpose(y, (0, 3, 1, 2))               # NHWC -> NCHW


# --------------------------- params / reference ----------------------------

def init_params(key, cin, cmid, cout):
    ks = jax.random.split(key, 6)

    def rnd(k, shape, scale=0.1):
        return jax.random.normal(k, shape, jnp.float32) * scale

    return dict(
        w1=rnd(ks[0], (cmid, cin, 3, 3)), b1=rnd(ks[1], (cmid,)),
        bn1_g=jnp.ones((cmid,), jnp.float32), bn1_b=jnp.zeros((cmid,), jnp.float32),
        bn1_m=jnp.zeros((cmid,), jnp.float32), bn1_v=jnp.ones((cmid,), jnp.float32),
        w2=rnd(ks[2], (cmid, cmid, 3, 3)), b2=rnd(ks[3], (cmid,)),
        bn2_g=jnp.ones((cmid,), jnp.float32), bn2_b=jnp.zeros((cmid,), jnp.float32),
        bn2_m=jnp.zeros((cmid,), jnp.float32), bn2_v=jnp.ones((cmid,), jnp.float32),
        wt=rnd(ks[4], (cmid, cout, 2, 2)), bt=rnd(ks[5], (cout,)),
    )


def reference_forward(params, x_nchw, eps=1e-5):
    """Pure-JAX f32 reference with identical semantics (for validation)."""
    x = jnp.transpose(x_nchw, (0, 2, 3, 1))

    def conv_bn_relu_ref(x, w, b, g, bt_, m, v):
        y = jax.lax.conv_general_dilated(
            x, jnp.transpose(w, (2, 3, 1, 0)), (1, 1), "SAME",
            dimension_numbers=("NHWC", "HWIO", "NHWC")) + b
        y = (y - m) / jnp.sqrt(v + eps) * g + bt_
        return jnp.maximum(y, 0.0)

    h = conv_bn_relu_ref(x, params["w1"], params["b1"],
                         params["bn1_g"], params["bn1_b"],
                         params["bn1_m"], params["bn1_v"])
    h = conv_bn_relu_ref(h, params["w2"], params["b2"],
                         params["bn2_g"], params["bn2_b"],
                         params["bn2_m"], params["bn2_v"])

    N, H, W, _ = h.shape
    wt, bt = params["wt"], params["bt"]
    Cout = wt.shape[1]
    out = jnp.zeros((N, 2 * H, 2 * W, Cout), jnp.float32)
    for ky in range(2):
        for kx in range(2):
            tap = jnp.einsum("nhwc,cd->nhwd", h, wt[:, :, ky, kx]) + bt
            out = out.at[:, ky::2, kx::2, :].set(tap)
    return jnp.transpose(out, (0, 3, 1, 2))


# --------------------------------- main -------------------------------------

if __name__ == "__main__":
    key = jax.random.PRNGKey(0)
    kx, kp = jax.random.split(key)

    N, Cin, Cmid, Cout, H, W = 2, 4, 8, 4, 16, 16
    x = jax.random.normal(kx, (N, Cin, H, W), jnp.float32)
    params = init_params(kp, Cin, Cmid, Cout)

    y = jax.jit(upsample_forward)(params, x)
    y = jax.block_until_ready(y)

    assert y.shape == (N, Cout, 2 * H, 2 * W), y.shape
    y_ref = reference_forward(params, x)
    # bf16 MXU operands (f32 accumulation) -> allow ~1e-2 absolute error.
    err = float(jnp.max(jnp.abs(y - y_ref)))
    assert jnp.allclose(y, y_ref, atol=3e-2, rtol=3e-2), f"mismatch vs reference: {err}"

    print("KERNEL_OK")
</pallas_src>

<mosaic_0001>
module attributes {stable_mosaic.version = 11 : i64} {
  func.func @_conv_bn_relu_kernel(%arg0: i32, %arg1: i32, %arg2: memref<1x1x342x4xbf16, #tpu.memory_space<vmem>>, %arg3: memref<9x4x128xbf16, #tpu.memory_space<vmem>>, %arg4: memref<1x128xf32, #tpu.memory_space<vmem>>, %arg5: memref<1x1x288x128xbf16, #tpu.memory_space<vmem>>) attributes {dimension_semantics = [#tpu.dimension_semantics<parallel>, #tpu.dimension_semantics<parallel>], iteration_bounds = array<i64: 2, 1>, scalar_prefetch = 0 : i64, scratch_operands = 0 : i64, tpu.core_type = #tpu.core_type<tc>, window_params = [{transform_indices = @transform_0, window_bounds = array<i64: 1, 1, 342, 4>}, {pipeline_mode = #tpu.pipeline_mode<synchronous>, transform_indices = @transform_1, window_bounds = array<i64: 9, 4, 128>}, {pipeline_mode = #tpu.pipeline_mode<synchronous>, transform_indices = @transform_2, window_bounds = array<i64: 1, 128>}, {transform_indices = @transform_3, window_bounds = array<i64: 1, 1, 288, 128>}]} {
    %c0 = arith.constant 0 : index
    %c0_0 = arith.constant 0 : index
    %c0_1 = arith.constant 0 : index
    %c0_2 = arith.constant 0 : index
    %0 = vector.load %arg2[%c0, %c0_0, %c0_1, %c0_2] : memref<1x1x342x4xbf16, #tpu.memory_space<vmem>>, vector<1x1x342x4xbf16>
    %1 = vector.shape_cast %0 : vector<1x1x342x4xbf16> to vector<342x4xbf16>
    %2 = arith.extf %1 : vector<342x4xbf16> to vector<342x4xf32>
    %cst = arith.constant 0.000000e+00 : f32
    %3 = vector.broadcast %cst : f32 to vector<288x128xf32>
    %4 = vector.extract_strided_slice %2 {offsets = [0, 0], sizes = [288, 4], strides = [1, 1]} : vector<342x4xf32> to vector<288x4xf32>
    %5 = arith.truncf %4 : vector<288x4xf32> to vector<288x4xbf16>
    %c0_3 = arith.constant 0 : index
    %c0_4 = arith.constant 0 : index
    %c0_5 = arith.constant 0 : index
    %6 = vector.load %arg3[%c0_3, %c0_4, %c0_5] : memref<9x4x128xbf16, #tpu.memory_space<vmem>>, vector<1x4x128xbf16>
    %7 = vector.shape_cast %6 : vector<1x4x128xbf16> to vector<4x128xbf16>
    %cst_6 = arith.constant dense<0.000000e+00> : vector<288x128xf32>
    %8 = tpu.matmul %5, %7, %cst_6 {dimension_numbers = #tpu.dot_dimension_numbers<[1], [0], [0], [1], [0, 0, 1, 1], [], []>} : vector<288x4xbf16>, vector<4x128xbf16>, vector<288x128xf32> -> vector<288x128xf32>
    %9 = arith.addf %3, %8 : vector<288x128xf32>
    %10 = vector.extract_strided_slice %2 {offsets = [1, 0], sizes = [288, 4], strides = [1, 1]} : vector<342x4xf32> to vector<288x4xf32>
    %11 = arith.truncf %10 : vector<288x4xf32> to vector<288x4xbf16>
    %c1 = arith.constant 1 : index
    %c0_7 = arith.constant 0 : index
    %c0_8 = arith.constant 0 : index
    %12 = vector.load %arg3[%c1, %c0_7, %c0_8] : memref<9x4x128xbf16, #tpu.memory_space<vmem>>, vector<1x4x128xbf16>
    %13 = vector.shape_cast %12 : vector<1x4x128xbf16> to vector<4x128xbf16>
    %cst_9 = arith.constant dense<0.000000e+00> : vector<288x128xf32>
    %14 = tpu.matmul %11, %13, %cst_9 {dimension_numbers = #tpu.dot_dimension_numbers<[1], [0], [0], [1], [0, 0, 1, 1], [], []>} : vector<288x4xbf16>, vector<4x128xbf16>, vector<288x128xf32> -> vector<288x128xf32>
    %15 = arith.addf %9, %14 : vector<288x128xf32>
    %16 = vector.extract_strided_slice %2 {offsets = [2, 0], sizes = [288, 4], strides = [1, 1]} : vector<342x4xf32> to vector<288x4xf32>
    %17 = arith.truncf %16 : vector<288x4xf32> to vector<288x4xbf16>
    %c2 = arith.constant 2 : index
    %c0_10 = arith.constant 0 : index
    %c0_11 = arith.constant 0 : index
    %18 = vector.load %arg3[%c2, %c0_10, %c0_11] : memref<9x4x128xbf16, #tpu.memory_space<vmem>>, vector<1x4x128xbf16>
    %19 = vector.shape_cast %18 : vector<1x4x128xbf16> to vector<4x128xbf16>
    %cst_12 = arith.constant dense<0.000000e+00> : vector<288x128xf32>
    %20 = tpu.matmul %17, %19, %cst_12 {dimension_numbers = #tpu.dot_dimension_numbers<[1], [0], [0], [1], [0, 0, 1, 1], [], []>} : vector<288x4xbf16>, vector<4x128xbf16>, vector<288x128xf32> -> vector<288x128xf32>
    %21 = arith.addf %15, %20 : vector<288x128xf32>
    %22 = vector.extract_strided_slice %2 {offsets = [18, 0], sizes = [288, 4], strides = [1, 1]} : vector<342x4xf32> to vector<288x4xf32>
    %23 = arith.truncf %22 : vector<288x4xf32> to vector<288x4xbf16>
    %c3 = arith.constant 3 : index
    %c0_13 = arith.constant 0 : index
    %c0_14 = arith.constant 0 : index
    %24 = vector.load %arg3[%c3, %c0_13, %c0_14] : memref<9x4x128xbf16, #tpu.memory_space<vmem>>, vector<1x4x128xbf16>
    %25 = vector.shape_cast %24 : vector<1x4x128xbf16> to vector<4x128xbf16>
    %cst_15 = arith.constant dense<0.000000e+00> : vector<288x128xf32>
    %26 = tpu.matmul %23, %25, %cst_15 {dimension_numbers = #tpu.dot_dimension_numbers<[1], [0], [0], [1], [0, 0, 1, 1], [], []>} : vector<288x4xbf16>, vector<4x128xbf16>, vector<288x128xf32> -> vector<288x128xf32>
    %27 = arith.addf %21, %26 : vector<288x128xf32>
    %28 = vector.extract_strided_slice %2 {offsets = [19, 0], sizes = [288, 4], strides = [1, 1]} : vector<342x4xf32> to vector<288x4xf32>
    %29 = arith.truncf %28 : vector<288x4xf32> to vector<288x4xbf16>
    %c4 = arith.constant 4 : index
    %c0_16 = arith.constant 0 : index
    %c0_17 = arith.constant 0 : index
    %30 = vector.load %arg3[%c4, %c0_16, %c0_17] : memref<9x4x128xbf16, #tpu.memory_space<vmem>>, vector<1x4x128xbf16>
    %31 = vector.shape_cast %30 : vector<1x4x128xbf16> to vector<4x128xbf16>
    %cst_18 = arith.constant dense<0.000000e+00> : vector<288x128xf32>
    %32 = tpu.matmul %29, %31, %cst_18 {dimension_numbers = #tpu.dot_dimension_numbers<[1], [0], [0], [1], [0, 0, 1, 1], [], []>} : vector<288x4xbf16>, vector<4x128xbf16>, vector<288x128xf32> -> vector<288x128xf32>
    %33 = arith.addf %27, %32 : vector<288x128xf32>
    %34 = vector.extract_strided_slice %2 {offsets = [20, 0], sizes = [288, 4], strides = [1, 1]} : vector<342x4xf32> to vector<288x4xf32>
    %35 = arith.truncf %34 : vector<288x4xf32> to vector<288x4xbf16>
    %c5 = arith.constant 5 : index
    %c0_19 = arith.constant 0 : index
    %c0_20 = arith.constant 0 : index
    %36 = vector.load %arg3[%c5, %c0_19, %c0_20] : memref<9x4x128xbf16, #tpu.memory_space<vmem>>, vector<1x4x128xbf16>
    %37 = vector.shape_cast %36 : vector<1x4x128xbf16> to vector<4x128xbf16>
    %cst_21 = arith.constant dense<0.000000e+00> : vector<288x128xf32>
    %38 = tpu.matmul %35, %37, %cst_21 {dimension_numbers = #tpu.dot_dimension_numbers<[1], [0], [0], [1], [0, 0, 1, 1], [], []>} : vector<288x4xbf16>, vector<4x128xbf16>, vector<288x128xf32> -> vector<288x128xf32>
    %39 = arith.addf %33, %38 : vector<288x128xf32>
    %40 = vector.extract_strided_slice %2 {offsets = [36, 0], sizes = [288, 4], strides = [1, 1]} : vector<342x4xf32> to vector<288x4xf32>
    %41 = arith.truncf %40 : vector<288x4xf32> to vector<288x4xbf16>
    %c6 = arith.constant 6 : index
    %c0_22 = arith.constant 0 : index
    %c0_23 = arith.constant 0 : index
    %42 = vector.load %arg3[%c6, %c0_22, %c0_23] : memref<9x4x128xbf16, #tpu.memory_space<vmem>>, vector<1x4x128xbf16>
    %43 = vector.shape_cast %42 : vector<1x4x128xbf16> to vector<4x128xbf16>
    %cst_24 = arith.constant dense<0.000000e+00> : vector<288x128xf32>
    %44 = tpu.matmul %41, %43, %cst_24 {dimension_numbers = #tpu.dot_dimension_numbers<[1], [0], [0], [1], [0, 0, 1, 1], [], []>} : vector<288x4xbf16>, vector<4x128xbf16>, vector<288x128xf32> -> vector<288x128xf32>
    %45 = arith.addf %39, %44 : vector<288x128xf32>
    %46 = vector.extract_strided_slice %2 {offsets = [37, 0], sizes = [288, 4], strides = [1, 1]} : vector<342x4xf32> to vector<288x4xf32>
    %47 = arith.truncf %46 : vector<288x4xf32> to vector<288x4xbf16>
    %c7 = arith.constant 7 : index
    %c0_25 = arith.constant 0 : index
    %c0_26 = arith.constant 0 : index
    %48 = vector.load %arg3[%c7, %c0_25, %c0_26] : memref<9x4x128xbf16, #tpu.memory_space<vmem>>, vector<1x4x128xbf16>
    %49 = vector.shape_cast %48 : vector<1x4x128xbf16> to vector<4x128xbf16>
    %cst_27 = arith.constant dense<0.000000e+00> : vector<288x128xf32>
    %50 = tpu.matmul %47, %49, %cst_27 {dimension_numbers = #tpu.dot_dimension_numbers<[1], [0], [0], [1], [0, 0, 1, 1], [], []>} : vector<288x4xbf16>, vector<4x128xbf16>, vector<288x128xf32> -> vector<288x128xf32>
    %51 = arith.addf %45, %50 : vector<288x128xf32>
    %52 = vector.extract_strided_slice %2 {offsets = [38, 0], sizes = [288, 4], strides = [1, 1]} : vector<342x4xf32> to vector<288x4xf32>
    %53 = arith.truncf %52 : vector<288x4xf32> to vector<288x4xbf16>
    %c8 = arith.constant 8 : index
    %c0_28 = arith.constant 0 : index
    %c0_29 = arith.constant 0 : index
    %54 = vector.load %arg3[%c8, %c0_28, %c0_29] : memref<9x4x128xbf16, #tpu.memory_space<vmem>>, vector<1x4x128xbf16>
    %55 = vector.shape_cast %54 : vector<1x4x128xbf16> to vector<4x128xbf16>
    %cst_30 = arith.constant dense<0.000000e+00> : vector<288x128xf32>
    %56 = tpu.matmul %53, %55, %cst_30 {dimension_numbers = #tpu.dot_dimension_numbers<[1], [0], [0], [1], [0, 0, 1, 1], [], []>} : vector<288x4xbf16>, vector<4x128xbf16>, vector<288x128xf32> -> vector<288x128xf32>
    %57 = arith.addf %51, %56 : vector<288x128xf32>
    %c0_31 = arith.constant 0 : index
    %c0_32 = arith.constant 0 : index
    %58 = vector.load %arg4[%c0_31, %c0_32] : memref<1x128xf32, #tpu.memory_space<vmem>>, vector<1x128xf32>
    %59 = vector.broadcast %58 : vector<1x128xf32> to vector<288x128xf32>
    %60 = arith.addf %57, %59 : vector<288x128xf32>
    %cst_33 = arith.constant 0.000000e+00 : f32
    %61 = vector.broadcast %cst_33 : f32 to vector<288x128xf32>
    %62 = arith.maximumf %60, %61 : vector<288x128xf32>
    %63 = arith.truncf %62 : vector<288x128xf32> to vector<288x128xbf16>
    %c0_34 = arith.constant 0 : index
    %c0_35 = arith.constant 0 : index
    %c0_36 = arith.constant 0 : index
    %c0_37 = arith.constant 0 : index
    %64 = vector.load %arg5[%c0_34, %c0_35, %c0_36, %c0_37] : memref<1x1x288x128xbf16, #tpu.memory_space<vmem>>, vector<1x1x288x128xbf16>
    %65 = vector.shape_cast %64 : vector<1x1x288x128xbf16> to vector<288x128xbf16>
    %66 = vector.shape_cast %63 : vector<288x128xbf16> to vector<1x1x288x128xbf16>
    tpu.vector_store %arg5[%c0_34, %c0_35, %c0_36, %c0_37], %66 {strides = array<i32>} : memref<1x1x288x128xbf16, #tpu.memory_space<vmem>>, vector<1x1x288x128xbf16>,
    return
  }
  func.func @transform_0(%arg0: i32, %arg1: i32) -> (i32, i32, i32, i32) {
    %c0_i32 = arith.constant 0 : i32
    %c0_i32_0 = arith.constant 0 : i32
    %c0_i32_1 = arith.constant 0 : i32
    return %arg0, %arg1, %c0_i32, %c0_i32_0 : i32, i32, i32, i32
  }
  func.func @transform_1(%arg0: i32, %arg1: i32) -> (i32, i32, i32) {
    %c0_i32 = arith.constant 0 : i32
    %c0_i32_0 = arith.constant 0 : i32
    %c0_i32_1 = arith.constant 0 : i32
    %c0_i32_2 = arith.constant 0 : i32
    return %c0_i32, %c0_i32_0, %c0_i32_1 : i32, i32, i32
  }
  func.func @transform_2(%arg0: i32, %arg1: i32) -> (i32, i32) {
    %c0_i32 = arith.constant 0 : i32
    %c0_i32_0 = arith.constant 0 : i32
    %c0_i32_1 = arith.constant 0 : i32
    return %c0_i32, %c0_i32_0 : i32, i32
  }
  func.func @transform_3(%arg0: i32, %arg1: i32) -> (i32, i32, i32, i32) {
    %c0_i32 = arith.constant 0 : i32
    %c0_i32_0 = arith.constant 0 : i32
    %c0_i32_1 = arith.constant 0 : i32
    return %arg0, %arg1, %c0_i32, %c0_i32_0 : i32, i32, i32, i32
  }
}

module attributes {stable_mosaic.version = 11 : i64} {
  func.func @_conv_bn_relu_deconv_kernel(%arg0: i32, %arg1: i32, %arg2: memref<1x1x342x128xbf16, #tpu.memory_space<vmem>>, %arg3: memref<9x128x8xbf16, #tpu.memory_space<vmem>>, %arg4: memref<1x8xf32, #tpu.memory_space<vmem>>, %arg5: memref<8x128xbf16, #tpu.memory_space<vmem>>, %arg6: memref<1x128xf32, #tpu.memory_space<vmem>>, %arg7: memref<1x1x288x128xf32, #tpu.memory_space<vmem>>) attributes {dimension_semantics = [#tpu.dimension_semantics<parallel>, #tpu.dimension_semantics<parallel>], iteration_bounds = array<i64: 2, 1>, scalar_prefetch = 0 : i64, scratch_operands = 0 : i64, tpu.core_type = #tpu.core_type<tc>, window_params = [{transform_indices = @transform_0, window_bounds = array<i64: 1, 1, 342, 128>}, {pipeline_mode = #tpu.pipeline_mode<synchronous>, transform_indices = @transform_1, window_bounds = array<i64: 9, 128, 8>}, {pipeline_mode = #tpu.pipeline_mode<synchronous>, transform_indices = @transform_2, window_bounds = array<i64: 1, 8>}, {pipeline_mode = #tpu.pipeline_mode<synchronous>, transform_indices = @transform_3, window_bounds = array<i64: 8, 128>}, {pipeline_mode = #tpu.pipeline_mode<synchronous>, transform_indices = @transform_4, window_bounds = array<i64: 1, 128>}, {transform_indices = @transform_5, window_bounds = array<i64: 1, 1, 288, 128>}]} {
    %c0 = arith.constant 0 : index
    %c0_0 = arith.constant 0 : index
    %c0_1 = arith.constant 0 : index
    %c0_2 = arith.constant 0 : index
    %0 = vector.load %arg2[%c0, %c0_0, %c0_1, %c0_2] : memref<1x1x342x128xbf16, #tpu.memory_space<vmem>>, vector<1x1x342x128xbf16>
    %1 = vector.shape_cast %0 : vector<1x1x342x128xbf16> to vector<342x128xbf16>
    %2 = arith.extf %1 : vector<342x128xbf16> to vector<342x128xf32>
    %cst = arith.constant 0.000000e+00 : f32
    %3 = vector.broadcast %cst : f32 to vector<288x8xf32>
    %4 = vector.extract_strided_slice %2 {offsets = [0, 0], sizes = [288, 128], strides = [1, 1]} : vector<342x128xf32> to vector<288x128xf32>
    %5 = arith.truncf %4 : vector<288x128xf32> to vector<288x128xbf16>
    %c0_3 = arith.constant 0 : index
    %c0_4 = arith.constant 0 : index
    %c0_5 = arith.constant 0 : index
    %6 = vector.load %arg3[%c0_3, %c0_4, %c0_5] : memref<9x128x8xbf16, #tpu.memory_space<vmem>>, vector<1x128x8xbf16>
    %7 = vector.shape_cast %6 : vector<1x128x8xbf16> to vector<128x8xbf16>
    %cst_6 = arith.constant dense<0.000000e+00> : vector<288x8xf32>
    %8 = tpu.matmul %5, %7, %cst_6 {dimension_numbers = #tpu.dot_dimension_numbers<[1], [0], [0], [1], [0, 0, 1, 1], [], []>} : vector<288x128xbf16>, vector<128x8xbf16>, vector<288x8xf32> -> vector<288x8xf32>
    %9 = arith.addf %3, %8 : vector<288x8xf32>
    %10 = vector.extract_strided_slice %2 {offsets = [1, 0], sizes = [288, 128], strides = [1, 1]} : vector<342x128xf32> to vector<288x128xf32>
    %11 = arith.truncf %10 : vector<288x128xf32> to vector<288x128xbf16>
    %c1 = arith.constant 1 : index
    %c0_7 = arith.constant 0 : index
    %c0_8 = arith.constant 0 : index
    %12 = vector.load %arg3[%c1, %c0_7, %c0_8] : memref<9x128x8xbf16, #tpu.memory_space<vmem>>, vector<1x128x8xbf16>
    %13 = vector.shape_cast %12 : vector<1x128x8xbf16> to vector<128x8xbf16>
    %cst_9 = arith.constant dense<0.000000e+00> : vector<288x8xf32>
    %14 = tpu.matmul %11, %13, %cst_9 {dimension_numbers = #tpu.dot_dimension_numbers<[1], [0], [0], [1], [0, 0, 1, 1], [], []>} : vector<288x128xbf16>, vector<128x8xbf16>, vector<288x8xf32> -> vector<288x8xf32>
    %15 = arith.addf %9, %14 : vector<288x8xf32>
    %16 = vector.extract_strided_slice %2 {offsets = [2, 0], sizes = [288, 128], strides = [1, 1]} : vector<342x128xf32> to vector<288x128xf32>
    %17 = arith.truncf %16 : vector<288x128xf32> to vector<288x128xbf16>
    %c2 = arith.constant 2 : index
    %c0_10 = arith.constant 0 : index
    %c0_11 = arith.constant 0 : index
    %18 = vector.load %arg3[%c2, %c0_10, %c0_11] : memref<9x128x8xbf16, #tpu.memory_space<vmem>>, vector<1x128x8xbf16>
    %19 = vector.shape_cast %18 : vector<1x128x8xbf16> to vector<128x8xbf16>
    %cst_12 = arith.constant dense<0.000000e+00> : vector<288x8xf32>
    %20 = tpu.matmul %17, %19, %cst_12 {dimension_numbers = #tpu.dot_dimension_numbers<[1], [0], [0], [1], [0, 0, 1, 1], [], []>} : vector<288x128xbf16>, vector<128x8xbf16>, vector<288x8xf32> -> vector<288x8xf32>
    %21 = arith.addf %15, %20 : vector<288x8xf32>
    %22 = vector.extract_strided_slice %2 {offsets = [18, 0], sizes = [288, 128], strides = [1, 1]} : vector<342x128xf32> to vector<288x128xf32>
    %23 = arith.truncf %22 : vector<288x128xf32> to vector<288x128xbf16>
    %c3 = arith.constant 3 : index
    %c0_13 = arith.constant 0 : index
    %c0_14 = arith.constant 0 : index
    %24 = vector.load %arg3[%c3, %c0_13, %c0_14] : memref<9x128x8xbf16, #tpu.memory_space<vmem>>, vector<1x128x8xbf16>
    %25 = vector.shape_cast %24 : vector<1x128x8xbf16> to vector<128x8xbf16>
    %cst_15 = arith.constant dense<0.000000e+00> : vector<288x8xf32>
    %26 = tpu.matmul %23, %25, %cst_15 {dimension_numbers = #tpu.dot_dimension_numbers<[1], [0], [0], [1], [0, 0, 1, 1], [], []>} : vector<288x128xbf16>, vector<128x8xbf16>, vector<288x8xf32> -> vector<288x8xf32>
    %27 = arith.addf %21, %26 : vector<288x8xf32>
    %28 = vector.extract_strided_slice %2 {offsets = [19, 0], sizes = [288, 128], strides = [1, 1]} : vector<342x128xf32> to vector<288x128xf32>
    %29 = arith.truncf %28 : vector<288x128xf32> to vector<288x128xbf16>
    %c4 = arith.constant 4 : index
    %c0_16 = arith.constant 0 : index
    %c0_17 = arith.constant 0 : index
    %30 = vector.load %arg3[%c4, %c0_16, %c0_17] : memref<9x128x8xbf16, #tpu.memory_space<vmem>>, vector<1x128x8xbf16>
    %31 = vector.shape_cast %30 : vector<1x128x8xbf16> to vector<128x8xbf16>
    %cst_18 = arith.constant dense<0.000000e+00> : vector<288x8xf32>
    %32 = tpu.matmul %29, %31, %cst_18 {dimension_numbers = #tpu.dot_dimension_numbers<[1], [0], [0], [1], [0, 0, 1, 1], [], []>} : vector<288x128xbf16>, vector<128x8xbf16>, vector<288x8xf32> -> vector<288x8xf32>
    %33 = arith.addf %27, %32 : vector<288x8xf32>
    %34 = vector.extract_strided_slice %2 {offsets = [20, 0], sizes = [288, 128], strides = [1, 1]} : vector<342x128xf32> to vector<288x128xf32>
    %35 = arith.truncf %34 : vector<288x128xf32> to vector<288x128xbf16>
    %c5 = arith.constant 5 : index
    %c0_19 = arith.constant 0 : index
    %c0_20 = arith.constant 0 : index
    %36 = vector.load %arg3[%c5, %c0_19, %c0_20] : memref<9x128x8xbf16, #tpu.memory_space<vmem>>, vector<1x128x8xbf16>
    %37 = vector.shape_cast %36 : vector<1x128x8xbf16> to vector<128x8xbf16>
    %cst_21 = arith.constant dense<0.000000e+00> : vector<288x8xf32>
    %38 = tpu.matmul %35, %37, %cst_21 {dimension_numbers = #tpu.dot_dimension_numbers<[1], [0], [0], [1], [0, 0, 1, 1], [], []>} : vector<288x128xbf16>, vector<128x8xbf16>, vector<288x8xf32> -> vector<288x8xf32>
    %39 = arith.addf %33, %38 : vector<288x8xf32>
    %40 = vector.extract_strided_slice %2 {offsets = [36, 0], sizes = [288, 128], strides = [1, 1]} : vector<342x128xf32> to vector<288x128xf32>
    %41 = arith.truncf %40 : vector<288x128xf32> to vector<288x128xbf16>
    %c6 = arith.constant 6 : index
    %c0_22 = arith.constant 0 : index
    %c0_23 = arith.constant 0 : index
    %42 = vector.load %arg3[%c6, %c0_22, %c0_23] : memref<9x128x8xbf16, #tpu.memory_space<vmem>>, vector<1x128x8xbf16>
    %43 = vector.shape_cast %42 : vector<1x128x8xbf16> to vector<128x8xbf16>
    %cst_24 = arith.constant dense<0.000000e+00> : vector<288x8xf32>
    %44 = tpu.matmul %41, %43, %cst_24 {dimension_numbers = #tpu.dot_dimension_numbers<[1], [0], [0], [1], [0, 0, 1, 1], [], []>} : vector<288x128xbf16>, vector<128x8xbf16>, vector<288x8xf32> -> vector<288x8xf32>
    %45 = arith.addf %39, %44 : vector<288x8xf32>
    %46 = vector.extract_strided_slice %2 {offsets = [37, 0], sizes = [288, 128], strides = [1, 1]} : vector<342x128xf32> to vector<288x128xf32>
    %47 = arith.truncf %46 : vector<288x128xf32> to vector<288x128xbf16>
    %c7 = arith.constant 7 : index
    %c0_25 = arith.constant 0 : index
    %c0_26 = arith.constant 0 : index
    %48 = vector.load %arg3[%c7, %c0_25, %c0_26] : memref<9x128x8xbf16, #tpu.memory_space<vmem>>, vector<1x128x8xbf16>
    %49 = vector.shape_cast %48 : vector<1x128x8xbf16> to vector<128x8xbf16>
    %cst_27 = arith.constant dense<0.000000e+00> : vector<288x8xf32>
    %50 = tpu.matmul %47, %49, %cst_27 {dimension_numbers = #tpu.dot_dimension_numbers<[1], [0], [0], [1], [0, 0, 1, 1], [], []>} : vector<288x128xbf16>, vector<128x8xbf16>, vector<288x8xf32> -> vector<288x8xf32>
    %51 = arith.addf %45, %50 : vector<288x8xf32>
    %52 = vector.extract_strided_slice %2 {offsets = [38, 0], sizes = [288, 128], strides = [1, 1]} : vector<342x128xf32> to vector<288x128xf32>
    %53 = arith.truncf %52 : vector<288x128xf32> to vector<288x128xbf16>
    %c8 = arith.constant 8 : index
    %c0_28 = arith.constant 0 : index
    %c0_29 = arith.constant 0 : index
    %54 = vector.load %arg3[%c8, %c0_28, %c0_29] : memref<9x128x8xbf16, #tpu.memory_space<vmem>>, vector<1x128x8xbf16>
    %55 = vector.shape_cast %54 : vector<1x128x8xbf16> to vector<128x8xbf16>
    %cst_30 = arith.constant dense<0.000000e+00> : vector<288x8xf32>
    %56 = tpu.matmul %53, %55, %cst_30 {dimension_numbers = #tpu.dot_dimension_numbers<[1], [0], [0], [1], [0, 0, 1, 1], [], []>} : vector<288x128xbf16>, vector<128x8xbf16>, vector<288x8xf32> -> vector<288x8xf32>
    %57 = arith.addf %51, %56 : vector<288x8xf32>
    %c0_31 = arith.constant 0 : index
    %c0_32 = arith.constant 0 : index
    %58 = vector.load %arg4[%c0_31, %c0_32] : memref<1x8xf32, #tpu.memory_space<vmem>>, vector<1x8xf32>
    %59 = vector.broadcast %58 : vector<1x8xf32> to vector<288x8xf32>
    %60 = arith.addf %57, %59 : vector<288x8xf32>
    %cst_33 = arith.constant 0.000000e+00 : f32
    %61 = vector.broadcast %cst_33 : f32 to vector<288x8xf32>
    %62 = arith.maximumf %60, %61 : vector<288x8xf32>
    %63 = arith.truncf %62 : vector<288x8xf32> to vector<288x8xbf16>
    %c0_34 = arith.constant 0 : index
    %c0_35 = arith.constant 0 : index
    %64 = vector.load %arg5[%c0_34, %c0_35] : memref<8x128xbf16, #tpu.memory_space<vmem>>, vector<8x128xbf16>
    %cst_36 = arith.constant dense<0.000000e+00> : vector<288x128xf32>
    %65 = tpu.matmul %63, %64, %cst_36 {dimension_numbers = #tpu.dot_dimension_numbers<[1], [0], [0], [1], [0, 0, 1, 1], [], []>} : vector<288x8xbf16>, vector<8x128xbf16>, vector<288x128xf32> -> vector<288x128xf32>
    %c0_37 = arith.constant 0 : index
    %c0_38 = arith.constant 0 : index
    %66 = vector.load %arg6[%c0_37, %c0_38] : memref<1x128xf32, #tpu.memory_space<vmem>>, vector<1x128xf32>
    %67 = vector.broadcast %66 : vector<1x128xf32> to vector<288x128xf32>
    %68 = arith.addf %65, %67 : vector<288x128xf32>
    %c0_39 = arith.constant 0 : index
    %c0_40 = arith.constant 0 : index
    %c0_41 = arith.constant 0 : index
    %c0_42 = arith.constant 0 : index
    %69 = vector.load %arg7[%c0_39, %c0_40, %c0_41, %c0_42] : memref<1x1x288x128xf32, #tpu.memory_space<vmem>>, vector<1x1x288x128xf32>
    %70 = vector.shape_cast %69 : vector<1x1x288x128xf32> to vector<288x128xf32>
    %71 = vector.shape_cast %68 : vector<288x128xf32> to vector<1x1x288x128xf32>
    tpu.vector_store %arg7[%c0_39, %c0_40, %c0_41, %c0_42], %71 {strides = array<i32>} : memref<1x1x288x128xf32, #tpu.memory_space<vmem>>, vector<1x1x288x128xf32>,
    return
  }
  func.func @transform_0(%arg0: i32, %arg1: i32) -> (i32, i32, i32, i32) {
    %c0_i32 = arith.constant 0 : i32
    %c0_i32_0 = arith.constant 0 : i32
    %c0_i32_1 = arith.constant 0 : i32
    return %arg0, %arg1, %c0_i32, %c0_i32_0 : i32, i32, i32, i32
  }
  func.func @transform_1(%arg0: i32, %arg1: i32) -> (i32, i32, i32) {
    %c0_i32 = arith.constant 0 : i32
    %c0_i32_0 = arith.constant 0 : i32
    %c0_i32_1 = arith.constant 0 : i32
    %c0_i32_2 = arith.constant 0 : i32
    return %c0_i32, %c0_i32_0, %c0_i32_1 : i32, i32, i32
  }
  func.func @transform_2(%arg0: i32, %arg1: i32) -> (i32, i32) {
    %c0_i32 = arith.constant 0 : i32
    %c0_i32_0 = arith.constant 0 : i32
    %c0_i32_1 = arith.constant 0 : i32
    return %c0_i32, %c0_i32_0 : i32, i32
  }
  func.func @transform_3(%arg0: i32, %arg1: i32) -> (i32, i32) {
    %c0_i32 = arith.constant 0 : i32
    %c0_i32_0 = arith.constant 0 : i32
    %c0_i32_1 = arith.constant 0 : i32
    return %c0_i32, %c0_i32_0 : i32, i32
  }
  func.func @transform_4(%arg0: i32, %arg1: i32) -> (i32, i32) {
    %c0_i32 = arith.constant 0 : i32
    %c0_i32_0 = arith.constant 0 : i32
    %c0_i32_1 = arith.constant 0 : i32
    return %c0_i32, %c0_i32_0 : i32, i32
  }
  func.func @transform_5(%arg0: i32, %arg1: i32) -> (i32, i32, i32, i32) {
    %c0_i32 = arith.constant 0 : i32
    %c0_i32_0 = arith.constant 0 : i32
    %c0_i32_1 = arith.constant 0 : i32
    return %arg0, %arg1, %c0_i32, %c0_i32_0 : i32, i32, i32, i32
  }
}

</mosaic_0001>

<bundles_post_ra>
// kernel: tile.8
= control target key start
LH: loop header
LB: loop body
LE: loop exit
PB: predicated region body
PF: predicated region fallthrough
CT: control target
= control target key end

     0   :  { %2 = vsyncpa [#allocation1], 0  ;;  %s42_s6 = smov [#allocation0]   ;;  %s59_s0 = inlined_call_operand.hbm [shape: f32[4], index: 0, kind: input, shape index: {}]   ;;  %s60_s1 = inlined_call_operand.vmem [shape: f32[4,4], index: 1, kind: output, shape index: {}]  }
   0x1   :  { %s9_s7 = sshll.u32 %s42_s6, 4  ;;  %s10_s7 = int_to_ptr.vmem [resolvable:$true] %s9_s7 }
   0x2   :  { %s28_s8 = scalar_lea.vmem %s10_s7, 16  ;;  %s32_s9 = scalar_lea.vmem %s10_s7, 32 }
   0x3   :  { %p29_p0 = scmp.ne.s32.totalorder %s10_s7, %s28_s8  ;;  %p33_p1 = scmp.lt.s32.totalorder %s10_s7, %s10_s7 }
   0x4   :  { %p34_p2 = scmp.lt.s32.totalorder %s32_s9, %s28_s8 }
   0x6   :  { %p35_p3 = por %p34_p2, %p33_p1 }
   0x8   :  { %p36_p4 = pnand %p35_p3, %p29_p0 }
   0xa   :  { %39 = shalt.err (!%p36_p4)
}
   0xb   :  { %12 = dma.hbm_to_vmem [thread:$0]  %s59_s0, 16, %s10_s7, [#allocation1]  }
   0xc   :  { %40 = dma.done.wait [#allocation1], 16  }
   0xd   :  { %41 = vsyncadd [#allocation1], 4294967280  ;;  %v16_v0 = vld [vmem:[#allocation0] ss:$0 sm:$0xff] }
   0xe   :  { %17 = vst [vmem:[%s60_s1] sm:$0xf] %v16_v0 }
   0xf   :  { %18 = vsyncpa [#allocation1], 1 }

// kernel: tile.9
= control target key start
LH: loop header
LB: loop body
LE: loop exit
PB: predicated region body
PF: predicated region fallthrough
CT: control target
= control target key end

     0   :  { %vm8_vm0 = vcmask 31744   ;;  %s40_s8 = smov 4   ;;  %s41_s9 = smov 8   ;;  %vm14_vm1 = vcmask 130144   ;;  %vm20_vm2 = vcmask 97344   ;;  %vm26_vm3 = vcmask 64544   ;;  %s58_s0 = inlined_call_operand.vmem [shape: f32[4,4], index: 0, kind: input, shape index: {}]   ;;  %s59_s1 = inlined_call_operand.vmem [shape: f32[16], index: 1, kind: output, shape index: {}]  }
   0x1   :  { %v5_v0 = vld [vmem:[%s58_s0] sm:$0xf]  ;;  %s39_s0 = smov 12  }
   0x2   :  { %6 = vst [vmem:[#allocation1] sm:$0xf] %v5_v0 }
   0x9   :  { %v11_v1 = vld [vmem:[#allocation1 + $0x3] sm:$0x1]   ;;  %v23_v2 = vld [vmem:[#allocation1 + $0x1] sm:$0x1]   ;;  %v7_v3 = vld [vmem:[#allocation1] sm:$0x1]  }
   0xa   :  { %12 = vrot.lane.b32.xlu0 %v11_v1, %s39_s0  ;;  %24 = vrot.lane.b32.xlu1 %v23_v2, %s40_s8  ;;  %v17_v4 = vld [vmem:[#allocation1 + $0x2] sm:$0x1]   ;;  %9 = vst.msk [vmem:[#allocation0] sm:$0x1] %vm8_vm0, %v7_v3  }
   0xe   :  { %18 = vrot.lane.b32.xlu0 %v17_v4, %s41_s9 }
  0x7c   :  { %v13_v5 = vpop.permute.xlu0 %12   ;;  %v25_v6 = vpop.permute.xlu1 %24  }
  0x7d   :  { %15 = vst.msk [vmem:[#allocation0] sm:$0x1] %vm14_vm1, %v13_v5  }
  0x80   :  { %v19_v7 = vpop.permute.xlu0 %18  }
  0x81   :  { %21 = vst.msk [vmem:[#allocation0] sm:$0x1] %vm20_vm2, %v19_v7  }
  0x82   :  { %27 = vst.msk [vmem:[#allocation0] sm:$0x1] %vm26_vm3, %v25_v6  }
  0x89   :  { %v32_v8 = vld [vmem:[#allocation0] sm:$0x1] }
  0x8a   :  { %35 = vst [vmem:[%s59_s1] sm:$0x1] %v32_v8 }

// kernel: upsample_forward.2
= control target key start
LH: loop header
LB: loop body
LE: loop exit
PB: predicated region body
PF: predicated region fallthrough
CT: control target
= control target key end

     0   :  { %s4406_s12 = smov 0   ;;  %s4408_s13 = smov 0   ;;  %s5752_s0 = inlined_call_operand.vmem [shape: bf16[2,1,342,4], index: 0, kind: input, shape index: {}]   ;;  %s5753_s1 = inlined_call_operand.vmem [shape: bf16[9,4,128], index: 1, kind: input, shape index: {}]   ;;  %s5754_s2 = inlined_call_operand.vmem [shape: f32[1,128], index: 2, kind: input, shape index: {}]   ;;  %s5755_s3 = inlined_call_operand.vmem [shape: bf16[2,1,288,128], index: 3, kind: output, shape index: {}]  }
   0x1   :  { %s4410_s14 = smov 0  }
   0x2 LB: > { %s25_s15 = sadd.s32 1, %s4380_s13  ;;  %p3397_p0 = scmp.ge.s32.totalorder %s4384_s14, 1  ;;  %s4384_s14 = sphi %s4410_s14, %s13_s14   ;;  %s4380_s13 = sphi %s4408_s13, %s5881_s13   ;;  %s4376_s12 = sphi %s4406_s12, %s5880_s12  }
   0x3   : > { %p27_p1 = scmp.ge.s32.totalorder %s25_s15, 2  ;;  %p157_p2 = scmp.lt.s32.totalorder %s4384_s14, 3 }
   0x5   : > { %s5883_s15 = smov (%p27_p1, %s25_s15), 0  ;;  %p158_p3 = pnand %p3397_p0, %p157_p2 }
   0x7   : > { %161 = sbr.rel (%p158_p3) target bundleno = 555 (0x22b), region = 32 }
   0xc   : > { %v3419_v0 = vld [vmem:[%s5753_s1 + $0x2] sm:$0x3]  ;;  %vm516_vm0 = vcmask 1041408   ;;  %p189_p4 = scmp.lt.s32.totalorder %s4376_s12, 1  ;;  %v3456_v2 = vld [vmem:[%s5753_s1 + $0x4] sm:$0x3] }
   0xd   : > { %4290 = vmatprep.subr.msk.bf16.mxu0 %vm516_vm0, %v3419_v0  ;;  %4291 = vmatprep.subr.msk.bf16.mxu1 %vm516_vm0, %v3419_v0  ;;  %v518_v1 = vsel %vm516_vm0, %v3419_v0, 0  ;;  %v308_v3 = vld [vmem:[%s5753_s1] sm:$0x3]  ;;  %vm312_vm1 = vsmask.f32 7424  ;;  %vm461_vm2 = vcmask 31744  }
   0xe   : > { %3947 = vmatpush3.bf16.msra.mxu0 %v518_v1  ;;  %4289 = vmatpush3.bf16.msra.mxu1 %v518_v1  ;;  %s5885_s12 = smov (!%p189_p4, %s4376_s12), 1  ;;  %v1027_v12 = vsel %vm516_vm0, %v3456_v2, 0  ;;  %v734_v16 = vsel %vm516_vm0, %v308_v3, 0  ;;  %v4505_v32 = vld [vmem:[%s5753_s1 + $0x8] sm:$0x3]  ;;  %vm934_vm3 = vcmask 1046528  }
   0xf   : > { %4293 = vmatprep.subr.msk.bf16.mxu0 %vm516_vm0, %v3456_v2  ;;  %4292 = vmatprep.subr.msk.bf16.mxu1 %vm516_vm0, %v308_v3  ;;  %s4300_s22 = smul.u32 172, %s5885_s12  ;;  %v4533_v43 = vld [vmem:[%s5753_s1 + $0x6] sm:$0x3]  ;;  %vm1476_vm4 = vsmask.f32 6400  ;;  %vm1834_vm5 = vcmask 1045504  }
  0x10   : > { %vm2376_vm6 = vsmask.f32 5376  ;;  %vm2734_vm7 = vcmask 1044480   ;;  %s4301_s17 = smul.u32 144, %s5885_s12 }
  0x11   : > { %s4444_s25 = scalar_lea.vmem %s5752_s0, %s4300_s22 }
  0x12   : > { %v4447_v4 = vld [vmem:[%s4444_s25] sm:$0xff]   ;;  %v4450_v5 = vld [vmem:[%s4444_s25 + $0x8] sm:$0xff]   ;;  %v4457_v10 = vld [vmem:[%s4444_s25 + $0x50] sm:$0xff]   ;;  %s5661_s12 = scalar_lea.vmem %s5755_s3, %s4301_s17 }
  0x13   : > { %v314_v6 = vshrl.u32 %v4447_v4, 16  ;;  %v316_v7 = vshll.u32 %v4447_v4, 16  ;;  %v5758_v8 = vshll.u32 %v4450_v5, 16  ;;  %v5757_v9 = vshrl.u32 %v4450_v5, 16  ;;  %5792 = vst [vmem:[#allocation2_spill] sm:$0xff] %v4457_v10  ;;  %v4460_v11 = vld [vmem:[%s4444_s25 + $0x58] sm:$0xff]  }
  0x14   : > { %5793 = vst [vmem:[#allocation3_spill] sm:$0xff] %v4460_v11  ;;  %v4466_v15 = vld [vmem:[%s4444_s25 + $0x10] sm:$0xff]   ;;  %v4470_v17 = vshll.u32 %v4457_v10, 16  ;;  %v4473_v18 = vshrl.u32 %v4457_v10, 16  ;;  %v4476_v19 = vshll.u32 %v4460_v11, 16  ;;  %v4479_v20 = vshrl.u32 %v4460_v11, 16 }
  0x15   : > { %v318_v13 = vrot.slane %v316_v7, 1  ;;  %v323_v14 = vrot.slane %v5758_v8, 1  ;;  %v4484_v23 = vshll.u32 %v4466_v15, 16  ;;  %v4487_v24 = vld [vmem:[%s4444_s25 + $0x60] sm:$0xff]   ;;  %v4492_v27 = vld [vmem:[%s4444_s25 + $0x18] sm:$0xff]   ;;  %v4495_v28 = vshrl.u32 %v4466_v15, 16 }
  0x16   : > { %5795 = vst [vmem:[#allocation5_spill] sm:$0xff] %v4487_v24  ;;  %v5756_v25 = vrot.slane %v4470_v17, 1  ;;  %v403_v26 = vrot.slane %v4476_v19, 1  ;;  %v4500_v31 = vshll.u32 %v4487_v24, 16  ;;  %v4513_v35 = vshll.u32 %v4492_v27, 16  ;;  %v4516_v36 = vld [vmem:[%s4444_s25 + $0x68] sm:$0xff]  }
  0x17   : > { %v319_v21 = vor.u32 %v318_v13, %v314_v6  ;;  %v327_v22 = vor.u32 %v5757_v9, %v323_v14  ;;  %5794 = vst [vmem:[#allocation4_spill] sm:$0xff] %v4484_v23  ;;  %5796 = vst [vmem:[#allocation6_spill] sm:$0xff] %v4495_v28  ;;  %v331_v30 = vrot.slane %v4484_v23, 1  ;;  %v4519_v37 = vshrl.u32 %v4487_v24, 16  ;;  %v4522_v38 = vld [vmem:[%s4444_s25 + $0x20] sm:$0xff]   ;;  %v4545_v48 = vld [vmem:[%s4444_s25 + $0x70] sm:$0xff]  }
  0x18   : > { %v399_v33 = vor.u32 %v4473_v18, %v5756_v25  ;;  %v407_v34 = vor.u32 %v4479_v20, %v403_v26  ;;  %5797 = vst [vmem:[#allocation7_spill] sm:$0xff] %v4516_v36  ;;  %v411_v40 = vrot.slane %v4500_v31, 1  ;;  %v4528_v42 = vshrl.u32 %v4492_v27, 16  ;;  %5799 = vst [vmem:[#allocation9_spill] sm:$0xff] %v4545_v48  ;;  %v4554_v52 = vld [vmem:[%s4444_s25 + $0x28] sm:$0xff]   ;;  %v4574_v60 = vld [vmem:[%s4444_s25 + $0x78] sm:$0xff]  }
  0x19   : > { %v324_v29 = vsel %vm312_vm1, %v319_v21, %v323_v14  ;;  %v332_v39 = vsel %vm312_vm1, %v327_v22, %v331_v30  ;;  %v335_v41 = vor.u32 %v4495_v28, %v331_v30  ;;  %v339_v45 = vrot.slane %v4513_v35, 1  ;;  %v4577_v61 = vld [vmem:[%s4444_s25 + $0x30] sm:$0xff]   ;;  %v4585_v1 = vld [vmem:[%s4444_s25 + $0x80] sm:$0xff]  }
  0x1a   : > { %3948 = vmatprep.mubr.msk.bf16.mxu0 %vm461_vm2, %v324_v29  ;;  %v404_v44 = vsel %vm312_vm1, %v399_v33, %v403_v26  ;;  %v4539_v46 = vshll.u32 %v4516_v36, 16  ;;  %v4542_v47 = vshll.u32 %v4522_v38, 16  ;;  %v412_v49 = vsel %vm312_vm1, %v407_v34, %v411_v40  ;;  %5801 = vst [vmem:[#allocation11_spill] sm:$0xff] %v4577_v61  ;;  %5803 = vst [vmem:[#allocation13_spill] sm:$0xff] %v4585_v1  ;;  %v4616_v33 = vld [vmem:[%s4444_s25 + $0x88] sm:$0xff]  }
  0x1b   : > { %3949 = vmatmul.mubr.msk.bf16.vlgmr.msra.gmra.mxu0 %vm461_vm2, %v332_v39  ;;  %3968 = vmatprep.mubr.msk.bf16.mxu1 %vm461_vm2, %v404_v44  ;;  %v415_v50 = vor.u32 %v4519_v37, %v411_v40  ;;  %v4551_v51 = vshrl.u32 %v4516_v36, 16  ;;  %v340_v53 = vsel %vm312_vm1, %v335_v41, %v339_v45  ;;  %v343_v55 = vor.u32 %v4528_v42, %v339_v45  ;;  %v4626_v44 = vld [vmem:[%s4444_s25 + $0x40] sm:$0xff]  }
  0x1c   : > { %5798 = vst [vmem:[#allocation8_spill] sm:$0xff] %v4539_v46  ;;  %4023 = vmatpush3.bf16.msra.mxu0 %v1027_v12  ;;  %3969 = vmatmul.mubr.msk.bf16.vlgmr.msra.gmra.mxu1 %vm461_vm2, %v412_v49  ;;  %v419_v54 = vrot.slane %v4539_v46, 1  ;;  %v347_v56 = vrot.slane %v4542_v47, 1  ;;  %v4565_v57 = vshll.u32 %v4545_v48, 16  ;;  %v4568_v58 = vshrl.u32 %v4522_v38, 16  ;;  %v4595_v12 = vld [vmem:[%s4444_s25 + $0x38] sm:$0xff]  }
  0x1d   : > { %4295 = vmatprep.subr.msk.bf16.mxu0 %vm516_vm0, %v4505_v32  ;;  %3985 = vmatpush3.bf16.msra.mxu1 %v734_v16  ;;  %v4571_v59 = vshll.u32 %v4554_v52, 16  ;;  %v4582_v0 = vshrl.u32 %v4545_v48, 16  ;;  %5804 = vst [vmem:[#allocation14_spill] sm:$0xff] %v4595_v12  ;;  %v4598_v13 = vshll.u32 %v4574_v60, 16  ;;  %v4601_v14 = vshrl.u32 %v4554_v52, 16  ;;  %5808 = vst [vmem:[#allocation18_spill] sm:$0xff] %v4626_v44 }
  0x1e   : > { %3952 = vmatprep.mubr.msk.bf16.mxu0 %vm461_vm2, %v340_v53  ;;  %5800 = vst [vmem:[#allocation10_spill] sm:$0xff] %v4565_v57  ;;  %v420_v62 = vsel %vm312_vm1, %v415_v50, %v419_v54  ;;  %v423_v63 = vor.u32 %v4551_v51, %v419_v54  ;;  %4294 = vmatprep.subr.msk.bf16.mxu1 %vm516_vm0, %v4533_v43  ;;  %v427_v3 = vrot.slane %v4565_v57, 1  ;;  %v4604_v16 = vshll.u32 %v4577_v61, 16 }
  0x1f   : > { %5802 = vst [vmem:[#allocation12_spill] sm:$0xff] %v4582_v0  ;;  %3972 = vmatprep.mubr.msk.bf16.mxu1 %vm461_vm2, %v420_v62  ;;  %v348_v2 = vsel %vm312_vm1, %v343_v55, %v347_v56  ;;  %v351_v6 = vor.u32 %v4568_v58, %v347_v56  ;;  %v355_v7 = vrot.slane %v4571_v59, 1  ;;  %5805 = vst [vmem:[#allocation15_spill] sm:$0xff] %v4598_v13  ;;  %v4607_v21 = vshrl.u32 %v4574_v60, 16  ;;  %v244_v56 = vld [vmem:[%s4444_s25 + $0x90] sm:$0xf] }
  0x20   : > { %v428_v22 = vsel %vm312_vm1, %v423_v63, %v427_v3  ;;  %v431_v29 = vor.u32 %v4582_v0, %v427_v3  ;;  %v4613_v30 = vshll.u32 %v4585_v1, 16  ;;  %v435_v34 = vrot.slane %v4598_v13, 1 }
  0x21   : > { %5806 = vst [vmem:[#allocation16_spill] sm:$0xff] %v4607_v21  ;;  %v356_v26 = vsel %vm312_vm1, %v351_v6, %v355_v7  ;;  %v359_v39 = vor.u32 %v4601_v14, %v355_v7  ;;  %v363_v40 = vrot.slane %v4604_v16, 1  ;;  %v4623_v41 = vshrl.u32 %v4577_v61, 16 }
  0x22   : > { %5807 = vst [vmem:[#allocation17_spill] sm:$0xff] %v4613_v30  ;;  %v443_v45 = vrot.slane %v4613_v30, 1  ;;  %v4631_v49 = vshll.u32 %v4595_v12, 16  ;;  %v4634_v50 = vshrl.u32 %v4585_v1, 16  ;;  %v4637_v53 = vshll.u32 %v4616_v33, 16 }
  0x23   : > { %3953 = vmatmul.mubr.msk.bf16.gmra.mxu0 %vm461_vm2, %v348_v2  ;;  %v436_v54 = vsel %vm312_vm1, %v431_v29, %v435_v34  ;;  %v367_v55 = vor.u32 %v4623_v41, %v363_v40  ;;  %v439_v62 = vor.u32 %v4607_v21, %v435_v34  ;;  %v4647_v2 = vld [vmem:[%s4444_s25 + $0x48] sm:$0xff]   ;;  %v4652_v7 = vshll.u32 %v4626_v44, 16 }
  0x24   : > { %3956 = vmatprep.mubr.msk.bf16.mxu0 %vm461_vm2, %v356_v26  ;;  %5809 = vst [vmem:[#allocation19_spill] sm:$0xff] %v4634_v50  ;;  %5810 = vst [vmem:[#allocation20_spill] sm:$0xff] %v4637_v53  ;;  %3973 = vmatmul.mubr.msk.bf16.gmra.mxu1 %vm461_vm2, %v428_v22  ;;  %v371_v63 = vrot.slane %v4631_v49, 1  ;;  %v447_v3 = vor.u32 %v4634_v50, %v443_v45  ;;  %v451_v6 = vrot.slane %v4637_v53, 1  ;;  %v4656_v29 = vshrl.u32 %v4595_v12, 16 }
  0x25   : > { %3976 = vmatprep.mubr.msk.bf16.mxu1 %vm461_vm2, %v436_v54  ;;  %5811 = vst [vmem:[#allocation21_spill] sm:$0xff] %v4647_v2  ;;  %v3418_v22 = vcombine.low %v244_v56, %v244_v56  ;;  %v364_v26 = vsel %vm312_vm1, %v359_v39, %v363_v40  ;;  %v4660_v34 = vshrl.u32 %v4626_v44, 16  ;;  %v444_v25 = vsel %vm312_vm1, %v439_v62, %v443_v45 }
  0x26   : > { %v372_v54 = vsel %vm312_vm1, %v367_v55, %v371_v63  ;;  %v4664_v9 = vshrl.u32 %v4616_v33, 16  ;;  %v4667_v53 = vshll.u32 %v4647_v2, 16  ;;  %v452_v39 = vsel %vm312_vm1, %v447_v3, %v451_v6 }
  0x27   : > { %v457_v8 = vshll.u32 %v3418_v22, 16  ;;  %v379_v40 = vrot.slane %v4652_v7, 1  ;;  %v375_v55 = vor.u32 %v4656_v29, %v371_v63  ;;  %v4681_v3 = vshrl.u32 %v4647_v2, 16 }
  0x28   : > { %5812 = vst [vmem:[#allocation22_spill] sm:$0xff] %v4664_v9  ;;  %v387_v62 = vrot.slane %v4667_v53, 1  ;;  %v455_v30 = vor.u32 %v4664_v9, %v451_v6  ;;  %v5813_v63 = vshll.u32 %v4450_v5, 16  ;;  %v970_v6 = vrot.slane %v3418_v22, 1  ;;  %v4727_v9 = vld [vmem:[%s5753_s1 + $0xa] sm:$0x3] }
  0x29   : > { %v383_v45 = vor.u32 %v4660_v34, %v379_v40  ;;  %v459_v50 = vrot.slane %v457_v8, 1  ;;  %v938_v22 = vrot.slane %v4466_v15, 1 }
  0x2a   : > { %v4686_v13 = vrot.slane %v5813_v63, 2  ;;  %v391_v8 = vor.u32 %v4681_v3, %v387_v62 }
  0x2b   : > { %3957 = vmatmul.mubr.msk.bf16.gmra.mxu0 %vm461_vm2, %v364_v26  ;;  %v380_v26 = vsel %vm312_vm1, %v375_v55, %v379_v40  ;;  %v5814_v40 = vshrl.u32 %v4450_v5, 16 }
  0x2c   : > { %3960 = vmatprep.mubr.msk.bf16.mxu0 %vm461_vm2, %v372_v54  ;;  %3977 = vmatmul.mubr.msk.bf16.gmra.mxu1 %vm461_vm2, %v444_v25  ;;  %v388_v54 = vsel %vm312_vm1, %v383_v45, %v387_v62  ;;  %v460_v25 = vsel %vm312_vm1, %v455_v30, %v459_v50  ;;  %v935_v30 = vrot.slane %v4447_v4, 1  ;;  %v936_v50 = vrot.slane %v4450_v5, 1 }
  0x2d   : > { %3980 = vmatprep.mubr.msk.bf16.mxu1 %vm461_vm2, %v452_v39  ;;  %v4691_v39 = vrot.slane %v4616_v33, 1  ;;  %v4697_v55 = vrot.slane %v5814_v40, 1  ;;  %v1488_v62 = vrot.slane %v4568_v58, 1 }
  0x2e   : > { %v937_v40 = vsel %vm934_vm3, %v935_v30, %v936_v50 }
  0x2f   : > { %v4704_v45 = vsel %vm934_vm3, %v4691_v39, %v970_v6  ;;  %v245_v6 = vld [vmem:[%s4444_s25 + $0x94] sm:$0xf] }
  0x30   : > { %v4732_v30 = vcombine.low %v244_v56, %v245_v6  ;;  %v4749_v56 = vld [vmem:[%s5753_s1 + $0xc] sm:$0x3]  ;;  %v946_v6 = vrot.slane %v4577_v61, 1 }
  0x32   : > { %5816 = vst [vmem:[#allocation23_spill] sm:$0xff] %v4732_v30 }
  0x33   : > { %3961 = vmatmul.mubr.msk.bf16.gmra.mxu0 %vm461_vm2, %v380_v26  ;;  %v1489_v26 = vrot.slane %v4542_v47, 2 }
  0x34   : > { %3964 = vmatprep.mubr.msk.bf16.mxu0 %vm461_vm2, %v388_v54  ;;  %3981 = vmatmul.mubr.msk.bf16.gmra.mxu1 %vm461_vm2, %v460_v25  ;;  %v5815_v54 = vrot.slane %v4470_v17, 1 }
  0x35   : > { %3986 = vmatprep.mubr.msk.bf16.mxu1 %vm461_vm2, %v4447_v4  ;;  %v4715_v25 = vor.u32 %v1489_v26, %v1488_v62  ;;  %v1259_v4 = vsel %vm516_vm0, %v4533_v43, 0  ;;  %v4739_v43 = vsel %vm934_vm3, %v936_v50, %v938_v22  ;;  %v1617_v62 = vsel %vm516_vm0, %v4505_v32, 0 }
  0x36   : > { %v396_v63 = vsel %vm312_vm1, %v391_v8, %v5815_v54  ;;  %v940_v8 = vrot.slane %v4492_v27, 1  ;;  %v5769_v54 = vrot.slane %v4732_v30, 1  ;;  %v942_v50 = vrot.slane %v4522_v38, 1 }
  0x38   : > { %v4744_v26 = vsel %vm934_vm3, %v938_v22, %v940_v8  ;;  %v4761_v32 = vsel %vm934_vm3, %v4691_v39, %v5769_v54  ;;  %v944_v22 = vrot.slane %v4554_v52, 1  ;;  %v952_v54 = vrot.slane %v4647_v2, 1 }
  0x3b   : > { %3965 = vmatmul.mubr.msk.bf16.gmra.mxu0 %vm461_vm2, %v396_v63  ;;  %v4771_v63 = vsel %vm934_vm3, %v940_v8, %v942_v50  ;;  %v4787_v8 = vsel %vm934_vm3, %v944_v22, %v946_v6 }
  0x3c   : > { %4024 = vmatprep.mubr.msk.bf16.mxu0 %vm461_vm2, %v937_v40  ;;  %3987 = vmatmul.mubr.msk.bf16.vlgmr.msra.gmra.mxu1 %vm461_vm2, %v4450_v5  ;;  %v4774_v40 = vsel %vm934_vm3, %v942_v50, %v944_v22  ;;  %v950_v50 = vrot.slane %v4626_v44, 1 }
  0x3d   : > { %4061 = vmatpush3.bf16.msra.mxu1 %v1259_v4  ;;  %3990 = vmatprep.mubr.msk.bf16.mxu1 %vm461_vm2, %v4466_v15  ;;  %v948_v4 = vrot.slane %v4595_v12, 1 }
  0x3e   : > { %4296 = vmatprep.subr.msk.bf16.mxu1 %vm516_vm0, %v4727_v9 }
  0x3f   : > { %v4803_v22 = vsel %vm934_vm3, %v948_v4, %v950_v50 }
  0x43   : > { %4025 = vmatmul.mubr.msk.bf16.vlgmr.msra.gmra.mxu0 %vm461_vm2, %v4739_v43 }
  0x44   : > { %4099 = vmatpush3.bf16.msra.mxu0 %v1617_v62  ;;  %4028 = vmatprep.mubr.msk.bf16.mxu0 %vm461_vm2, %v4744_v26  ;;  %v4790_v62 = vsel %vm934_vm3, %v946_v6, %v948_v4  ;;  %v4806_v6 = vsel %vm934_vm3, %v950_v50, %v952_v54 }
  0x45   : > { %3991 = vmatmul.mubr.msk.bf16.gmra.mxu1 %vm461_vm2, %v4492_v27  ;;  %4297 = vmatprep.subr.msk.bf16.mxu0 %vm516_vm0, %v4749_v56 }
  0x46   : > { %3994 = vmatprep.mubr.msk.bf16.mxu1 %vm461_vm2, %v4522_v38 }
  0x4b   : > { %4029 = vmatmul.mubr.msk.bf16.gmra.mxu0 %vm461_vm2, %v4771_v63 }
  0x4c   : > { %4032 = vmatprep.mubr.msk.bf16.mxu0 %vm461_vm2, %v4774_v40 }
  0x4d   : > { %3995 = vmatmul.mubr.msk.bf16.gmra.mxu1 %vm461_vm2, %v4554_v52 }
  0x4e   : > { %3998 = vmatprep.mubr.msk.bf16.mxu1 %vm461_vm2, %v4577_v61  ;;  %v954_v61 = vrot.slane %v4457_v10, 1 }
  0x50   : > { %v4819_v4 = vsel %vm934_vm3, %v952_v54, %v954_v61 }
  0x53   : > { %4033 = vmatmul.mubr.msk.bf16.gmra.mxu0 %vm461_vm2, %v4787_v8 }
  0x54   : > { %4036 = vmatprep.mubr.msk.bf16.mxu0 %vm461_vm2, %v4790_v62 }
  0x55   : > { %3999 = vmatmul.mubr.msk.bf16.gmra.mxu1 %vm461_vm2, %v4595_v12  ;;  %v956_v12 = vrot.slane %v4460_v11, 1 }
  0x56   : > { %4002 = vmatprep.mubr.msk.bf16.mxu1 %vm461_vm2, %v4626_v44  ;;  %v958_v44 = vrot.slane %v4487_v24, 1 }
  0x57   : > { %v4822_v50 = vsel %vm934_vm3, %v954_v61, %v956_v12 }
  0x58   : > { %v4835_v54 = vsel %vm934_vm3, %v956_v12, %v958_v44 }
  0x5b   : > { %4037 = vmatmul.mubr.msk.bf16.gmra.mxu0 %vm461_vm2, %v4803_v22 }
  0x5c   : > { %4040 = vmatprep.mubr.msk.bf16.mxu0 %vm461_vm2, %v4806_v6 }
  0x5d   : > { %4003 = vmatmul.mubr.msk.bf16.gmra.mxu1 %vm461_vm2, %v4647_v2  ;;  %v960_v2 = vrot.slane %v4516_v36, 1 }
  0x5e   : > { %4006 = vmatprep.mubr.msk.bf16.mxu1 %vm461_vm2, %v4457_v10  ;;  %v962_v10 = vrot.slane %v4545_v48, 1 }
  0x5f   : > { %v4838_v61 = vsel %vm934_vm3, %v958_v44, %v960_v2 }
  0x60   : > { %v4851_v12 = vsel %vm934_vm3, %v960_v2, %v962_v10 }
  0x63   : > { %4041 = vmatmul.mubr.msk.bf16.gmra.mxu0 %vm461_vm2, %v4819_v4 }
  0x64   : > { %4044 = vmatprep.mubr.msk.bf16.mxu0 %vm461_vm2, %v4822_v50 }
  0x65   : > { %4007 = vmatmul.mubr.msk.bf16.gmra.mxu1 %vm461_vm2, %v4460_v11  ;;  %v964_v11 = vrot.slane %v4574_v60, 1 }
  0x66   : > { %4010 = vmatprep.mubr.msk.bf16.mxu1 %vm461_vm2, %v4487_v24  ;;  %v966_v24 = vrot.slane %v4585_v1, 1 }
  0x67   : > { %v4854_v44 = vsel %vm934_vm3, %v962_v10, %v964_v11 }
  0x68   : > { %v4866_v2 = vsel %vm934_vm3, %v964_v11, %v966_v24  ;;  %v4870_v10 = vsel %vm934_vm3, %v966_v24, %v4691_v39  ;;  %v1484_v11 = vrot.slane %v4528_v42, 1  ;;  %v1485_v24 = vrot.slane %v4513_v35, 2 }
  0x69   : > { %v5817_v39 = vor.u32 %v4686_v13, %v4697_v55  ;;  %v1493_v13 = vrot.slane %v4571_v59, 2  ;;  %v2159_v55 = vsel %vm516_vm0, %v4749_v56, 0 }
  0x6b   : > { %4045 = vmatmul.mubr.msk.bf16.gmra.mxu0 %vm461_vm2, %v4835_v54 }
  0x6c   : > { %4048 = vmatprep.mubr.msk.bf16.mxu0 %vm461_vm2, %v4838_v61 }
  0x6d   : > { %4011 = vmatmul.mubr.msk.bf16.gmra.mxu1 %vm461_vm2, %v4516_v36  ;;  %v1481_v36 = vrot.slane %v4484_v23, 2 }
  0x6e   : > { %4014 = vmatprep.mubr.msk.bf16.mxu1 %vm461_vm2, %v4545_v48  ;;  %v1480_v48 = vrot.slane %v4495_v28, 1  ;;  %v1927_v28 = vsel %vm516_vm0, %v4727_v9, 0 }
  0x73   : > { %4049 = vmatmul.mubr.msk.bf16.gmra.mxu0 %vm461_vm2, %v4851_v12 }
  0x74   : > { %4052 = vmatprep.mubr.msk.bf16.mxu0 %vm461_vm2, %v4854_v44 }
  0x75   : > { %4015 = vmatmul.mubr.msk.bf16.gmra.mxu1 %vm461_vm2, %v4574_v60 }
  0x76   : > { %4018 = vmatprep.mubr.msk.bf16.mxu1 %vm461_vm2, %v4585_v1  ;;  %v1482_v1 = vor.u32 %v1481_v36, %v1480_v48  ;;  %v1486_v36 = vor.u32 %v1485_v24, %v1484_v11  ;;  %v4896_v48 = vld [vmem:[%s5753_s1 + $0xe] sm:$0x3]  ;;  %v2384_v11 = vrot.slane %v4568_v58, 2 }
  0x78   : > { %v1483_v23 = vsel %vm1476_vm4, %v5817_v39, %v1482_v1  ;;  %v1487_v9 = vsel %vm1476_vm4, %v1482_v1, %v1486_v36  ;;  %v1500_v39 = vrot.slane %v4656_v29, 1 }
  0x7b   : > { %4053 = vmatmul.mubr.msk.bf16.gmra.mxu0 %vm461_vm2, %v4866_v2 }
  0x7c   : > { %4056 = vmatprep.mubr.msk.bf16.mxu0 %vm461_vm2, %v4870_v10 }
  0x7d   : > { %4019 = vmatmul.mubr.msk.bf16.gmra.mxu1 %vm461_vm2, %v4616_v33 }
  0x7e   : > { %4062 = vmatprep.mubr.msk.bf16.mxu1 %vm461_vm2, %v4739_v43  ;;  %v1497_v43 = vrot.slane %v4604_v16, 2 }
  0x83   : > { %4057 = vmatmul.mubr.msk.bf16.gmra.mxu0 %vm461_vm2, %v4704_v45  ;;  %v1491_v45 = vsel %vm1476_vm4, %v1486_v36, %v4715_v25  ;;  %v1501_v36 = vrot.slane %v4631_v49, 2 }
  0x84   : > { %4100 = vmatprep.mubr.msk.bf16.mxu0 %vm461_vm2, %v1483_v23  ;;  %v1492_v23 = vrot.slane %v4601_v14, 1 }
  0x85   : > { %4063 = vmatmul.mubr.msk.bf16.vlgmr.msra.gmra.mxu1 %vm461_vm2, %v4744_v26  ;;  %v4916_v26 = vld [vmem:[%s5753_s1 + $0x10] sm:$0x3] }
  0x86   : > { %4137 = vmatpush3.bf16.msra.mxu1 %v1927_v28  ;;  %4066 = vmatprep.mubr.msk.bf16.mxu1 %vm461_vm2, %v4771_v63  ;;  %v1496_v28 = vrot.slane %v4623_v41, 1  ;;  %v1494_v1 = vor.u32 %v1493_v13, %v1492_v23  ;;  %v2385_v63 = vrot.slane %v4542_v47, 3  ;;  %v1505_v23 = vrot.slane %v4652_v7, 2 }
  0x87   : > { %4298 = vmatprep.subr.msk.bf16.mxu1 %vm516_vm0, %v4896_v48  ;;  %v1502_v47 = vor.u32 %v1501_v36, %v1500_v39  ;;  %v1521_v39 = vrot.slane %v4500_v31, 2 }
  0x88   : > { %v1498_v56 = vor.u32 %v1497_v43, %v1496_v28  ;;  %v1495_v24 = vsel %vm1476_vm4, %v4715_v25, %v1494_v1  ;;  %v4935_v13 = vor.u32 %v2385_v63, %v2384_v11  ;;  %v1512_v28 = vrot.slane %v4473_v18, 1 }
  0x89   : > { %v1513_v43 = vrot.slane %v4470_v17, 2  ;;  %v1517_v63 = vrot.slane %v4476_v19, 2 }
  0x8a   : > { %v1503_v25 = vsel %vm1476_vm4, %v1498_v56, %v1502_v47 }
  0x8b   : > { %4101 = vmatmul.mubr.msk.bf16.vlgmr.msra.gmra.mxu0 %vm461_vm2, %v1487_v9  ;;  %v1504_v9 = vrot.slane %v4660_v34, 1 }
  0x8c   : > { %4175 = vmatpush3.bf16.msra.mxu0 %v2159_v55  ;;  %4104 = vmatprep.mubr.msk.bf16.mxu0 %vm461_vm2, %v1491_v45  ;;  %v1509_v55 = vrot.slane %v4667_v53, 2 }
  0x8d   : > { %4067 = vmatmul.mubr.msk.bf16.gmra.mxu1 %vm461_vm2, %v4774_v40  ;;  %4299 = vmatprep.subr.msk.bf16.mxu0 %vm516_vm0, %v4916_v26  ;;  %v1499_v40 = vsel %vm1476_vm4, %v1494_v1, %v1498_v56  ;;  %v1506_v58 = vor.u32 %v1505_v23, %v1504_v9  ;;  %v1516_v56 = vrot.slane %v4479_v20, 1  ;;  %v1525_v9 = vrot.slane %v4539_v46, 2 }
  0x8e   : > { %4070 = vmatprep.mubr.msk.bf16.mxu1 %vm461_vm2, %v4787_v8  ;;  %v1508_v8 = vrot.slane %v4681_v3, 1  ;;  %v2381_v46 = vrot.slane %v4513_v35, 3 }
  0x8f   : > { %v1507_v45 = vsel %vm1476_vm4, %v1502_v47, %v1506_v58  ;;  %v1528_v47 = vrot.slane %v4582_v0, 1 }
  0x93   : > { %4105 = vmatmul.mubr.msk.bf16.gmra.mxu0 %vm461_vm2, %v1495_v24  ;;  %v1520_v24 = vrot.slane %v4519_v37, 1 }
  0x94   : > { %4108 = vmatprep.mubr.msk.bf16.mxu0 %vm461_vm2, %v1499_v40  ;;  %v1524_v40 = vrot.slane %v4551_v51, 1 }
  0x95   : > { %4071 = vmatmul.mubr.msk.bf16.gmra.mxu1 %vm461_vm2, %v4790_v62  ;;  %v1510_v62 = vor.u32 %v1509_v55, %v1508_v8  ;;  %v1532_v8 = vrot.slane %v4607_v21, 1  ;;  %v5818_v55 = vld [vmem:[#allocation15_spill] sm:$0xff] }
  0x96   : > { %4074 = vmatprep.mubr.msk.bf16.mxu1 %vm461_vm2, %v4803_v22  ;;  %v1514_v22 = vor.u32 %v1513_v43, %v1512_v28  ;;  %v5819_v43 = vld [vmem:[#allocation19_spill] sm:$0xff] }
  0x97   : > { %v1511_v1 = vsel %vm1476_vm4, %v1506_v58, %v1510_v62  ;;  %v1529_v58 = vrot.slane %v4565_v57, 2 }
  0x98   : > { %v1515_v11 = vsel %vm1476_vm4, %v1510_v62, %v1514_v22  ;;  %v1536_v62 = vrot.slane %v5819_v43, 1 }
  0x9b   : > { %4109 = vmatmul.mubr.msk.bf16.gmra.mxu0 %vm461_vm2, %v1503_v25 }
  0x9c   : > { %4112 = vmatprep.mubr.msk.bf16.mxu0 %vm461_vm2, %v1507_v45  ;;  %v1533_v45 = vrot.slane %v5818_v55, 2  ;;  %v247_v55 = vld [vmem:[%s4444_s25 + $0x9c] sm:$0xf] }
  0x9d   : > { %4075 = vmatmul.mubr.msk.bf16.gmra.mxu1 %vm461_vm2, %v4806_v6  ;;  %v1518_v6 = vor.u32 %v1517_v63, %v1516_v56  ;;  %v5785_v56 = vshrl.u32 %v4732_v30, 16  ;;  %v5784_v63 = vshll.u32 %v4732_v30, 16 }
  0x9e   : > { %4078 = vmatprep.mubr.msk.bf16.mxu1 %vm461_vm2, %v4819_v4  ;;  %v1522_v4 = vor.u32 %v1521_v39, %v1520_v24  ;;  %v5821_v39 = vld [vmem:[#allocation22_spill] sm:$0xff] }
  0x9f   : > { %v1519_v36 = vsel %vm1476_vm4, %v1514_v22, %v1518_v6  ;;  %v5820_v22 = vld [vmem:[#allocation17_spill] sm:$0xff] }
  0xa0   : > { %v1523_v23 = vsel %vm1476_vm4, %v1518_v6, %v1522_v4  ;;  %v1540_v6 = vrot.slane %v5821_v39, 1  ;;  %v5841_v39 = vld [vmem:[#allocation9_spill] sm:$0xff] }
  0xa3   : > { %4113 = vmatmul.mubr.msk.bf16.gmra.mxu0 %vm461_vm2, %v1511_v1  ;;  %v1537_v1 = vrot.slane %v5820_v22, 2 }
  0xa4   : > { %4116 = vmatprep.mubr.msk.bf16.mxu0 %vm461_vm2, %v1515_v11  ;;  %v4994_v11 = vld [vmem:[%s4444_s25 + $0x98] sm:$0xf] }
  0xa5   : > { %4079 = vmatmul.mubr.msk.bf16.gmra.mxu1 %vm461_vm2, %v4822_v50  ;;  %v1526_v50 = vor.u32 %v1525_v9, %v1524_v40  ;;  %v1550_v9 = vrot.slane %v5784_v63, 2  ;;  %v5839_v63 = vld [vmem:[#allocation7_spill] sm:$0xff] }
  0xa6   : > { %4082 = vmatprep.mubr.msk.bf16.mxu1 %vm461_vm2, %v4835_v54  ;;  %v1530_v54 = vor.u32 %v1529_v58, %v1528_v47 }
  0xa7   : > { %v1527_v25 = vsel %vm1476_vm4, %v1522_v4, %v1526_v50  ;;  %v5822_v4 = vld [vmem:[#allocation20_spill] sm:$0xff] }
  0xa8   : > { %v1531_v28 = vsel %vm1476_vm4, %v1526_v50, %v1530_v54 }
  0xab   : > { %4117 = vmatmul.mubr.msk.bf16.gmra.mxu0 %vm461_vm2, %v1519_v36  ;;  %v1541_v36 = vrot.slane %v5822_v4, 2 }
  0xac   : > { %4120 = vmatprep.mubr.msk.bf16.mxu0 %vm461_vm2, %v1523_v23  ;;  %v5006_v23 = vcombine.low %v4994_v11, %v4994_v11 }
  0xad   : > { %4083 = vmatmul.mubr.msk.bf16.gmra.mxu1 %vm461_vm2, %v4838_v61  ;;  %v1534_v61 = vor.u32 %v1533_v45, %v1532_v8  ;;  %v1836_v8 = vrot.slane %v4466_v15, 2  ;;  %v1838_v15 = vrot.slane %v4492_v27, 2  ;;  %v1842_v27 = vrot.slane %v4554_v52, 2 }
  0xae   : > { %4086 = vmatprep.mubr.msk.bf16.mxu1 %vm461_vm2, %v4851_v12  ;;  %v1538_v12 = vor.u32 %v1537_v1, %v1536_v62  ;;  %v1554_v47 = vshrl.u32 %v5006_v23, 16  ;;  %v1557_v58 = vshll.u32 %v5006_v23, 16  ;;  %v1870_v35 = vrot.slane %v5006_v23, 2 }
  0xaf   : > { %v1535_v24 = vsel %vm1476_vm4, %v1530_v54, %v1534_v61  ;;  %v1250_v54 = vrot.slane %v5006_v23, 1 }
  0xb0   : > { %v1539_v40 = vsel %vm1476_vm4, %v1534_v61, %v1538_v12  ;;  %v1559_v62 = vrot.slane %v1557_v58, 2  ;;  %v5823_v61 = vrot.slane %v4732_v30, 1 }
  0xb3   : > { %4121 = vmatmul.mubr.msk.bf16.gmra.mxu0 %vm461_vm2, %v1527_v25  ;;  %v1835_v25 = vrot.slane %v4450_v5, 2 }
  0xb4   : > { %4124 = vmatprep.mubr.msk.bf16.mxu0 %vm461_vm2, %v1531_v28  ;;  %v1556_v28 = vrot.slane %v1554_v47, 1  ;;  %v5825_v47 = vld [vmem:[#allocation14_spill] sm:$0xff] }
  0xb5   : > { %4087 = vmatmul.mubr.msk.bf16.gmra.mxu1 %vm461_vm2, %v4854_v44  ;;  %v1547_v44 = vrot.slane %v5785_v56, 1  ;;  %v1846_v58 = vrot.slane %v5825_v47, 2 }
  0xb6   : > { %4090 = vmatprep.mubr.msk.bf16.mxu1 %vm461_vm2, %v4866_v2  ;;  %v1542_v2 = vor.u32 %v1541_v36, %v1540_v6  ;;  %v1560_v5 = vor.u32 %v1559_v62, %v1556_v28  ;;  %v1839_v6 = vsel %vm1834_vm5, %v1836_v8, %v1838_v15  ;;  %v2517_v36 = vsel %vm516_vm0, %v4896_v48, 0  ;;  %v5827_v62 = vld [vmem:[#allocation21_spill] sm:$0xff] }
  0xb7   : > { %v1551_v50 = vor.u32 %v1550_v9, %v1547_v44  ;;  %v2827_v9 = vsel %vm516_vm0, %v4916_v26, 0 }
  0xb8   : > { %v1543_v45 = vsel %vm1476_vm4, %v1538_v12, %v1542_v2  ;;  %v1840_v12 = vrot.slane %v4522_v38, 2  ;;  %v5824_v38 = vld [vmem:[#allocation11_spill] sm:$0xff] }
  0xb9   : > { %v1552_v1 = vsel %vm1476_vm4, %v1542_v2, %v1551_v50  ;;  %v1844_v44 = vrot.slane %v5824_v38, 2 }
  0xba   : > { %v1843_v2 = vsel %vm1834_vm5, %v1840_v12, %v1842_v27 }
  0xbb   : > { %4125 = vmatmul.mubr.msk.bf16.gmra.mxu0 %vm461_vm2, %v1535_v24  ;;  %v1561_v24 = vsel %vm1476_vm4, %v1551_v50, %v1560_v5  ;;  %v1845_v48 = vsel %vm1834_vm5, %v1842_v27, %v1844_v44  ;;  %v5826_v50 = vld [vmem:[#allocation18_spill] sm:$0xff] }
  0xbc   : > { %4128 = vmatprep.mubr.msk.bf16.mxu0 %vm461_vm2, %v1539_v40  ;;  %v1841_v40 = vsel %vm1834_vm5, %v1838_v15, %v1840_v12 }
  0xbd   : > { %4091 = vmatmul.mubr.msk.bf16.gmra.mxu1 %vm461_vm2, %v4870_v10  ;;  %v1251_v10 = vsel %vm934_vm3, %v5823_v61, %v1250_v54  ;;  %v1848_v54 = vrot.slane %v5826_v50, 2 }
  0xbe   : > { %4094 = vmatprep.mubr.msk.bf16.mxu1 %vm461_vm2, %v4761_v32  ;;  %v1837_v32 = vsel %vm1834_vm5, %v1835_v25, %v1836_v8  ;;  %v1847_v25 = vsel %vm1834_vm5, %v1844_v44, %v1846_v58  ;;  %v5833_v44 = vld [vmem:[#allocation3_spill] sm:$0xff] }
  0xbf   : > { %v1849_v8 = vsel %vm1834_vm5, %v1846_v58, %v1848_v54  ;;  %v5835_v58 = vld [vmem:[#allocation5_spill] sm:$0xff] }
  0xc0   : > { %v1856_v50 = vrot.slane %v5835_v58, 2 }
  0xc3   : > { %4129 = vmatmul.mubr.msk.bf16.gmra.mxu0 %vm461_vm2, %v1543_v45 }
  0xc4   : > { %4132 = vmatprep.mubr.msk.bf16.mxu0 %vm461_vm2, %v1552_v1  ;;  %v1850_v1 = vrot.slane %v5827_v62, 2 }
  0xc5   : > { %4095 = vmatmul.mubr.msk.bf16.gmra.mxu1 %vm461_vm2, %v1251_v10 }
  0xc6   : > { %4138 = vmatprep.mubr.msk.bf16.mxu1 %vm461_vm2, %v1837_v32  ;;  %v5829_v32 = vld [vmem:[#allocation2_spill] sm:$0xff] }
  0xc7   : > { %v1852_v5 = vrot.slane %v5829_v32, 2 }
  0xcb   : > { %4133 = vmatmul.mubr.msk.bf16.gmra.mxu0 %vm461_vm2, %v1561_v24  ;;  %v1851_v24 = vsel %vm1834_vm5, %v1848_v54, %v1850_v1 }
  0xcc   : > { %4176 = vmatprep.mubr.msk.bf16.mxu0 %vm461_vm2, %v1839_v6 }
  0xcd   : > { %4139 = vmatmul.mubr.msk.bf16.vlgmr.msra.gmra.mxu1 %vm461_vm2, %v1839_v6 }
  0xce   : > { %4213 = vmatpush3.bf16.msra.mxu1 %v2517_v36  ;;  %4142 = vmatprep.mubr.msk.bf16.mxu1 %vm461_vm2, %v1841_v40 }
  0xd3   : > { %4177 = vmatmul.mubr.msk.bf16.vlgmr.msra.gmra.mxu0 %vm461_vm2, %v1841_v40  ;;  %v1853_v40 = vsel %vm1834_vm5, %v1850_v1, %v1852_v5 }
  0xd4   : > { %4251 = vmatpush3.bf16.msra.mxu0 %v2827_v9  ;;  %4180 = vmatprep.mubr.msk.bf16.mxu0 %vm461_vm2, %v1843_v2  ;;  %v1854_v9 = vrot.slane %v5833_v44, 2 }
  0xd5   : > { %4143 = vmatmul.mubr.msk.bf16.gmra.mxu1 %vm461_vm2, %v1843_v2 }
  0xd6   : > { %4146 = vmatprep.mubr.msk.bf16.mxu1 %vm461_vm2, %v1845_v48 }
  0xdb   : > { %v5053_v26 = vpop.f32.mrf.mxu0  ;;  %4181 = vmatmul.mubr.msk.bf16.gmra.mxu0 %vm461_vm2, %v1845_v48 }
  0xdc   : > { %4184 = vmatprep.mubr.msk.bf16.mxu0 %vm461_vm2, %v1847_v25  ;;  %v5058_v45 = vpop.f32.mrf.mxu1 }
  0xdd   : > { %4147 = vmatmul.mubr.msk.bf16.gmra.mxu1 %vm461_vm2, %v1847_v25  ;;  %v5061_v28 = vpop.f32.mrf.mxu0 }
  0xde   : > { %4150 = vmatprep.mubr.msk.bf16.mxu1 %vm461_vm2, %v1849_v8  ;;  %v5065_v61 = vpop.f32.mrf.mxu1 }
  0xdf   : > { %5828 = vst [vmem:[#allocation11_spill] sm:$0xff] %v5065_v61  ;;  %v5067_v10 = vpop.f32.mrf.mxu0  ;;  %v5850_v61 = vld [vmem:[#allocation4_spill] sm:$0xff] }
  0xe0   : > { %v5070_v15 = vpop.f32.mrf.mxu1 }
  0xe1   : > { %5830 = vst [vmem:[#allocation14_spill] sm:$0xff] %v5070_v15  ;;  %v5072_v12 = vpop.f32.mrf.mxu0 }
  0xe2   : > { %v5075_v6 = vpop.f32.mrf.mxu1 }
  0xe3   : > { %5831 = vst [vmem:[#allocation18_spill] sm:$0xff] %v5075_v6  ;;  %v5077_v36 = vpop.f32.mrf.mxu0  ;;  %4185 = vmatmul.mubr.msk.bf16.gmra.mxu0 %vm461_vm2, %v1849_v8  ;;  %v1855_v8 = vsel %vm1834_vm5, %v1852_v5, %v1854_v9  ;;  %v1858_v5 = vrot.slane %v5839_v63, 2  ;;  %v5849_v6 = vld [vmem:[#allocation6_spill] sm:$0xff] }
  0xe4   : > { %4188 = vmatprep.mubr.msk.bf16.mxu0 %vm461_vm2, %v1851_v24  ;;  %v5082_v27 = vpop.f32.mrf.mxu1  ;;  %v2377_v15 = vrot.slane %v5849_v6, 2 }
  0xe5   : > { %5832 = vst [vmem:[#allocation21_spill] sm:$0xff] %v5082_v27  ;;  %4151 = vmatmul.mubr.msk.bf16.gmra.mxu1 %vm461_vm2, %v1851_v24  ;;  %v5085_v38 = vpop.f32.mrf.mxu0  ;;  %v1857_v24 = vsel %vm1834_vm5, %v1854_v9, %v1856_v50  ;;  %v1859_v43 = vsel %vm1834_vm5, %v1856_v50, %v1858_v5  ;;  %v1862_v50 = vrot.slane %v4574_v60, 2 }
  0xe6   : > { %4154 = vmatprep.mubr.msk.bf16.mxu1 %vm461_vm2, %v1853_v40  ;;  %v5089_v2 = vpop.f32.mrf.mxu1 }
  0xe7   : > { %5834 = vst [vmem:[#allocation2_spill] sm:$0xff] %v5089_v2  ;;  %v5091_v48 = vpop.f32.mrf.mxu0 }
  0xe8   : > { %v5094_v54 = vpop.f32.mrf.mxu1 }
  0xe9   : > { %5836 = vst [vmem:[#allocation3_spill] sm:$0xff] %v5094_v54  ;;  %v5096_v25 = vpop.f32.mrf.mxu0 }
  0xea   : > { %v5099_v1 = vpop.f32.mrf.mxu1 }
  0xeb   : > { %5837 = vst [vmem:[#allocation5_spill] sm:$0xff] %v5099_v1  ;;  %v5101_v32 = vpop.f32.mrf.mxu0  ;;  %4189 = vmatmul.mubr.msk.bf16.gmra.mxu0 %vm461_vm2, %v1853_v40  ;;  %v1860_v40 = vrot.slane %v5841_v39, 2  ;;  %v5846_v1 = vld [vmem:[#allocation13_spill] sm:$0xff] }
  0xec   : > { %4192 = vmatprep.mubr.msk.bf16.mxu0 %vm461_vm2, %v1855_v8  ;;  %v5106_v44 = vpop.f32.mrf.mxu1 }
  0xed   : > { %5838 = vst [vmem:[#allocation24_spill] sm:$0xff] %v5106_v44  ;;  %4155 = vmatmul.mubr.msk.bf16.gmra.mxu1 %vm461_vm2, %v1855_v8  ;;  %v5109_v58 = vpop.f32.mrf.mxu0  ;;  %v1861_v63 = vsel %vm1834_vm5, %v1858_v5, %v1860_v40 }
  0xee   : > { %4158 = vmatprep.mubr.msk.bf16.mxu1 %vm461_vm2, %v1857_v24  ;;  %v5113_v56 = vpop.f32.mrf.mxu1 }
  0xef   : > { %5840 = vst [vmem:[#allocation7_spill] sm:$0xff] %v5113_v56  ;;  %v5115_v4 = vpop.f32.mrf.mxu0 }
  0xf0   : > { %v5118_v22 = vpop.f32.mrf.mxu1 }
  0xf1   : > { %5842 = vst [vmem:[#allocation9_spill] sm:$0xff] %v5118_v22  ;;  %v5120_v9 = vpop.f32.mrf.mxu0 }
  0xf2   : > { %v5123_v44 = vpop.f32.mrf.mxu1 }
  0xf3   : > { %5843 = vst [vmem:[#allocation25_spill] sm:$0xff] %v5123_v44  ;;  %v5125_v8 = vpop.f32.mrf.mxu0  ;;  %4193 = vmatmul.mubr.msk.bf16.gmra.mxu0 %vm461_vm2, %v1857_v24  ;;  %v1864_v24 = vrot.slane %v5846_v1, 2 }
  0xf4   : > { %4196 = vmatprep.mubr.msk.bf16.mxu0 %vm461_vm2, %v1859_v43  ;;  %v5130_v56 = vpop.f32.mrf.mxu1 }
  0xf5   : > { %5844 = vst [vmem:[#allocation26_spill] sm:$0xff] %v5130_v56  ;;  %4159 = vmatmul.mubr.msk.bf16.gmra.mxu1 %vm461_vm2, %v1859_v43  ;;  %v5133_v39 = vpop.f32.mrf.mxu0  ;;  %v1863_v56 = vsel %vm1834_vm5, %v1860_v40, %v1862_v50  ;;  %v1865_v60 = vsel %vm1834_vm5, %v1862_v50, %v1864_v24  ;;  %v1866_v40 = vrot.slane %v4616_v33, 2 }
  0xf6   : > { %4162 = vmatprep.mubr.msk.bf16.mxu1 %vm461_vm2, %v1861_v63  ;;  %v5137_v22 = vpop.f32.mrf.mxu1 }
  0xf7   : > { %5845 = vst [vmem:[#allocation27_spill] sm:$0xff] %v5137_v22  ;;  %v5139_v44 = vpop.f32.mrf.mxu0 }
  0xf8   : > { %v5142_v5 = vpop.f32.mrf.mxu1 }
  0xf9   : > { %5847 = vst [vmem:[#allocation13_spill] sm:$0xff] %v5142_v5  ;;  %v5144_v54 = vpop.f32.mrf.mxu0 }
  0xfa   : > { %v5147_v43 = vpop.f32.mrf.mxu1 }
  0xfb   : > { %5848 = vst [vmem:[#allocation28_spill] sm:$0xff] %v5147_v43  ;;  %v5149_v2 = vpop.f32.mrf.mxu0  ;;  %4197 = vmatmul.mubr.msk.bf16.gmra.mxu0 %vm461_vm2, %v1861_v63  ;;  %v1868_v43 = vrot.slane %v4732_v30, 2 }
  0xfc   : > { %4200 = vmatprep.mubr.msk.bf16.mxu0 %vm461_vm2, %v1863_v56  ;;  %v3988_v22 = vpop.f32.mrf.mxu1 }
  0xfd   : > { %4163 = vmatmul.mubr.msk.bf16.gmra.mxu1 %vm461_vm2, %v1863_v56  ;;  %v5155_v1 = vpop.f32.mrf.mxu0  ;;  %v779_v5 = vadd.f32 %v3988_v22, %v5053_v26  ;;  %v5168_v56 = vcombine.low %v4994_v11, %v247_v55  ;;  %v1867_v26 = vsel %vm1834_vm5, %v1864_v24, %v1866_v40  ;;  %v1869_v33 = vsel %vm1834_vm5, %v1866_v40, %v1868_v43  ;;  %v5193_v40 = vld [vmem:[%s4444_s25 + $0xa0] ss:$0 sps:$4 sm:$0xff]  }
  0xfe   : > { %4166 = vmatprep.mubr.msk.bf16.mxu1 %vm461_vm2, %v1865_v60  ;;  %v770_v21 = vpop.f32.mrf.mxu1  ;;  %v1871_v23 = vsel %vm1834_vm5, %v1868_v43, %v1870_v35  ;;  %v4350_v35 = vld [vmem:[%s4444_s25 + $0x18] sm:$0xff]  }
  0xff   : > { %v5162_v63 = vpop.f32.mrf.mxu0  ;;  %v771_v50 = vadd.f32 %v770_v21, %v5061_v28  ;;  %v2378_v21 = vrot.slane %v5850_v61, 3  ;;  %v2380_v28 = vrot.slane %v4528_v42, 2  ;;  %v2148_v24 = vrot.slane %v5168_v56, 2 }
 0x100   : > { %v3989_v27 = vpop.f32.mrf.mxu1 }
 0x101   : > { %v5165_v57 = vpop.f32.mrf.mxu0  ;;  %v782_v22 = vadd.f32 %v3989_v27, %v5067_v10 }
 0x102   : > { %v773_v0 = vpop.f32.mrf.mxu1 }
 0x103   : > { %v4026_v30 = vpop.f32.mrf.mxu0  ;;  %4201 = vmatmul.mubr.msk.bf16.gmra.mxu0 %vm461_vm2, %v1865_v60  ;;  %v774_v55 = vadd.f32 %v773_v0, %v5072_v12  ;;  %v2382_v12 = vor.u32 %v2381_v46, %v2380_v28 }
 0x104   : > { %v5179_v11 = vadd.f32 %v4026_v30, %v779_v5  ;;  %4204 = vmatprep.mubr.msk.bf16.mxu0 %vm461_vm2, %v1867_v26  ;;  %v2379_v30 = vor.u32 %v2378_v21, %v2377_v15  ;;  %v2389_v21 = vrot.slane %v4571_v59, 3 }
 0x105   : > { %v3992_v10 = vpop.f32.mrf.mxu1  ;;  %4167 = vmatmul.mubr.msk.bf16.gmra.mxu1 %vm461_vm2, %v1867_v26  ;;  %v1063_v27 = vpop.f32.mrf.mxu0 }
 0x106   : > { %5851 = vst [vmem:[#allocation6_spill] sm:$0xff] %v5179_v11  ;;  %v795_v6 = vadd.f32 %v3992_v10, %v5077_v36  ;;  %v5185_v61 = vadd.f32 %v1063_v27, %v771_v50  ;;  %4170 = vmatprep.mubr.msk.bf16.mxu1 %vm461_vm2, %v1869_v33  ;;  %v2149_v36 = vsel %vm1834_vm5, %v1868_v43, %v2148_v24 }
 0x107   : > { %v786_v42 = vpop.f32.mrf.mxu1  ;;  %v4027_v0 = vpop.f32.mrf.mxu0 }
 0x108   : > { %v787_v5 = vadd.f32 %v786_v42, %v5085_v38  ;;  %v5190_v60 = vadd.f32 %v4027_v0, %v782_v22  ;;  %v2383_v38 = vsel %vm2376_vm6, %v2379_v30, %v2382_v12  ;;  %v2388_v22 = vrot.slane %v4601_v14, 2 }
 0x109   : > { %v3993_v26 = vpop.f32.mrf.mxu1  ;;  %v1066_v11 = vpop.f32.mrf.mxu0  ;;  %v2736_v42 = vrot.slane %v4350_v35, 3 }
 0x10a   : > { %v798_v50 = vadd.f32 %v3993_v26, %v5091_v48  ;;  %v5197_v10 = vadd.f32 %v1066_v11, %v774_v55  ;;  %v2150_v48 = vrot.slane %v5193_v40, 2  ;;  %v4349_v11 = vld [vmem:[%s4444_s25 + $0x10] sm:$0xff]  }
 0x10b   : > { %v789_v46 = vpop.f32.mrf.mxu1  ;;  %v4030_v15 = vpop.f32.mrf.mxu0  ;;  %4205 = vmatmul.mubr.msk.bf16.gmra.mxu0 %vm461_vm2, %v1869_v33  ;;  %v2735_v33 = vrot.slane %v4349_v11, 3 }
 0x10c   : > { %v790_v28 = vadd.f32 %v789_v46, %v5096_v25  ;;  %v5205_v27 = vadd.f32 %v4030_v15, %v795_v6  ;;  %4208 = vmatprep.mubr.msk.bf16.mxu0 %vm461_vm2, %v2149_v36  ;;  %v2390_v6 = vor.u32 %v2389_v21, %v2388_v22  ;;  %v2151_v36 = vsel %vm1834_vm5, %v2148_v24, %v2150_v48 }
 0x10d   : > { %v3996_v43 = vpop.f32.mrf.mxu1  ;;  %4171 = vmatmul.mubr.msk.bf16.gmra.mxu1 %vm461_vm2, %v1871_v23  ;;  %v1079_v55 = vpop.f32.mrf.mxu0  ;;  %v2737_v15 = vsel %vm2734_vm7, %v2735_v33, %v2736_v42  ;;  %v2396_v21 = vrot.slane %v4656_v29, 2  ;;  %v2740_v33 = vrot.slane %v4554_v52, 3 }
 0x10e   : > { %v811_v14 = vadd.f32 %v3996_v43, %v5101_v32  ;;  %v5213_v0 = vadd.f32 %v1079_v55, %v787_v5  ;;  %4214 = vmatprep.mubr.msk.bf16.mxu1 %vm461_vm2, %v2383_v38  ;;  %v2392_v32 = vrot.slane %v4623_v41, 2  ;;  %v2393_v5 = vrot.slane %v4604_v16, 3 }
 0x10f   : > { %v802_v59 = vpop.f32.mrf.mxu1  ;;  %v4031_v25 = vpop.f32.mrf.mxu0  ;;  %v2391_v24 = vsel %vm2376_vm6, %v4935_v13, %v2390_v6  ;;  %v2397_v41 = vrot.slane %v4631_v49, 3 }
 0x110   : > { %v803_v30 = vadd.f32 %v802_v59, %v5109_v58  ;;  %v5217_v26 = vadd.f32 %v4031_v25, %v798_v50  ;;  %v2387_v58 = vsel %vm2376_vm6, %v2382_v12, %v4935_v13  ;;  %v2394_v11 = vor.u32 %v2393_v5, %v2392_v32 }
 0x111   : > { %v3997_v23 = vpop.f32.mrf.mxu1  ;;  %v1082_v46 = vpop.f32.mrf.mxu0  ;;  %v2398_v35 = vor.u32 %v2397_v41, %v2396_v21  ;;  %v2401_v32 = vrot.slane %v4652_v7, 3 }
 0x112   : > { %v814_v38 = vadd.f32 %v3997_v23, %v5115_v4  ;;  %v5224_v43 = vadd.f32 %v1082_v46, %v790_v28  ;;  %v4351_v4 = vld [vmem:[%s4444_s25 + $0x20] sm:$0xff]   ;;  %v2395_v52 = vsel %vm2376_vm6, %v2390_v6, %v2394_v11  ;;  %v2405_v6 = vrot.slane %v4667_v53, 3 }
 0x113   : > { %v805_v50 = vpop.f32.mrf.mxu1  ;;  %v4034_v22 = vpop.f32.mrf.mxu0  ;;  %4209 = vmatmul.mubr.msk.bf16.gmra.mxu0 %vm461_vm2, %v2151_v36  ;;  %v2738_v28 = vrot.slane %v4351_v4, 3 }
 0x114   : > { %v806_v16 = vadd.f32 %v805_v50, %v5120_v9  ;;  %v5234_v48 = vadd.f32 %v4034_v22, %v811_v14  ;;  %4252 = vmatprep.mubr.msk.bf16.mxu0 %vm461_vm2, %v2737_v15  ;;  %v2400_v15 = vrot.slane %v4660_v34, 2 }
 0x115   : > { %v4000_v12 = vpop.f32.mrf.mxu1  ;;  %4215 = vmatmul.mubr.msk.bf16.vlgmr.msra.gmra.mxu1 %vm461_vm2, %v2387_v58  ;;  %v1095_v55 = vpop.f32.mrf.mxu0  ;;  %v2739_v25 = vsel %vm2734_vm7, %v2736_v42, %v2738_v28  ;;  %v2399_v42 = vsel %vm2376_vm6, %v2394_v11, %v2398_v35 }
 0x116   : > { %v827_v13 = vadd.f32 %v4000_v12, %v5125_v8  ;;  %v5241_v29 = vadd.f32 %v1095_v55, %v803_v30  ;;  %4218 = vmatprep.mubr.msk.bf16.mxu1 %vm461_vm2, %v2391_v24  ;;  %v2741_v8 = vsel %vm2734_vm7, %v2738_v28, %v2740_v33  ;;  %v2744_v24 = vrot.slane %v5825_v47, 3 }
 0x117   : > { %v818_v49 = vpop.f32.mrf.mxu1  ;;  %v4035_v9 = vpop.f32.mrf.mxu0  ;;  %v2402_v53 = vor.u32 %v2401_v32, %v2400_v15  ;;  %v2748_v15 = vrot.slane %v5827_v62, 3 }
 0x118   : > { %v819_v14 = vadd.f32 %v818_v49, %v5133_v39  ;;  %v5245_v59 = vadd.f32 %v4035_v9, %v814_v38  ;;  %v2404_v38 = vrot.slane %v4681_v3, 2 }
 0x119   : > { %v4001_v36 = vpop.f32.mrf.mxu1  ;;  %v1098_v23 = vpop.f32.mrf.mxu0 }
 0x11a   : > { %v830_v30 = vadd.f32 %v4001_v36, %v5139_v44  ;;  %v5251_v46 = vadd.f32 %v1098_v23, %v806_v16  ;;  %v4352_v44 = vld [vmem:[%s4444_s25 + $0x30] sm:$0xff]   ;;  %v2406_v16 = vor.u32 %v2405_v6, %v2404_v38  ;;  %v2412_v36 = vrot.slane %v4479_v20, 2 }
 0x11b   : > { %v821_v39 = vpop.f32.mrf.mxu1  ;;  %v4038_v5 = vpop.f32.mrf.mxu0  ;;  %4253 = vmatmul.mubr.msk.bf16.vlgmr.msra.gmra.mxu0 %vm461_vm2, %v2739_v25  ;;  %v2742_v34 = vrot.slane %v4352_v44, 3  ;;  %v2413_v23 = vrot.slane %v4476_v19, 3 }
 0x11c   : > { %v822_v58 = vadd.f32 %v821_v39, %v5144_v54  ;;  %v5260_v50 = vadd.f32 %v4038_v5, %v827_v13  ;;  %4256 = vmatprep.mubr.msk.bf16.mxu0 %vm461_vm2, %v2741_v8  ;;  %v2409_v13 = vrot.slane %v4470_v17, 3  ;;  %v4353_v17 = vld [vmem:[%s4444_s25 + $0x40] sm:$0xff]  }
 0x11d   : > { %v4004_v22 = vpop.f32.mrf.mxu1  ;;  %4219 = vmatmul.mubr.msk.bf16.gmra.mxu1 %vm461_vm2, %v2395_v52  ;;  %v1111_v7 = vpop.f32.mrf.mxu0  ;;  %v2743_v12 = vsel %vm2734_vm7, %v2740_v33, %v2742_v34  ;;  %v2745_v47 = vsel %vm2734_vm7, %v2742_v34, %v2744_v24  ;;  %v2407_v33 = vsel %vm2376_vm6, %v2402_v53, %v2406_v16  ;;  %v2416_v34 = vrot.slane %v4519_v37, 2  ;;  %v4354_v37 = vld [vmem:[%s4444_s25 + $0x50] sm:$0xff]  }
 0x11e   : > { %v843_v21 = vadd.f32 %v4004_v22, %v5149_v2  ;;  %v5267_v41 = vadd.f32 %v1111_v7, %v819_v14  ;;  %4222 = vmatprep.mubr.msk.bf16.mxu1 %vm461_vm2, %v2399_v42  ;;  %v2408_v2 = vrot.slane %v4473_v18, 2  ;;  %v2403_v14 = vsel %vm2376_vm6, %v2398_v35, %v2402_v53 }
 0x11f   : > { %v834_v3 = vpop.f32.mrf.mxu1  ;;  %v4039_v54 = vpop.f32.mrf.mxu0  ;;  %v2417_v22 = vrot.slane %v4500_v31, 3  ;;  %v2420_v53 = vrot.slane %v4551_v51, 2 }
 0x120   : > { %v835_v4 = vadd.f32 %v834_v3, %v5155_v1  ;;  %v5271_v28 = vadd.f32 %v4039_v54, %v830_v30  ;;  %v2410_v30 = vor.u32 %v2409_v13, %v2408_v2  ;;  %v5852_v3 = vld [vmem:[#allocation8_spill] sm:$0xff]  ;;  %v5854_v2 = vld [vmem:[#allocation14_spill] sm:$0xff] }
 0x121   : > { %v4005_v55 = vpop.f32.mrf.mxu1  ;;  %v1114_v11 = vpop.f32.mrf.mxu0  ;;  %v2421_v54 = vrot.slane %v5852_v3, 3  ;;  %v2418_v51 = vor.u32 %v2417_v22, %v2416_v34  ;;  %v5859_v34 = vld [vmem:[#allocation16_spill] sm:$0xff] }
 0x122   : > { %v846_v49 = vadd.f32 %v4005_v55, %v5162_v63  ;;  %v5278_v9 = vadd.f32 %v1114_v11, %v822_v58  ;;  %v2746_v63 = vrot.slane %v4353_v17, 3  ;;  %v2411_v6 = vsel %vm2376_vm6, %v2406_v16, %v2410_v30  ;;  %v5853_v16 = vld [vmem:[#allocation11_spill] sm:$0xff]  ;;  %v4355_v11 = vld [vmem:[%s4444_s25 + $0x58] sm:$0xff]  }
 0x123   : > { %v837_v1 = vpop.f32.mrf.mxu1  ;;  %v4042_v25 = vpop.f32.mrf.mxu0  ;;  %4257 = vmatmul.mubr.msk.bf16.gmra.mxu0 %vm461_vm2, %v2743_v12  ;;  %v2750_v12 = vrot.slane %v4354_v37, 3  ;;  %v2428_v22 = vrot.slane %v5859_v34, 2  ;;  %v5867_v34 = vld [vmem:[#allocation22_spill] sm:$0xff] }
 0x124   : > { %v838_v18 = vadd.f32 %v837_v1, %v5165_v57  ;;  %v5286_v52 = vadd.f32 %v4042_v25, %v843_v21  ;;  %4260 = vmatprep.mubr.msk.bf16.mxu0 %vm461_vm2, %v2745_v47  ;;  %v2414_v57 = vor.u32 %v2413_v23, %v2412_v36  ;;  %v2747_v5 = vsel %vm2734_vm7, %v2744_v24, %v2746_v63 }
 0x125   : > { %v4008_v8 = vpop.f32.mrf.mxu1  ;;  %4223 = vmatmul.mubr.msk.bf16.gmra.mxu1 %vm461_vm2, %v2403_v14  ;;  %v1127_v35 = vpop.f32.mrf.mxu0  ;;  %v2749_v58 = vsel %vm2734_vm7, %v2746_v63, %v2748_v15  ;;  %v2752_v47 = vrot.slane %v4355_v11, 3  ;;  %v2422_v25 = vor.u32 %v2421_v54, %v2420_v53  ;;  %v4356_v54 = vld [vmem:[%s4444_s25 + $0x60] sm:$0xff]  }
 0x126   : > { %v5292_v32 = vadd.f32 %v1127_v35, %v835_v4  ;;  %4226 = vmatprep.mubr.msk.bf16.mxu1 %vm461_vm2, %v2407_v33  ;;  %v859_v62 = vadd.f32 %v4008_v8, %v5058_v45  ;;  %v2415_v24 = vsel %vm2376_vm6, %v2410_v30, %v2414_v57  ;;  %v5855_v33 = vld [vmem:[#allocation18_spill] sm:$0xff]  ;;  %v5856_v35 = vld [vmem:[#allocation12_spill] sm:$0xff] }
 0x127   : > { %v850_v19 = vpop.f32.mrf.mxu1  ;;  %v4043_v20 = vpop.f32.mrf.mxu0  ;;  %v2753_v8 = vsel %vm2734_vm7, %v2750_v12, %v2752_v47  ;;  %v2424_v30 = vrot.slane %v5856_v35, 2 }
 0x128   : > { %v5295_v39 = vadd.f32 %v4043_v20, %v846_v49  ;;  %v851_v4 = vadd.f32 %v850_v19, %v5853_v16  ;;  %v5857_v19 = vld [vmem:[#allocation10_spill] sm:$0xff]  ;;  %v2754_v16 = vrot.slane %v4356_v54, 3  ;;  %v4358_v54 = vld [vmem:[%s4444_s25 + $0x70] sm:$0xff]  }
 0x129   : > { %v4009_v42 = vpop.f32.mrf.mxu1  ;;  %v1130_v38 = vpop.f32.mrf.mxu0  ;;  %v2425_v20 = vrot.slane %v5857_v19, 3 }
 0x12a   : > { %v5301_v44 = vadd.f32 %v1130_v38, %v838_v18  ;;  %v862_v13 = vadd.f32 %v4009_v42, %v5854_v2  ;;  %v2751_v18 = vsel %vm2734_vm7, %v2748_v15, %v2750_v12  ;;  %v2423_v15 = vsel %vm2376_vm6, %v2418_v51, %v2422_v25  ;;  %v4357_v12 = vld [vmem:[%s4444_s25 + $0x68] sm:$0xff]  }
 0x12b   : > { %v853_v7 = vpop.f32.mrf.mxu1  ;;  %v4046_v21 = vpop.f32.mrf.mxu0  ;;  %4261 = vmatmul.mubr.msk.bf16.gmra.mxu0 %vm461_vm2, %v2747_v5  ;;  %v5858_v5 = vld [vmem:[#allocation21_spill] sm:$0xff]  ;;  %v2426_v37 = vor.u32 %v2425_v20, %v2424_v30  ;;  %v5864_v30 = vld [vmem:[#allocation24_spill] sm:$0xff] }
 0x12c   : > { %v5310_v45 = vadd.f32 %v4046_v21, %v859_v62  ;;  %4264 = vmatprep.mubr.msk.bf16.mxu0 %vm461_vm2, %v2749_v58  ;;  %v854_v36 = vadd.f32 %v853_v7, %v5855_v33  ;;  %v5860_v7 = vld [vmem:[#allocation15_spill] sm:$0xff] }
 0x12d   : > { %v4012_v55 = vpop.f32.mrf.mxu1  ;;  %4227 = vmatmul.mubr.msk.bf16.gmra.mxu1 %vm461_vm2, %v2411_v6  ;;  %v1143_v31 = vpop.f32.mrf.mxu0  ;;  %v2419_v6 = vsel %vm2376_vm6, %v2414_v57, %v2418_v51  ;;  %v2429_v21 = vrot.slane %v5860_v7, 3  ;;  %v2427_v35 = vsel %vm2376_vm6, %v2422_v25, %v2426_v37  ;;  %v5868_v25 = vld [vmem:[#allocation20_spill] sm:$0xff] }
 0x12e   : > { %v5317_v49 = vadd.f32 %v1143_v31, %v851_v4  ;;  %4230 = vmatprep.mubr.msk.bf16.mxu1 %vm461_vm2, %v2415_v24  ;;  %v875_v42 = vadd.f32 %v4012_v55, %v5858_v5  ;;  %v5861_v24 = vld [vmem:[#allocation2_spill] sm:$0xff]  ;;  %v2756_v55 = vrot.slane %v4357_v12, 3  ;;  %v5862_v31 = vld [vmem:[#allocation3_spill] sm:$0xff]  ;;  %v2437_v7 = vrot.slane %v5868_v25, 3  ;;  %v4359_v12 = vld [vmem:[%s4444_s25 + $0x78] sm:$0xff]  }
 0x12f   : > { %v866_v14 = vpop.f32.mrf.mxu1  ;;  %v4047_v1 = vpop.f32.mrf.mxu0  ;;  %v5865_v5 = vld [vmem:[#allocation19_spill] sm:$0xff]  ;;  %v5875_v25 = vld [vmem:[#allocation26_spill] sm:$0xff] }
 0x130   : > { %v5321_v23 = vadd.f32 %v4047_v1, %v862_v13  ;;  %v867_v53 = vadd.f32 %v866_v14, %v5861_v24  ;;  %v2430_v14 = vor.u32 %v2429_v21, %v2428_v22  ;;  %v5863_v1 = vld [vmem:[#allocation5_spill] sm:$0xff]  ;;  %v2436_v22 = vrot.slane %v5867_v34, 2  ;;  %v5869_v21 = vld [vmem:[#allocation7_spill] sm:$0xff] }
 0x131   : > { %v4013_v17 = vpop.f32.mrf.mxu1  ;;  %v1146_v63 = vpop.f32.mrf.mxu0 }
 0x132   : > { %v5328_v38 = vadd.f32 %v1146_v63, %v854_v36  ;;  %v878_v11 = vadd.f32 %v4013_v17, %v5862_v31  ;;  %v2757_v17 = vsel %vm2734_vm7, %v2754_v16, %v2756_v55  ;;  %v2760_v31 = vrot.slane %v4359_v12, 3  ;;  %v5876_v12 = vld [vmem:[#allocation27_spill] sm:$0xff] }
 0x133   : > { %v869_v58 = vpop.f32.mrf.mxu1  ;;  %v4050_v62 = vpop.f32.mrf.mxu0  ;;  %4265 = vmatmul.mubr.msk.bf16.gmra.mxu0 %vm461_vm2, %v2751_v18  ;;  %v2755_v18 = vsel %vm2734_vm7, %v2752_v47, %v2754_v16  ;;  %v2431_v47 = vsel %vm2376_vm6, %v2426_v37, %v2430_v14  ;;  %v2758_v16 = vrot.slane %v4358_v54, 3 }
 0x134   : > { %v5336_v3 = vadd.f32 %v4050_v62, %v875_v42  ;;  %4268 = vmatprep.mubr.msk.bf16.mxu0 %vm461_vm2, %v2753_v8  ;;  %v870_v33 = vadd.f32 %v869_v58, %v5863_v1  ;;  %v2432_v42 = vrot.slane %v5865_v5, 2 }
 0x135   : > { %v4016_v57 = vpop.f32.mrf.mxu1  ;;  %4231 = vmatmul.mubr.msk.bf16.gmra.mxu1 %vm461_vm2, %v2419_v6  ;;  %v1159_v4 = vpop.f32.mrf.mxu0  ;;  %v5866_v6 = vld [vmem:[#allocation17_spill] sm:$0xff]  ;;  %v2759_v5 = vsel %vm2734_vm7, %v2756_v55, %v2758_v16 }
 0x136   : > { %v5343_v2 = vadd.f32 %v1159_v4, %v867_v53  ;;  %4234 = vmatprep.mubr.msk.bf16.mxu1 %vm461_vm2, %v2423_v15  ;;  %v891_v19 = vadd.f32 %v4016_v57, %v5864_v30  ;;  %v2433_v58 = vrot.slane %v5866_v6, 3  ;;  %v5871_v30 = vld [vmem:[#allocation25_spill] sm:$0xff] }
 0x137   : > { %v882_v13 = vpop.f32.mrf.mxu1  ;;  %v4051_v51 = vpop.f32.mrf.mxu0 }
 0x138   : > { %v5347_v36 = vadd.f32 %v4051_v51, %v878_v11  ;;  %v883_v24 = vadd.f32 %v882_v13, %v5869_v21  ;;  %v5870_v11 = vld [vmem:[#allocation9_spill] sm:$0xff]  ;;  %v2434_v1 = vor.u32 %v2433_v58, %v2432_v42 }
 0x139   : > { %v4017_v63 = vpop.f32.mrf.mxu1  ;;  %v1162_v8 = vpop.f32.mrf.mxu0 }
 0x13a   : > { %v5353_v20 = vadd.f32 %v1162_v8, %v870_v33  ;;  %v894_v37 = vadd.f32 %v4017_v63, %v5870_v11  ;;  %v2445_v8 = vshrl.u32 %v5168_v56, 16 }
 0x13b   : > { %v885_v62 = vpop.f32.mrf.mxu1  ;;  %v4054_v15 = vpop.f32.mrf.mxu0  ;;  %4269 = vmatmul.mubr.msk.bf16.gmra.mxu0 %vm461_vm2, %v2755_v18  ;;  %v2438_v18 = vor.u32 %v2437_v7, %v2436_v22 }
 0x13c   : > { %v5362_v53 = vadd.f32 %v4054_v15, %v891_v19  ;;  %4272 = vmatprep.mubr.msk.bf16.mxu0 %vm461_vm2, %v2757_v17  ;;  %v2448_v17 = vshll.u32 %v5168_v56, 16  ;;  %v886_v19 = vadd.f32 %v885_v62, %v5871_v30  ;;  %v2761_v15 = vsel %vm2734_vm7, %v2758_v16, %v2760_v31 }
 0x13d   : > { %v4020_v57 = vpop.f32.mrf.mxu1  ;;  %4235 = vmatmul.mubr.msk.bf16.gmra.mxu1 %vm461_vm2, %v2427_v35  ;;  %v1175_v4 = vpop.f32.mrf.mxu0  ;;  %v2435_v62 = vsel %vm2376_vm6, %v2430_v14, %v2434_v1  ;;  %v2439_v54 = vsel %vm2376_vm6, %v2434_v1, %v2438_v18  ;;  %v2447_v16 = vrot.slane %v2445_v8, 2  ;;  %v5877_v1 = vld [vmem:[#allocation13_spill] sm:$0xff] }
 0x13e   : > { %v5369_v51 = vadd.f32 %v1175_v4, %v883_v24  ;;  %4238 = vmatprep.mubr.msk.bf16.mxu1 %vm461_vm2, %v2431_v47  ;;  %v5872_v47 = vld [vmem:[#allocation23_spill] sm:$0xff]  ;;  %v907_v7 = vadd.f32 %v4020_v57, %v5875_v25  ;;  %v2450_v4 = vrot.slane %v2448_v17, 3  ;;  %v4360_v57 = vld [vmem:[%s4444_s25 + $0x80] sm:$0xff]  }
 0x13f   : > { %v898_v13 = vpop.f32.mrf.mxu1  ;;  %v4055_v33 = vpop.f32.mrf.mxu0  ;;  %v5873_v42 = vshrl.u32 %v5872_v47, 16  ;;  %v5874_v34 = vshll.u32 %v5872_v47, 16  ;;  %v5878_v17 = vld [vmem:[#allocation6_spill] sm:$0xff] }
 0x140   : > { %v5375_v35 = vadd.f32 %v4055_v33, %v894_v37  ;;  %v899_v11 = vadd.f32 %v898_v13, %v5876_v12  ;;  %v2762_v33 = vrot.slane %v4360_v57, 3 }
 0x141   : > { %v4021_v6 = vpop.f32.mrf.mxu1  ;;  %v1178_v63 = vpop.f32.mrf.mxu0  ;;  %v2440_v58 = vrot.slane %v5873_v42, 2  ;;  %v2441_v22 = vrot.slane %v5874_v34, 3 }
 0x142   : > { %v5384_v21 = vadd.f32 %v1178_v63, %v886_v19  ;;  %v4361_v63 = vld [vmem:[%s4444_s25 + $0x88] sm:$0xff]   ;;  %v910_v8 = vadd.f32 %v4021_v6, %v5877_v1  ;;  %v2763_v57 = vsel %vm2734_vm7, %v2760_v31, %v2762_v33 }
 0x143   : > { %v901_v24 = vpop.f32.mrf.mxu1  ;;  %v4058_v55 = vpop.f32.mrf.mxu0  ;;  %4273 = vmatmul.mubr.msk.bf16.gmra.mxu0 %vm461_vm2, %v2759_v5  ;;  %v2442_v19 = vor.u32 %v2441_v22, %v2440_v58  ;;  %v2764_v42 = vrot.slane %v4361_v63, 3  ;;  %v2454_v5 = vshrl.u32 %v5193_v40, 16 }
 0x144   : > { %v5390_v37 = vadd.f32 %v4058_v55, %v907_v7  ;;  %4276 = vmatprep.mubr.msk.bf16.mxu0 %vm461_vm2, %v2761_v15  ;;  %v2457_v15 = vshll.u32 %v5193_v40, 16  ;;  %v2451_v55 = vor.u32 %v2450_v4, %v2447_v16 }
 0x145   : > { %v4064_v30 = vpop.f32.mrf.mxu1  ;;  %4239 = vmatmul.mubr.msk.bf16.gmra.mxu1 %vm461_vm2, %v2435_v62  ;;  %v1191_v14 = vpop.f32.mrf.mxu0  ;;  %v5879_v62 = vld [vmem:[#allocation28_spill] sm:$0xff]  ;;  %v2456_v1 = vrot.slane %v2454_v5, 2  ;;  %v2768_v5 = vrot.slane %v5168_v56, 3 }
 0x146   : > { %v1440_v34 = vadd.f32 %v4064_v30, %v5878_v17  ;;  %v5399_v13 = vadd.f32 %v1191_v14, %v899_v11  ;;  %4242 = vmatprep.mubr.msk.bf16.mxu1 %vm461_vm2, %v2439_v54  ;;  %v902_v12 = vadd.f32 %v901_v24, %v5879_v62  ;;  %v2443_v11 = vsel %vm2376_vm6, %v2438_v18, %v2442_v19 }
 0x147   : > { %v1295_v25 = vpop.f32.mrf.mxu1  ;;  %v4059_v7 = vpop.f32.mrf.mxu0  ;;  %v2765_v30 = vsel %vm2734_vm7, %v2762_v33, %v2764_v42  ;;  %v2459_v16 = vrot.slane %v2457_v15, 3  ;;  %v2766_v18 = vrot.slane %v5872_v47, 3 }
 0x148   : > { %v1438_v58 = vadd.f32 %v1295_v25, %v5185_v61  ;;  %v5405_v22 = vadd.f32 %v4059_v7, %v910_v8  ;;  %v2452_v61 = vsel %vm2376_vm6, %v2442_v19, %v2451_v55 }
 0x149   : > { %v4065_v6 = vpop.f32.mrf.mxu1  ;;  %v1194_v63 = vpop.f32.mrf.mxu0  ;;  %v2460_v19 = vor.u32 %v2459_v16, %v2456_v1  ;;  %v2767_v47 = vsel %vm2734_vm7, %v2764_v42, %v2766_v18  ;;  %v2770_v42 = vrot.slane %v5193_v40, 3 }
 0x14a   : > { %v1441_v54 = vadd.f32 %v4065_v6, %v5190_v60  ;;  %v5411_v14 = vadd.f32 %v1194_v63, %v902_v12 }
 0x14b   : > { %v1298_v4 = vpop.f32.mrf.mxu1  ;;  %v4102_v24 = vpop.f32.mrf.mxu0  ;;  %4277 = vmatmul.mubr.msk.bf16.gmra.mxu0 %vm461_vm2, %v2763_v57  ;;  %v2769_v57 = vsel %vm2734_vm7, %v2766_v18, %v2768_v5 }
 0x14c   : > { %v1439_v31 = vadd.f32 %v1298_v4, %v5197_v10  ;;  %v5416_v8 = vadd.f32 %v4102_v24, %v1440_v34  ;;  %4280 = vmatprep.mubr.msk.bf16.mxu0 %vm461_vm2, %v2765_v30 }
 0x14d   : > { %v4068_v33 = vpop.f32.mrf.mxu1  ;;  %4243 = vmatmul.mubr.msk.bf16.gmra.mxu1 %vm461_vm2, %v2443_v11  ;;  %v1653_v60 = vpop.f32.mrf.mxu0 }
 0x14e   : > { %v1444_v17 = vadd.f32 %v4068_v33, %v5205_v27  ;;  %v5423_v15 = vadd.f32 %v1653_v60, %v1438_v58  ;;  %4246 = vmatprep.mubr.msk.bf16.mxu1 %vm461_vm2, %v2452_v61  ;;  %v2461_v58 = vsel %vm2376_vm6, %v2451_v55, %v2460_v19 }
 0x14f   : > { %v1311_v10 = vpop.f32.mrf.mxu1  ;;  %v4103_v34 = vpop.f32.mrf.mxu0 }
 0x150   : > { %v1442_v25 = vadd.f32 %v1311_v10, %v5213_v0  ;;  %v5427_v7 = vadd.f32 %v4103_v34, %v1441_v54 }
 0x151   : > { %v4069_v62 = vpop.f32.mrf.mxu1  ;;  %v1656_v12 = vpop.f32.mrf.mxu0 }
 0x152   : > { %v1445_v56 = vadd.f32 %v4069_v62, %v5217_v26  ;;  %v5432_v27 = vadd.f32 %v1656_v12, %v1439_v31 }
 0x153   : > { %v1314_v6 = vpop.f32.mrf.mxu1  ;;  %v4106_v63 = vpop.f32.mrf.mxu0  ;;  %4281 = vmatmul.mubr.msk.bf16.gmra.mxu0 %vm461_vm2, %v2767_v47 }
 0x154   : > { %v1443_v0 = vadd.f32 %v1314_v6, %v5224_v43  ;;  %v5437_v11 = vadd.f32 %v4106_v63, %v1444_v17  ;;  %4284 = vmatprep.mubr.msk.bf16.mxu0 %vm461_vm2, %v2769_v57  ;;  %v2771_v43 = vsel %vm2734_vm7, %v2768_v5, %v2770_v42 }
 0x155   : > { %v4072_v30 = vpop.f32.mrf.mxu1  ;;  %4247 = vmatmul.mubr.msk.bf16.gmra.mxu1 %vm461_vm2, %v2461_v58  ;;  %v1669_v26 = vpop.f32.mrf.mxu0 }
 0x156   : > { %v1448_v54 = vadd.f32 %v4072_v30, %v5234_v48  ;;  %v5443_v1 = vadd.f32 %v1669_v26, %v1442_v25 }
 0x157   : > { %v1327_v55 = vpop.f32.mrf.mxu1  ;;  %v4107_v16 = vpop.f32.mrf.mxu0 }
 0x158   : > { %v1446_v4 = vadd.f32 %v1327_v55, %v5241_v29  ;;  %v5446_v24 = vadd.f32 %v4107_v16, %v1445_v56 }
 0x159   : > { %v4073_v61 = vpop.f32.mrf.mxu1  ;;  %v1672_v31 = vpop.f32.mrf.mxu0 }
 0x15a   : > { %v1449_v40 = vadd.f32 %v4073_v61, %v5245_v59  ;;  %v5450_v18 = vadd.f32 %v1672_v31, %v1443_v0 }
 0x15b   : > { %v1330_v33 = vpop.f32.mrf.mxu1  ;;  %v4110_v60 = vpop.f32.mrf.mxu0  ;;  %4285 = vmatmul.mubr.msk.bf16.gmra.mxu0 %vm461_vm2, %v2771_v43 }
 0x15c   : > { %v1447_v48 = vadd.f32 %v1330_v33, %v5251_v46  ;;  %v5454_v17 = vadd.f32 %v4110_v60, %v1448_v54 }
 0x15d   : > { %v4076_v19 = vpop.f32.mrf.mxu1  ;;  %v1685_v29 = vpop.f32.mrf.mxu0 }
 0x15e   : > { %v1452_v10 = vadd.f32 %v4076_v19, %v5260_v50  ;;  %v5457_v34 = vadd.f32 %v1685_v29, %v1446_v4 }
 0x15f   : > { %v1343_v5 = vpop.f32.mrf.mxu1  ;;  %v4111_v25 = vpop.f32.mrf.mxu0 }
 0x160   : > { %v1450_v59 = vadd.f32 %v1343_v5, %v5267_v41  ;;  %v5460_v47 = vadd.f32 %v4111_v25, %v1449_v40 }
 0x161   : > { %v4077_v62 = vpop.f32.mrf.mxu1  ;;  %v1688_v12 = vpop.f32.mrf.mxu0 }
 0x162   : > { %v1453_v57 = vadd.f32 %v4077_v62, %v5271_v28  ;;  %v5463_v56 = vadd.f32 %v1688_v12, %v1447_v48 }
 0x163   : > { %v1346_v46 = vpop.f32.mrf.mxu1  ;;  %v4114_v58 = vpop.f32.mrf.mxu0 }
 0x164   : > { %v1451_v6 = vadd.f32 %v1346_v46, %v5278_v9  ;;  %v5466_v63 = vadd.f32 %v4114_v58, %v1452_v10 }
 0x165   : > { %v4080_v50 = vpop.f32.mrf.mxu1  ;;  %v1701_v0 = vpop.f32.mrf.mxu0 }
 0x166   : > { %v1456_v42 = vadd.f32 %v4080_v50, %v5286_v52  ;;  %v5469_v30 = vadd.f32 %v1701_v0, %v1450_v59 }
 0x167   : > { %v1359_v41 = vpop.f32.mrf.mxu1  ;;  %v4115_v26 = vpop.f32.mrf.mxu0 }
 0x168   : > { %v1454_v54 = vadd.f32 %v1359_v41, %v5292_v32  ;;  %v5472_v55 = vadd.f32 %v4115_v26, %v1453_v57 }
 0x169   : > { %v4081_v28 = vpop.f32.mrf.mxu1  ;;  %v1704_v16 = vpop.f32.mrf.mxu0 }
 0x16a   : > { %v1457_v4 = vadd.f32 %v4081_v28, %v5295_v39  ;;  %v5475_v43 = vadd.f32 %v1704_v16, %v1451_v6 }
 0x16b   : > { %v1362_v9 = vpop.f32.mrf.mxu1  ;;  %v4118_v61 = vpop.f32.mrf.mxu0 }
 0x16c   : > { %v1455_v31 = vadd.f32 %v1362_v9, %v5301_v44  ;;  %v5478_v40 = vadd.f32 %v4118_v61, %v1456_v42 }
 0x16d   : > { %v4084_v52 = vpop.f32.mrf.mxu1  ;;  %v1717_v33 = vpop.f32.mrf.mxu0 }
 0x16e   : > { %v1460_v60 = vadd.f32 %v4084_v52, %v5310_v45  ;;  %v5481_v48 = vadd.f32 %v1717_v33, %v1454_v54 }
 0x16f   : > { %v1375_v32 = vpop.f32.mrf.mxu1  ;;  %v4119_v19 = vpop.f32.mrf.mxu0 }
 0x170   : > { %v1458_v29 = vadd.f32 %v1375_v32, %v5317_v49  ;;  %v5484_v10 = vadd.f32 %v4119_v19, %v1457_v4 }
 0x171   : > { %v4085_v39 = vpop.f32.mrf.mxu1  ;;  %v1720_v5 = vpop.f32.mrf.mxu0 }
 0x172   : > { %v1461_v25 = vadd.f32 %v4085_v39, %v5321_v23  ;;  %v5487_v59 = vadd.f32 %v1720_v5, %v1455_v31 }
 0x173   : > { %v1378_v44 = vpop.f32.mrf.mxu1  ;;  %v4122_v62 = vpop.f32.mrf.mxu0 }
 0x174   : > { %v1459_v12 = vadd.f32 %v1378_v44, %v5328_v38  ;;  %v5490_v57 = vadd.f32 %v4122_v62, %v1460_v60 }
 0x175   : > { %v4088_v45 = vpop.f32.mrf.mxu1  ;;  %v1733_v46 = vpop.f32.mrf.mxu0 }
 0x176   : > { %v1464_v58 = vadd.f32 %v4088_v45, %v5336_v3  ;;  %v5493_v6 = vadd.f32 %v1733_v46, %v1458_v29 }
 0x177   : > { %v1391_v49 = vpop.f32.mrf.mxu1  ;;  %v4123_v50 = vpop.f32.mrf.mxu0 }
 0x178   : > { %v1462_v0 = vadd.f32 %v1391_v49, %v5343_v2  ;;  %v5496_v42 = vadd.f32 %v4123_v50, %v1461_v25 }
 0x179   : > { %v4089_v23 = vpop.f32.mrf.mxu1  ;;  %v1736_v41 = vpop.f32.mrf.mxu0 }
 0x17a   : > { %v1465_v26 = vadd.f32 %v4089_v23, %v5347_v36  ;;  %v5499_v54 = vadd.f32 %v1736_v41, %v1459_v12 }
 0x17b   : > { %v1394_v38 = vpop.f32.mrf.mxu1  ;;  %v4126_v28 = vpop.f32.mrf.mxu0 }
 0x17c   : > { %v1463_v16 = vadd.f32 %v1394_v38, %v5353_v20  ;;  %v5502_v4 = vadd.f32 %v4126_v28, %v1464_v58 }
 0x17d   : > { %v4092_v3 = vpop.f32.mrf.mxu1  ;;  %v1749_v9 = vpop.f32.mrf.mxu0 }
 0x17e   : > { %v1468_v61 = vadd.f32 %v4092_v3, %v5362_v53  ;;  %v5505_v31 = vadd.f32 %v1749_v9, %v1462_v0 }
 0x17f   : > { %v1407_v2 = vpop.f32.mrf.mxu1  ;;  %v4127_v52 = vpop.f32.mrf.mxu0 }
 0x180   : > { %v1466_v33 = vadd.f32 %v1407_v2, %v5369_v51  ;;  %v5508_v60 = vadd.f32 %v4127_v52, %v1465_v26 }
 0x181   : > { %v4093_v36 = vpop.f32.mrf.mxu1  ;;  %v1752_v32 = vpop.f32.mrf.mxu0 }
 0x182   : > { %v1469_v19 = vadd.f32 %v4093_v36, %v5375_v35  ;;  %v5511_v29 = vadd.f32 %v1752_v32, %v1463_v16 }
 0x183   : > { %v1410_v20 = vpop.f32.mrf.mxu1  ;;  %v4130_v39 = vpop.f32.mrf.mxu0 }
 0x184   : > { %v1467_v5 = vadd.f32 %v1410_v20, %v5384_v21  ;;  %v5514_v25 = vadd.f32 %v4130_v39, %v1468_v61 }
 0x185   : > { %v4096_v53 = vpop.f32.mrf.mxu1  ;;  %v1765_v44 = vpop.f32.mrf.mxu0 }
 0x186   : > { %v1472_v62 = vadd.f32 %v4096_v53, %v5390_v37  ;;  %v5517_v12 = vadd.f32 %v1765_v44, %v1466_v33 }
 0x187   : > { %v1423_v51 = vpop.f32.mrf.mxu1  ;;  %v4131_v45 = vpop.f32.mrf.mxu0 }
 0x188   : > { %v1470_v46 = vadd.f32 %v1423_v51, %v5399_v13  ;;  %v5520_v58 = vadd.f32 %v4131_v45, %v1469_v19 }
 0x189   : > { %v4097_v35 = vpop.f32.mrf.mxu1  ;;  %v1768_v49 = vpop.f32.mrf.mxu0 }
 0x18a   : > { %v1473_v50 = vadd.f32 %v4097_v35, %v5405_v22  ;;  %v5523_v0 = vadd.f32 %v1768_v49, %v1467_v5 }
 0x18b   : > { %v1426_v21 = vpop.f32.mrf.mxu1  ;;  %v4134_v23 = vpop.f32.mrf.mxu0 }
 0x18c   : > { %v1471_v41 = vadd.f32 %v1426_v21, %v5411_v14  ;;  %v5526_v26 = vadd.f32 %v4134_v23, %v1472_v62 }
 0x18d   : > { %v4140_v37 = vpop.f32.mrf.mxu1  ;;  %v1781_v38 = vpop.f32.mrf.mxu0 }
 0x18e   : > { %v2108_v28 = vadd.f32 %v4140_v37, %v5416_v8  ;;  %v5529_v16 = vadd.f32 %v1781_v38, %v1470_v46 }
 0x18f   : > { %v1963_v13 = vpop.f32.mrf.mxu1  ;;  %v4135_v3 = vpop.f32.mrf.mxu0 }
 0x190   : > { %v2106_v9 = vadd.f32 %v1963_v13, %v5423_v15  ;;  %v5532_v61 = vadd.f32 %v4135_v3, %v1473_v50 }
 0x191   : > { %v4141_v22 = vpop.f32.mrf.mxu1  ;;  %v1784_v2 = vpop.f32.mrf.mxu0 }
 0x192   : > { %v2109_v52 = vadd.f32 %v4141_v22, %v5427_v7  ;;  %v5535_v33 = vadd.f32 %v1784_v2, %v1471_v41 }
 0x193   : > { %v1966_v14 = vpop.f32.mrf.mxu1  ;;  %v4178_v36 = vpop.f32.mrf.mxu0 }
 0x194   : > { %v2107_v32 = vadd.f32 %v1966_v14, %v5432_v27  ;;  %v5538_v19 = vadd.f32 %v4178_v36, %v2108_v28 }
 0x195   : > { %v4144_v8 = vpop.f32.mrf.mxu1  ;;  %v2195_v20 = vpop.f32.mrf.mxu0 }
 0x196   : > { %v2112_v39 = vadd.f32 %v4144_v8, %v5437_v11  ;;  %v5541_v5 = vadd.f32 %v2195_v20, %v2106_v9 }
 0x197   : > { %v1979_v15 = vpop.f32.mrf.mxu1  ;;  %v4179_v53 = vpop.f32.mrf.mxu0 }
 0x198   : > { %v2110_v44 = vadd.f32 %v1979_v15, %v5443_v1  ;;  %v5544_v62 = vadd.f32 %v4179_v53, %v2109_v52 }
 0x199   : > { %v4145_v7 = vpop.f32.mrf.mxu1  ;;  %v2198_v51 = vpop.f32.mrf.mxu0 }
 0x19a   : > { %v2113_v45 = vadd.f32 %v4145_v7, %v5446_v24  ;;  %v5547_v46 = vadd.f32 %v2198_v51, %v2107_v32 }
 0x19b   : > { %v1982_v27 = vpop.f32.mrf.mxu1  ;;  %v4182_v35 = vpop.f32.mrf.mxu0 }
 0x19c   : > { %v2111_v49 = vadd.f32 %v1982_v27, %v5450_v18  ;;  %v5550_v50 = vadd.f32 %v4182_v35, %v2112_v39 }
 0x19d   : > { %v4148_v11 = vpop.f32.mrf.mxu1  ;;  %v2211_v21 = vpop.f32.mrf.mxu0 }
 0x19e   : > { %v2116_v23 = vadd.f32 %v4148_v11, %v5454_v17  ;;  %v5553_v41 = vadd.f32 %v2211_v21, %v2110_v44 }
 0x19f   : > { %v1995_v1 = vpop.f32.mrf.mxu1  ;;  %v4183_v37 = vpop.f32.mrf.mxu0 }
 0x1a0   : > { %v2114_v38 = vadd.f32 %v1995_v1, %v5457_v34  ;;  %v5556_v28 = vadd.f32 %v4183_v37, %v2113_v45 }
 0x1a1   : > { %v4149_v24 = vpop.f32.mrf.mxu1  ;;  %v2214_v13 = vpop.f32.mrf.mxu0 }
 0x1a2   : > { %v2117_v3 = vadd.f32 %v4149_v24, %v5460_v47  ;;  %v5559_v9 = vadd.f32 %v2214_v13, %v2111_v49 }
 0x1a3   : > { %v1998_v18 = vpop.f32.mrf.mxu1  ;;  %v4186_v22 = vpop.f32.mrf.mxu0 }
 0x1a4   : > { %v2115_v2 = vadd.f32 %v1998_v18, %v5463_v56  ;;  %v5562_v52 = vadd.f32 %v4186_v22, %v2116_v23 }
 0x1a5   : > { %v4152_v17 = vpop.f32.mrf.mxu1  ;;  %v2227_v14 = vpop.f32.mrf.mxu0 }
 0x1a6   : > { %v2120_v36 = vadd.f32 %v4152_v17, %v5466_v63  ;;  %v5565_v32 = vadd.f32 %v2227_v14, %v2114_v38 }
 0x1a7   : > { %v2011_v34 = vpop.f32.mrf.mxu1  ;;  %v4187_v8 = vpop.f32.mrf.mxu0 }
 0x1a8   : > { %v2118_v20 = vadd.f32 %v2011_v34, %v5469_v30  ;;  %v5568_v39 = vadd.f32 %v4187_v8, %v2117_v3 }
 0x1a9   : > { %v4153_v47 = vpop.f32.mrf.mxu1  ;;  %v2230_v15 = vpop.f32.mrf.mxu0 }
 0x1aa   : > { %v2121_v53 = vadd.f32 %v4153_v47, %v5472_v55  ;;  %v5571_v44 = vadd.f32 %v2230_v15, %v2115_v2 }
 0x1ab   : > { %v2014_v56 = vpop.f32.mrf.mxu1  ;;  %v4190_v7 = vpop.f32.mrf.mxu0 }
 0x1ac   : > { %v2119_v51 = vadd.f32 %v2014_v56, %v5475_v43  ;;  %v5574_v45 = vadd.f32 %v4190_v7, %v2120_v36 }
 0x1ad   : > { %v4156_v63 = vpop.f32.mrf.mxu1  ;;  %v2243_v27 = vpop.f32.mrf.mxu0 }
 0x1ae   : > { %v2124_v35 = vadd.f32 %v4156_v63, %v5478_v40  ;;  %v5577_v49 = vadd.f32 %v2243_v27, %v2118_v20 }
 0x1af   : > { %v2027_v30 = vpop.f32.mrf.mxu1  ;;  %v4191_v11 = vpop.f32.mrf.mxu0 }
 0x1b0   : > { %v2122_v21 = vadd.f32 %v2027_v30, %v5481_v48  ;;  %v5580_v23 = vadd.f32 %v4191_v11, %v2121_v53 }
 0x1b1   : > { %v4157_v55 = vpop.f32.mrf.mxu1  ;;  %v2246_v1 = vpop.f32.mrf.mxu0 }
 0x1b2   : > { %v2125_v37 = vadd.f32 %v4157_v55, %v5484_v10  ;;  %v5583_v38 = vadd.f32 %v2246_v1, %v2119_v51 }
 0x1b3   : > { %v2030_v43 = vpop.f32.mrf.mxu1  ;;  %v4194_v24 = vpop.f32.mrf.mxu0 }
 0x1b4   : > { %v2123_v13 = vadd.f32 %v2030_v43, %v5487_v59  ;;  %v5586_v3 = vadd.f32 %v4194_v24, %v2124_v35 }
 0x1b5   : > { %v4160_v40 = vpop.f32.mrf.mxu1  ;;  %v2259_v18 = vpop.f32.mrf.mxu0 }
 0x1b6   : > { %v2128_v22 = vadd.f32 %v4160_v40, %v5490_v57  ;;  %v5589_v2 = vadd.f32 %v2259_v18, %v2122_v21 }
 0x1b7   : > { %v2043_v48 = vpop.f32.mrf.mxu1  ;;  %v4195_v17 = vpop.f32.mrf.mxu0 }
 0x1b8   : > { %v2126_v14 = vadd.f32 %v2043_v48, %v5493_v6  ;;  %v5592_v36 = vadd.f32 %v4195_v17, %v2125_v37 }
 0x1b9   : > { %v4161_v10 = vpop.f32.mrf.mxu1  ;;  %v2262_v34 = vpop.f32.mrf.mxu0 }
 0x1ba   : > { %v2129_v8 = vadd.f32 %v4161_v10, %v5496_v42  ;;  %v5595_v20 = vadd.f32 %v2262_v34, %v2123_v13 }
 0x1bb   : > { %v2046_v59 = vpop.f32.mrf.mxu1  ;;  %v4198_v47 = vpop.f32.mrf.mxu0 }
 0x1bc   : > { %v2127_v15 = vadd.f32 %v2046_v59, %v5499_v54  ;;  %v5598_v53 = vadd.f32 %v4198_v47, %v2128_v22 }
 0x1bd   : > { %v4164_v57 = vpop.f32.mrf.mxu1  ;;  %v2275_v56 = vpop.f32.mrf.mxu0 }
 0x1be   : > { %v2132_v7 = vadd.f32 %v4164_v57, %v5502_v4  ;;  %v5601_v51 = vadd.f32 %v2275_v56, %v2126_v14 }
 0x1bf   : > { %v2059_v6 = vpop.f32.mrf.mxu1  ;;  %v4199_v63 = vpop.f32.mrf.mxu0 }
 0x1c0   : > { %v2130_v27 = vadd.f32 %v2059_v6, %v5505_v31  ;;  %v5604_v35 = vadd.f32 %v4199_v63, %v2129_v8 }
 0x1c1   : > { %v4165_v42 = vpop.f32.mrf.mxu1  ;;  %v2278_v30 = vpop.f32.mrf.mxu0 }
 0x1c2   : > { %v2133_v11 = vadd.f32 %v4165_v42, %v5508_v60  ;;  %v5607_v21 = vadd.f32 %v2278_v30, %v2127_v15 }
 0x1c3   : > { %v2062_v54 = vpop.f32.mrf.mxu1  ;;  %v4202_v55 = vpop.f32.mrf.mxu0 }
 0x1c4   : > { %v2131_v1 = vadd.f32 %v2062_v54, %v5511_v29  ;;  %v5610_v37 = vadd.f32 %v4202_v55, %v2132_v7 }
 0x1c5   : > { %v4168_v4 = vpop.f32.mrf.mxu1  ;;  %v2291_v43 = vpop.f32.mrf.mxu0 }
 0x1c6   : > { %v2136_v24 = vadd.f32 %v4168_v4, %v5514_v25  ;;  %v5613_v13 = vadd.f32 %v2291_v43, %v2130_v27 }
 0x1c7   : > { %v2075_v31 = vpop.f32.mrf.mxu1  ;;  %v4203_v40 = vpop.f32.mrf.mxu0 }
 0x1c8   : > { %v2134_v18 = vadd.f32 %v2075_v31, %v5517_v12  ;;  %v5616_v22 = vadd.f32 %v4203_v40, %v2133_v11 }
 0x1c9   : > { %v4169_v60 = vpop.f32.mrf.mxu1  ;;  %v2294_v48 = vpop.f32.mrf.mxu0 }
 0x1ca   : > { %v2137_v17 = vadd.f32 %v4169_v60, %v5520_v58  ;;  %v5619_v14 = vadd.f32 %v2294_v48, %v2131_v1 }
 0x1cb   : > { %v2078_v29 = vpop.f32.mrf.mxu1  ;;  %v4206_v10 = vpop.f32.mrf.mxu0 }
 0x1cc   : > { %v2135_v34 = vadd.f32 %v2078_v29, %v5523_v0  ;;  %v5622_v8 = vadd.f32 %v4206_v10, %v2136_v24 }
 0x1cd   : > { %v4172_v25 = vpop.f32.mrf.mxu1  ;;  %v2307_v59 = vpop.f32.mrf.mxu0 }
 0x1ce   : > { %v2140_v47 = vadd.f32 %v4172_v25, %v5526_v26  ;;  %v5625_v15 = vadd.f32 %v2307_v59, %v2134_v18 }
 0x1cf   : > { %v2091_v12 = vpop.f32.mrf.mxu1  ;;  %v4207_v57 = vpop.f32.mrf.mxu0 }
 0x1d0   : > { %v2138_v56 = vadd.f32 %v2091_v12, %v5529_v16  ;;  %v5628_v7 = vadd.f32 %v4207_v57, %v2137_v17  ;;  %v5647_v17 = vld [vmem:[%s5754_s2] ss:$0 sm:$0xff] }
 0x1d1   : > { %v4173_v58 = vpop.f32.mrf.mxu1  ;;  %v2310_v6 = vpop.f32.mrf.mxu0 }
 0x1d2   : > { %v2141_v63 = vadd.f32 %v4173_v58, %v5532_v61  ;;  %v5631_v27 = vadd.f32 %v2310_v6, %v2135_v34 }
 0x1d3   : > { %v2094_v0 = vpop.f32.mrf.mxu1  ;;  %v4210_v42 = vpop.f32.mrf.mxu0 }
 0x1d4   : > { %v2139_v30 = vadd.f32 %v2094_v0, %v5535_v33  ;;  %v5634_v11 = vadd.f32 %v4210_v42, %v2140_v47 }
 0x1d5   : > { %v4216_v26 = vpop.f32.mrf.mxu1  ;;  %v2323_v54 = vpop.f32.mrf.mxu0 }
 0x1d6   : > { %v5636_v55 = vadd.f32 %v2323_v54, %v2138_v56  ;;  %v2698_v61 = vadd.f32 %v4216_v26, %v5538_v19 }
 0x1d7   : > { %v2553_v1 = vpop.f32.mrf.mxu1  ;;  %v4211_v16 = vpop.f32.mrf.mxu0 }
 0x1d8   : > { %v5638_v4 = vadd.f32 %v4211_v16, %v2141_v63  ;;  %v2696_v33 = vadd.f32 %v2553_v1, %v5541_v5 }
 0x1d9   : > { %v4217_v43 = vpop.f32.mrf.mxu1  ;;  %v2326_v24 = vpop.f32.mrf.mxu0 }
 0x1da   : > { %v5641_v31 = vadd.f32 %v2326_v24, %v2139_v30  ;;  %v2699_v10 = vadd.f32 %v4217_v43, %v5544_v62 }
 0x1db   : > { %v2556_v40 = vpop.f32.mrf.mxu1  ;;  %v4254_v18 = vpop.f32.mrf.mxu0 }
 0x1dc   : > { %v3008_v60 = vadd.f32 %v4254_v18, %v2698_v61  ;;  %v2697_v59 = vadd.f32 %v2556_v40, %v5547_v46 }
 0x1dd   : > { %v4220_v48 = vpop.f32.mrf.mxu1  ;;  %v2863_v29 = vpop.f32.mrf.mxu0 }
 0x1de   : > { %v3006_v34 = vadd.f32 %v2863_v29, %v2696_v33  ;;  %v3051_v47 = vadd.f32 %v5647_v17, %v3008_v60  ;;  %v2702_v56 = vadd.f32 %v4220_v48, %v5550_v50 }
 0x1df   : > { %v2569_v25 = vpop.f32.mrf.mxu1  ;;  %v4255_v19 = vpop.f32.mrf.mxu0 }
 0x1e0   : > { %v3009_v12 = vadd.f32 %v4255_v19, %v2699_v10  ;;  %v3049_v58 = vadd.f32 %v5647_v17, %v3006_v34  ;;  %v3087_v42 = vmax.f32 %v3051_v47, 0.0  ;;  %v2700_v54 = vadd.f32 %v2569_v25, %v5553_v41 }
 0x1e1   : > { %v4221_v57 = vpop.f32.mrf.mxu1  ;;  %v2866_v5 = vpop.f32.mrf.mxu0 }
 0x1e2   : > { %v3052_v6 = vadd.f32 %v5647_v17, %v3009_v12  ;;  %v3007_v63 = vadd.f32 %v2866_v5, %v2697_v59  ;;  %v3085_v16 = vmax.f32 %v3049_v58, 0.0  ;;  %v2703_v43 = vadd.f32 %v4221_v57, %v5556_v28 }
 0x1e3   : > { %v2572_v0 = vpop.f32.mrf.mxu1  ;;  %v4258_v62 = vpop.f32.mrf.mxu0 }
 0x1e4   : > { %v3088_v30 = vmax.f32 %v3052_v6, 0.0  ;;  %v3050_v26 = vadd.f32 %v5647_v17, %v3007_v63  ;;  %v3012_v46 = vadd.f32 %v4258_v62, %v2702_v56  ;;  %v2701_v41 = vadd.f32 %v2572_v0, %v5559_v9 }
 0x1e5   : > { %v4224_v50 = vpop.f32.mrf.mxu1  ;;  %v2879_v1 = vpop.f32.mrf.mxu0 }
 0x1e6   : > { %v3676_v24 = vpack.c.bf16 %v3088_v30, %v3087_v42  ;;  %v3086_v61 = vmax.f32 %v3050_v26, 0.0  ;;  %v3010_v18 = vadd.f32 %v2879_v1, %v2700_v54  ;;  %v3055_v48 = vadd.f32 %v5647_v17, %v3012_v46 }
 0x1e7   : > { %v2585_v40 = vpop.f32.mrf.mxu1  ;;  %v4259_v33 = vpop.f32.mrf.mxu0  ;;  %v2706_v25 = vadd.f32 %v4224_v50, %v5562_v52 }
 0x1e8   : > { %3758 = vst [vmem:[%s5661_s12 + $0x8] sm:$0xff] %v3676_v24   ;;  %v3671_v60 = vpack.c.bf16 %v3086_v61, %v3085_v16  ;;  %v3013_v29 = vadd.f32 %v4259_v33, %v2703_v43  ;;  %v3053_v19 = vadd.f32 %v5647_v17, %v3010_v18  ;;  %v3091_v57 = vmax.f32 %v3055_v48, 0.0 }
 0x1e9   : > { %v4225_v10 = vpop.f32.mrf.mxu1  ;;  %v2882_v34 = vpop.f32.mrf.mxu0  ;;  %v2704_v58 = vadd.f32 %v2585_v40, %v5565_v32 }
 0x1ea   : > { %3672 = vst [vmem:[%s5661_s12] sm:$0xff] %v3671_v60   ;;  %v3056_v28 = vadd.f32 %v5647_v17, %v3013_v29  ;;  %v3011_v59 = vadd.f32 %v2882_v34, %v2701_v41  ;;  %v3089_v0 = vmax.f32 %v3053_v19, 0.0  ;;  %v2707_v52 = vadd.f32 %v4225_v10, %v5568_v39 }
 0x1eb   : > { %v2588_v47 = vpop.f32.mrf.mxu1  ;;  %v4262_v12 = vpop.f32.mrf.mxu0 }
 0x1ec   : > { %v3092_v5 = vmax.f32 %v3056_v28, 0.0  ;;  %v3054_v9 = vadd.f32 %v5647_v17, %v3011_v59  ;;  %v3016_v56 = vadd.f32 %v4262_v12, %v2706_v25  ;;  %v2705_v54 = vadd.f32 %v2588_v47, %v5571_v44 }
 0x1ed   : > { %v4228_v6 = vpop.f32.mrf.mxu1  ;;  %v2895_v63 = vpop.f32.mrf.mxu0 }
 0x1ee   : > { %v3686_v62 = vpack.c.bf16 %v3092_v5, %v3091_v57  ;;  %v3090_v42 = vmax.f32 %v3054_v9, 0.0  ;;  %v3014_v26 = vadd.f32 %v2895_v63, %v2704_v58  ;;  %v3059_v1 = vadd.f32 %v5647_v17, %v3016_v56 }
 0x1ef   : > { %v2601_v30 = vpop.f32.mrf.mxu1  ;;  %v4263_v46 = vpop.f32.mrf.mxu0  ;;  %v2710_v24 = vadd.f32 %v4228_v6, %v5574_v45 }
 0x1f0   : > { %3760 = vst [vmem:[%s5661_s12 + $0x18] sm:$0xff] %v3686_v62   ;;  %v3681_v50 = vpack.c.bf16 %v3090_v42, %v3089_v0  ;;  %v3017_v16 = vadd.f32 %v4263_v46, %v2707_v52  ;;  %v3057_v61 = vadd.f32 %v5647_v17, %v3014_v26  ;;  %v3095_v41 = vmax.f32 %v3059_v1, 0.0 }
 0x1f1   : > { %v4229_v43 = vpop.f32.mrf.mxu1  ;;  %v2898_v32 = vpop.f32.mrf.mxu0  ;;  %v2708_v29 = vadd.f32 %v2601_v30, %v5577_v49 }
 0x1f2   : > { %3759 = vst [vmem:[%s5661_s12 + $0x10] sm:$0xff] %v3681_v50   ;;  %v3060_v39 = vadd.f32 %v5647_v17, %v3017_v16  ;;  %v3015_v40 = vadd.f32 %v2898_v32, %v2705_v54  ;;  %v3093_v25 = vmax.f32 %v3057_v61, 0.0  ;;  %v2711_v45 = vadd.f32 %v4229_v43, %v5580_v23 }
 0x1f3   : > { %v2604_v18 = vpop.f32.mrf.mxu1  ;;  %v4266_v33 = vpop.f32.mrf.mxu0 }
 0x1f4   : > { %v3096_v60 = vmax.f32 %v3060_v39, 0.0  ;;  %v3058_v44 = vadd.f32 %v5647_v17, %v3015_v40  ;;  %v3020_v48 = vadd.f32 %v4266_v33, %v2710_v24  ;;  %v2709_v57 = vadd.f32 %v2604_v18, %v5583_v38 }
 0x1f5   : > { %v4232_v10 = vpop.f32.mrf.mxu1  ;;  %v2911_v34 = vpop.f32.mrf.mxu0 }
 0x1f6   : > { %v3696_v19 = vpack.c.bf16 %v3096_v60, %v3095_v41  ;;  %v3094_v28 = vmax.f32 %v3058_v44, 0.0  ;;  %v3018_v47 = vadd.f32 %v2911_v34, %v2708_v29  ;;  %v3063_v9 = vadd.f32 %v5647_v17, %v3020_v48 }
 0x1f7   : > { %v2617_v59 = vpop.f32.mrf.mxu1  ;;  %v4267_v12 = vpop.f32.mrf.mxu0  ;;  %v2714_v6 = vadd.f32 %v4232_v10, %v5586_v3 }
 0x1f8   : > { %3762 = vst [vmem:[%s5661_s12 + $0x28] sm:$0xff] %v3696_v19   ;;  %v3691_v5 = vpack.c.bf16 %v3094_v28, %v3093_v25  ;;  %v3021_v56 = vadd.f32 %v4267_v12, %v2711_v45  ;;  %v3061_v63 = vadd.f32 %v5647_v17, %v3018_v47  ;;  %v3099_v42 = vmax.f32 %v3063_v9, 0.0 }
 0x1f9   : > { %v4233_v58 = vpop.f32.mrf.mxu1  ;;  %v2914_v49 = vpop.f32.mrf.mxu0  ;;  %v2712_v46 = vadd.f32 %v2617_v59, %v5589_v2 }
 0x1fa   : > { %3761 = vst [vmem:[%s5661_s12 + $0x20] sm:$0xff] %v3691_v5   ;;  %v3064_v23 = vadd.f32 %v5647_v17, %v3021_v56  ;;  %v3019_v0 = vadd.f32 %v2914_v49, %v2709_v57  ;;  %v3097_v1 = vmax.f32 %v3061_v63, 0.0  ;;  %v2715_v3 = vadd.f32 %v4233_v58, %v5592_v36 }
 0x1fb   : > { %v2620_v52 = vpop.f32.mrf.mxu1  ;;  %v4270_v62 = vpop.f32.mrf.mxu0 }
 0x1fc   : > { %v3100_v30 = vmax.f32 %v3064_v23, 0.0  ;;  %v3062_v38 = vadd.f32 %v5647_v17, %v3019_v0  ;;  %v3024_v26 = vadd.f32 %v4270_v62, %v2714_v6  ;;  %v2713_v39 = vadd.f32 %v2620_v52, %v5595_v20 }
 0x1fd   : > { %v4236_v54 = vpop.f32.mrf.mxu1  ;;  %v2927_v50 = vpop.f32.mrf.mxu0 }
 0x1fe   : > { %v3706_v16 = vpack.c.bf16 %v3100_v30, %v3099_v42  ;;  %v3098_v43 = vmax.f32 %v3062_v38, 0.0  ;;  %v3022_v24 = vadd.f32 %v2927_v50, %v2712_v46  ;;  %v3067_v18 = vadd.f32 %v5647_v17, %v3024_v26 }
 0x1ff   : > { %v2633_v32 = vpop.f32.mrf.mxu1  ;;  %v4271_v61 = vpop.f32.mrf.mxu0  ;;  %v2718_v60 = vadd.f32 %v4236_v54, %v5598_v53 }
 0x200   : > { %3764 = vst [vmem:[%s5661_s12 + $0x38] sm:$0xff] %v3706_v16   ;;  %v3701_v40 = vpack.c.bf16 %v3098_v43, %v3097_v1  ;;  %v3025_v33 = vadd.f32 %v4271_v61, %v2715_v3  ;;  %v3065_v44 = vadd.f32 %v5647_v17, %v3022_v24  ;;  %v3103_v34 = vmax.f32 %v3067_v18, 0.0 }
 0x201   : > { %v4237_v41 = vpop.f32.mrf.mxu1  ;;  %v2930_v2 = vpop.f32.mrf.mxu0  ;;  %v2716_v19 = vadd.f32 %v2633_v32, %v5601_v51 }
 0x202   : > { %3763 = vst [vmem:[%s5661_s12 + $0x30] sm:$0xff] %v3701_v40   ;;  %v3068_v36 = vadd.f32 %v5647_v17, %v3025_v33  ;;  %v3023_v48 = vadd.f32 %v2930_v2, %v2713_v39  ;;  %v3101_v47 = vmax.f32 %v3065_v44, 0.0  ;;  %v2719_v53 = vadd.f32 %v4237_v41, %v5604_v35 }
 0x203   : > { %v2636_v29 = vpop.f32.mrf.mxu1  ;;  %v4274_v10 = vpop.f32.mrf.mxu0 }
 0x204   : > { %v3104_v25 = vmax.f32 %v3068_v36, 0.0  ;;  %v3066_v20 = vadd.f32 %v5647_v17, %v3023_v48  ;;  %v3028_v45 = vadd.f32 %v4274_v10, %v2718_v60  ;;  %v2717_v58 = vadd.f32 %v2636_v29, %v5607_v21 }
 0x205   : > { %v4240_v28 = vpop.f32.mrf.mxu1  ;;  %v2943_v59 = vpop.f32.mrf.mxu0 }
 0x206   : > { %v3716_v12 = vpack.c.bf16 %v3104_v25, %v3103_v34  ;;  %v3102_v57 = vmax.f32 %v3066_v20, 0.0  ;;  %v3026_v9 = vadd.f32 %v2943_v59, %v2716_v19  ;;  %v3071_v6 = vadd.f32 %v5647_v17, %v3028_v45 }
 0x207   : > { %v2649_v5 = vpop.f32.mrf.mxu1  ;;  %v4275_v56 = vpop.f32.mrf.mxu0  ;;  %v2722_v0 = vadd.f32 %v4240_v28, %v5610_v37 }
 0x208   : > { %3766 = vst [vmem:[%s5661_s12 + $0x48] sm:$0xff] %v3716_v12   ;;  %v3711_v49 = vpack.c.bf16 %v3102_v57, %v3101_v47  ;;  %v3029_v63 = vadd.f32 %v4275_v56, %v2719_v53  ;;  %v3069_v52 = vadd.f32 %v5647_v17, %v3026_v9  ;;  %v3107_v38 = vmax.f32 %v3071_v6, 0.0 }
 0x209   : > { %v4241_v23 = vpop.f32.mrf.mxu1  ;;  %v2946_v51 = vpop.f32.mrf.mxu0  ;;  %v2720_v54 = vadd.f32 %v2649_v5, %v5613_v13 }
 0x20a   : > { %3765 = vst [vmem:[%s5661_s12 + $0x40] sm:$0xff] %v3711_v49   ;;  %v3072_v35 = vadd.f32 %v5647_v17, %v3029_v63  ;;  %v3027_v62 = vadd.f32 %v2946_v51, %v2717_v58  ;;  %v3105_v3 = vmax.f32 %v3069_v52, 0.0  ;;  %v2723_v37 = vadd.f32 %v4241_v23, %v5616_v22 }
 0x20b   : > { %v2652_v42 = vpop.f32.mrf.mxu1  ;;  %v4278_v30 = vpop.f32.mrf.mxu0 }
 0x20c   : > { %v3108_v26 = vmax.f32 %v3072_v35, 0.0  ;;  %v3070_v21 = vadd.f32 %v5647_v17, %v3027_v62  ;;  %v3032_v46 = vadd.f32 %v4278_v30, %v2722_v0  ;;  %v2721_v39 = vadd.f32 %v2652_v42, %v5619_v14 }
 0x20d   : > { %v4244_v50 = vpop.f32.mrf.mxu1  ;;  %v2959_v1 = vpop.f32.mrf.mxu0 }
 0x20e   : > { %v3726_v16 = vpack.c.bf16 %v3108_v26, %v3107_v38  ;;  %v3106_v43 = vmax.f32 %v3070_v21, 0.0  ;;  %v3030_v24 = vadd.f32 %v2959_v1, %v2720_v54  ;;  %v3075_v18 = vadd.f32 %v5647_v17, %v3032_v46 }
 0x20f   : > { %v2665_v32 = vpop.f32.mrf.mxu1  ;;  %v4279_v61 = vpop.f32.mrf.mxu0  ;;  %v2726_v2 = vadd.f32 %v4244_v50, %v5622_v8 }
 0x210   : > { %3768 = vst [vmem:[%s5661_s12 + $0x58] sm:$0xff] %v3726_v16   ;;  %v3721_v40 = vpack.c.bf16 %v3106_v43, %v3105_v3  ;;  %v3033_v33 = vadd.f32 %v4279_v61, %v2723_v37  ;;  %v3073_v60 = vadd.f32 %v5647_v17, %v3030_v24  ;;  %v3111_v29 = vmax.f32 %v3075_v18, 0.0 }
 0x211   : > { %v4245_v41 = vpop.f32.mrf.mxu1  ;;  %v2962_v13 = vpop.f32.mrf.mxu0  ;;  %v2724_v25 = vadd.f32 %v2665_v32, %v5625_v15 }
 0x212   : > { %3767 = vst [vmem:[%s5661_s12 + $0x50] sm:$0xff] %v3721_v40   ;;  %v3076_v22 = vadd.f32 %v5647_v17, %v3033_v33  ;;  %v3031_v44 = vadd.f32 %v2962_v13, %v2721_v39  ;;  %v3109_v19 = vmax.f32 %v3073_v60, 0.0  ;;  %v2727_v8 = vadd.f32 %v4245_v41, %v5628_v7 }
 0x213   : > { %v2668_v36 = vpop.f32.mrf.mxu1  ;;  %v4282_v48 = vpop.f32.mrf.mxu0 }
 0x214   : > { %v3112_v10 = vmax.f32 %v3076_v22, 0.0  ;;  %v3074_v14 = vadd.f32 %v5647_v17, %v3031_v44  ;;  %v3036_v34 = vadd.f32 %v4282_v48, %v2726_v2  ;;  %v2725_v5 = vadd.f32 %v2668_v36, %v5631_v27 }
 0x215   : > { %v4248_v20 = vpop.f32.mrf.mxu1  ;;  %v2975_v45 = vpop.f32.mrf.mxu0 }
 0x216   : > { %v3736_v28 = vpack.c.bf16 %v3112_v10, %v3111_v29  ;;  %v3110_v59 = vmax.f32 %v3074_v14, 0.0  ;;  %v3079_v47 = vadd.f32 %v5647_v17, %v3036_v34  ;;  %v3034_v12 = vadd.f32 %v2975_v45, %v2724_v25 }
 0x217   : > { %v2681_v53 = vpop.f32.mrf.mxu1  ;;  %v4283_v57 = vpop.f32.mrf.mxu0  ;;  %v2730_v49 = vadd.f32 %v4248_v20, %v5634_v11 }
 0x218   : > { %3770 = vst [vmem:[%s5661_s12 + $0x68] sm:$0xff] %v3736_v28   ;;  %v3731_v9 = vpack.c.bf16 %v3110_v59, %v3109_v19  ;;  %v3037_v56 = vadd.f32 %v4283_v57, %v2727_v8  ;;  %v3077_v6 = vadd.f32 %v5647_v17, %v3034_v12  ;;  %v3115_v23 = vmax.f32 %v3079_v47, 0.0 }
 0x219   : > { %v4249_v58 = vpop.f32.mrf.mxu1  ;;  %v2978_v15 = vpop.f32.mrf.mxu0  ;;  %v2728_v0 = vadd.f32 %v2681_v53, %v5636_v55 }
 0x21a   : > { %3769 = vst [vmem:[%s5661_s12 + $0x60] sm:$0xff] %v3731_v9   ;;  %v3080_v7 = vadd.f32 %v5647_v17, %v3037_v56  ;;  %v3035_v63 = vadd.f32 %v2978_v15, %v2725_v5  ;;  %v2731_v62 = vadd.f32 %v4249_v58, %v5638_v4  ;;  %v3113_v11 = vmax.f32 %v3077_v6, 0.0 }
 0x21b   : > { %v4286_v51 = vpop.f32.mrf.mxu0  ;;  %v2684_v42 = vpop.f32.mrf.mxu1 }
 0x21c   : > { %v3116_v52 = vmax.f32 %v3080_v7, 0.0  ;;  %v3078_v27 = vadd.f32 %v5647_v17, %v3035_v63  ;;  %v3040_v35 = vadd.f32 %v4286_v51, %v2730_v49  ;;  %v2729_v54 = vadd.f32 %v2684_v42, %v5641_v31 }
 0x21d   : > { %v2991_v30 = vpop.f32.mrf.mxu0 }
 0x21e   : > { %v3746_v38 = vpack.c.bf16 %v3116_v52, %v3115_v23  ;;  %v3114_v26 = vmax.f32 %v3078_v27, 0.0  ;;  %v3038_v21 = vadd.f32 %v2991_v30, %v2728_v0  ;;  %v3083_v55 = vadd.f32 %v5647_v17, %v3040_v35 }
 0x21f   : > { %v4287_v46 = vpop.f32.mrf.mxu0 }
 0x220   : > { %3772 = vst [vmem:[%s5661_s12 + $0x78] sm:$0xff] %v3746_v38   ;;  %v3741_v50 = vpack.c.bf16 %v3114_v26, %v3113_v11  ;;  %v3041_v1 = vadd.f32 %v4287_v46, %v2731_v62  ;;  %v3081_v4 = vadd.f32 %v5647_v17, %v3038_v21  ;;  %v3119_v43 = vmax.f32 %v3083_v55, 0.0 }
 0x221   : > { %v2994_v3 = vpop.f32.mrf.mxu0 }
 0x222   : > { %3771 = vst [vmem:[%s5661_s12 + $0x70] sm:$0xff] %v3741_v50   ;;  %v3084_v37 = vadd.f32 %v5647_v17, %v3041_v1  ;;  %v3039_v16 = vadd.f32 %v2994_v3, %v2729_v54  ;;  %v3117_v61 = vmax.f32 %v3081_v4, 0.0 }
 0x224   : > { %v3120_v32 = vmax.f32 %v3084_v37, 0.0  ;;  %v3082_v24 = vadd.f32 %v5647_v17, %v3039_v16 }
 0x226   : > { %v3756_v39 = vpack.c.bf16 %v3120_v32, %v3119_v43  ;;  %v3118_v40 = vmax.f32 %v3082_v24, 0.0 }
 0x228   : > { %3774 = vst [vmem:[%s5661_s12 + $0x88] sm:$0xff] %v3756_v39   ;;  %v3751_v31 = vpack.c.bf16 %v3118_v40, %v3117_v61 }
 0x22a   : > { %3773 = vst [vmem:[%s5661_s12 + $0x80] sm:$0xff] %v3751_v31  }
 0x22b PF: > { %s13_s14 = sadd.s32 1, %s4384_s14   ;;  %s5880_s12 = smov %s4380_s13 }
 0x22c   : > { %p10_p5 = scmp.ge.s32.totalorder %s13_s14, 4   ;;  %s5881_s13 = smov %s5883_s15 }
 0x22e   :  { %12 = sbr.rel (!%p10_p5) target bundleno = 2 (0x2), region = 70 }

// kernel: upsample_forward.3
= control target key start
LH: loop header
LB: loop body
LE: loop exit
PB: predicated region body
PF: predicated region fallthrough
CT: control target
= control target key end

     0   :  { %s5047_s18 = smov 0   ;;  %s5049_s19 = smov 0   ;;  %s6586_s0 = inlined_call_operand.vmem [shape: bf16[2,1,342,128], index: 0, kind: input, shape index: {}]   ;;  %s6587_s1 = inlined_call_operand.vmem [shape: bf16[9,128,8], index: 1, kind: input, shape index: {}]   ;;  %s6588_s2 = inlined_call_operand.vmem [shape: f32[1,8], index: 2, kind: input, shape index: {}]   ;;  %s6589_s3 = inlined_call_operand.vmem [shape: bf16[8,128], index: 3, kind: input, shape index: {}]   ;;  %s6590_s4 = inlined_call_operand.vmem [shape: f32[1,128], index: 4, kind: input, shape index: {}]   ;;  %s6591_s5 = inlined_call_operand.vmem [shape: f32[2,1,288,128], index: 5, kind: output, shape index: {}]  }
   0x1   :  { %s5051_s20 = smov 0  }
   0x2 LB: > { %s27_s21 = sadd.s32 1, %s5011_s19  ;;  %p3847_p0 = scmp.ge.s32.totalorder %s5015_s20, 1  ;;  %s5015_s20 = sphi %s5051_s20, %s15_s20   ;;  %s5011_s19 = sphi %s5049_s19, %s6671_s19   ;;  %s5007_s18 = sphi %s5047_s18, %s6670_s18  }
   0x3   : > { %p29_p1 = scmp.ge.s32.totalorder %s27_s21, 2  ;;  %p207_p2 = scmp.lt.s32.totalorder %s5015_s20, 3 }
   0x5   : > { %s6673_s21 = smov (%p29_p1, %s27_s21), 0  ;;  %p208_p3 = pnand %p3847_p0, %p207_p2 }
   0x7   : > { %211 = sbr.rel (%p208_p3) target bundleno = 807 (0x327), region = 40 }
   0xc   : > { %v4881_v0 = vld [vmem:[%s6587_s1 + $0x78] sm:$0xff]   ;;  %v4883_v2 = vld [vmem:[%s6587_s1 + $0x70] sm:$0xff]   ;;  %p243_p4 = scmp.lt.s32.totalorder %s5007_s18, 1  ;;  %v4885_v4 = vld [vmem:[%s6587_s1 + $0x68] sm:$0xff]   ;;  %vm396_vm0 = vsmask.f32 7424 }
   0xd   : > { %v4882_v1 = vld [vmem:[%s6587_s1 + $0x38] sm:$0xff]   ;;  %4348 = vmatprep.subr.bf16.mxu0 %v4881_v0  ;;  %v4884_v3 = vld [vmem:[%s6587_s1 + $0x30] sm:$0xff]   ;;  %v4886_v5 = vld [vmem:[%s6587_s1 + $0x28] sm:$0xff]   ;;  %vm1049_vm1 = vcmask 1046528   ;;  %vm1671_vm2 = vsmask.f32 6400 }
   0xe   : > { %4400 = vmatprep.subr.bf16.mxu1 %v4882_v1  ;;  %4349 = vmatpush3.bf16.msra.mxu0 %v4881_v0  ;;  %s6675_s18 = smov (!%p243_p4, %s5007_s18), 1  ;;  %v4887_v6 = vld [vmem:[%s6587_s1 + $0x60] sm:$0xff]   ;;  %v4889_v8 = vld [vmem:[%s6587_s1 + $0x58] sm:$0xff]   ;;  %v4891_v10 = vld [vmem:[%s6587_s1 + $0x50] sm:$0xff]   ;;  %vm2053_vm3 = vcmask 1045504   ;;  %vm3057_vm5 = vcmask 1044480  }
   0xf   : > { %4401 = vmatpush3.bf16.msra.mxu1 %v4882_v1  ;;  %4350 = vmatprep.subr.bf16.mxu0 %v4883_v2  ;;  %v4888_v7 = vld [vmem:[%s6587_s1 + $0x20] sm:$0xff]   ;;  %s4855_s13 = smul.u32 172, %s6675_s18  ;;  %v4890_v9 = vld [vmem:[%s6587_s1 + $0x18] sm:$0xff]   ;;  %v4892_v11 = vld [vmem:[%s6587_s1 + $0x10] sm:$0xff]   ;;  %vm2675_vm4 = vsmask.f32 5376 }
  0x10   : > { %4402 = vmatprep.subr.bf16.mxu1 %v4884_v3  ;;  %v4893_v18 = vld [vmem:[%s6587_s1 + $0x48] sm:$0xff]   ;;  %v4895_v26 = vld [vmem:[%s6587_s1 + $0x40] sm:$0xff]   ;;  %v4900_v34 = vld [vmem:[%s6587_s1 + $0xb8] sm:$0xff]   ;;  %vm3534_vm6 = vcmask 1043456   ;;  %vm3479_vm7 = vcmask 64512   ;;  %s4856_s7 = smul.u32 288, %s6675_s18 }
  0x11   : > { %s5104_s26 = scalar_lea.vmem %s6586_s0, %s4855_s13  ;;  %v4894_v19 = vld [vmem:[%s6587_s1 + $0x8] sm:$0xff]   ;;  %v4896_v27 = vld [vmem:[%s6587_s1] sm:$0xff]   ;;  %v4903_v44 = vld [vmem:[%s6587_s1 + $0xb0] sm:$0xff]  }
  0x12   : > { %4351 = vmatpush3.bf16.msra.mxu0 %v4883_v2  ;;  %v5110_v12 = vld [vmem:[%s5104_s26] sm:$0xff]   ;;  %v5113_v13 = vld [vmem:[%s5104_s26 + $0x8] sm:$0xff]   ;;  %v5120_v17 = vld [vmem:[%s5104_s26 + $0x10] sm:$0xff]   ;;  %s6503_s12 = scalar_lea.vmem %s6591_s5, %s4856_s7 }
  0x13   : > { %4403 = vmatpush3.bf16.msra.mxu1 %v4884_v3  ;;  %4352 = vmatprep.subr.bf16.mxu0 %v4885_v4  ;;  %v398_v14 = vshrl.u32 %v5110_v12, 16  ;;  %v400_v15 = vshll.u32 %v5110_v12, 16  ;;  %v405_v16 = vshll.u32 %v5113_v13, 16  ;;  %v5131_v22 = vld [vmem:[%s5104_s26 + $0x18] sm:$0xff]   ;;  %v409_v24 = vshrl.u32 %v5113_v13, 16  ;;  %v5151_v31 = vld [vmem:[%s5104_s26 + $0x20] sm:$0xff]  }
  0x14   : > { %4404 = vmatprep.subr.bf16.mxu1 %v4886_v5  ;;  %4416 = vmatprep.mubr.bf16.mxu1 %v5110_v12  ;;  %v5135_v25 = vshll.u32 %v5120_v17, 16  ;;  %v5145_v29 = vshrl.u32 %v5120_v17, 16  ;;  %v5148_v30 = vshll.u32 %v5131_v22, 16  ;;  %v5160_v35 = vld [vmem:[%s5104_s26 + $0x28] sm:$0xff]   ;;  %v5165_v38 = vshrl.u32 %v5131_v22, 16  ;;  %v5183_v46 = vld [vmem:[%s5104_s26 + $0x30] sm:$0xff]  }
  0x15   : > { %v402_v20 = vrot.slane %v400_v15, 1  ;;  %v407_v21 = vrot.slane %v405_v16, 1  ;;  %v5168_v39 = vshll.u32 %v5151_v31, 16  ;;  %v5172_v41 = vshrl.u32 %v5151_v31, 16  ;;  %v4906_v48 = vld [vmem:[%s6587_s1 + $0xa8] sm:$0xff]   ;;  %v5194_v51 = vld [vmem:[%s5104_s26 + $0x38] sm:$0xff]  }
  0x16   : > { %4353 = vmatpush3.bf16.msra.mxu0 %v4885_v4  ;;  %v415_v33 = vrot.slane %v5135_v25, 1  ;;  %v423_v37 = vrot.slane %v5148_v30, 1  ;;  %v5175_v42 = vshll.u32 %v5160_v35, 16  ;;  %v4915_v52 = vld [vmem:[%s6587_s1 + $0xf8] sm:$0xff]   ;;  %v5200_v53 = vshll.u32 %v5183_v46, 16  ;;  %v4917_v56 = vld [vmem:[%s6587_s1 + $0xf0] sm:$0xff]  }
  0x17   : > { %4405 = vmatpush3.bf16.msra.mxu1 %v4886_v5  ;;  %4354 = vmatprep.subr.bf16.mxu0 %v4887_v6  ;;  %v403_v23 = vor.u32 %v402_v20, %v398_v14  ;;  %v411_v32 = vor.u32 %v409_v24, %v407_v21  ;;  %v431_v45 = vrot.slane %v5168_v39, 1  ;;  %v5204_v55 = vshrl.u32 %v5160_v35, 16  ;;  %v4909_v60 = vld [vmem:[%s6587_s1 + $0xa0] sm:$0xff]   ;;  %v4920_v0 = vld [vmem:[%s6587_s1 + $0xe8] sm:$0xff]   ;;  %v4912_v4 = vld [vmem:[%s6587_s1 + $0x98] sm:$0xff]  }
  0x18   : > { %4406 = vmatprep.subr.bf16.mxu1 %v4888_v7  ;;  %v419_v36 = vor.u32 %v5145_v29, %v415_v33  ;;  %v427_v47 = vor.u32 %v5165_v38, %v423_v37  ;;  %v439_v50 = vrot.slane %v5175_v42, 1  ;;  %v5211_v58 = vshrl.u32 %v5183_v46, 16  ;;  %v5221_v62 = vld [vmem:[%s5104_s26 + $0x40] sm:$0xff]   ;;  %v5232_v3 = vld [vmem:[%s5104_s26 + $0x48] sm:$0xff]   ;;  %v5257_v15 = vld [vmem:[%s5104_s26 + $0x50] sm:$0xff]  }
  0x19   : > { %v408_v28 = vsel %vm396_vm0, %v403_v23, %v407_v21  ;;  %v416_v40 = vsel %vm396_vm0, %v411_v32, %v415_v33  ;;  %v435_v49 = vor.u32 %v5172_v41, %v431_v45  ;;  %v5214_v59 = vshll.u32 %v5194_v51, 16  ;;  %v4925_v21 = vld [vmem:[%s6587_s1 + $0xd8] sm:$0xff]   ;;  %v4921_v32 = vld [vmem:[%s6587_s1 + $0x88] sm:$0xff]  }
  0x1a   : > { %4355 = vmatpush3.bf16.msra.mxu0 %v4887_v6  ;;  %4364 = vmatprep.mubr.bf16.mxu0 %v408_v28  ;;  %v424_v43 = vsel %vm396_vm0, %v419_v36, %v423_v37  ;;  %v432_v54 = vsel %vm396_vm0, %v427_v47, %v431_v45  ;;  %v447_v61 = vrot.slane %v5200_v53, 1  ;;  %v443_v63 = vor.u32 %v5204_v55, %v439_v50  ;;  %v5300_v45 = vld [vmem:[%s5104_s26 + $0x60] sm:$0xff]  }
  0x1b   : > { %4407 = vmatpush3.bf16.msra.mxu1 %v4888_v7  ;;  %4356 = vmatprep.subr.bf16.mxu0 %v4889_v8  ;;  %v440_v57 = vsel %vm396_vm0, %v435_v49, %v439_v50  ;;  %v455_v2 = vrot.slane %v5214_v59, 1  ;;  %v1050_v5 = vrot.slane %v5110_v12, 1  ;;  %v5239_v6 = vshll.u32 %v5221_v62, 16  ;;  %v4922_v7 = vld [vmem:[%s6587_s1 + $0xe0] sm:$0xff]   ;;  %v4931_v49 = vld [vmem:[%s6587_s1 + $0xc8] sm:$0xff]  }
  0x1c   : > { %4408 = vmatprep.subr.bf16.mxu1 %v4890_v9  ;;  %v451_v1 = vor.u32 %v5211_v58, %v447_v61  ;;  %v5251_v12 = vshrl.u32 %v5221_v62, 16  ;;  %v5254_v14 = vshll.u32 %v5232_v3, 16  ;;  %v5283_v33 = vshll.u32 %v5257_v15, 16  ;;  %v4928_v47 = vld [vmem:[%s6587_s1 + $0x80] sm:$0xff]  }
  0x1d   : > { %v463_v20 = vrot.slane %v5239_v6, 1  ;;  %v5290_v37 = vshrl.u32 %v5232_v3, 16 }
  0x1e   : > { %4357 = vmatpush3.bf16.msra.mxu0 %v4889_v8  ;;  %v448_v8 = vsel %vm396_vm0, %v443_v63, %v447_v61  ;;  %v471_v28 = vrot.slane %v5254_v14, 1  ;;  %v5326_v61 = vld [vmem:[%s6587_s1 + $0x138] sm:$0xff]   ;;  %v4932_v63 = vld [vmem:[%s6587_s1 + $0xc0] sm:$0xff]  }
  0x1f   : > { %4409 = vmatpush3.bf16.msra.mxu1 %v4890_v9  ;;  %4358 = vmatprep.subr.bf16.mxu0 %v4891_v10  ;;  %v5246_v9 = vshrl.u32 %v5194_v51, 16 }
  0x20   : > { %4410 = vmatprep.subr.bf16.mxu1 %v4892_v11  ;;  %v475_v50 = vor.u32 %v5290_v37, %v471_v28 }
  0x21   : > { %v459_v23 = vor.u32 %v5246_v9, %v455_v2 }
  0x22   : > { %4359 = vmatpush3.bf16.msra.mxu0 %v4891_v10  ;;  %v6592_v10 = vrot.slane %v5113_v13, 1 }
  0x23   : > { %4411 = vmatpush3.bf16.msra.mxu1 %v4892_v11  ;;  %4360 = vmatprep.subr.bf16.mxu0 %v4893_v18  ;;  %v456_v11 = vsel %vm396_vm0, %v451_v1, %v455_v2  ;;  %v464_v36 = vsel %vm396_vm0, %v459_v23, %v463_v20 }
  0x24   : > { %4412 = vmatprep.subr.bf16.mxu1 %v4894_v19 }
  0x26   : > { %4361 = vmatpush3.bf16.msra.mxu0 %v4893_v18  ;;  %v4916_v18 = vld [vmem:[%s6587_s1 + $0x90] sm:$0xff]  }
  0x27   : > { %4413 = vmatpush3.bf16.msra.mxu1 %v4894_v19  ;;  %4362 = vmatprep.subr.bf16.mxu0 %v4895_v26  ;;  %v5265_v19 = vsel %vm1049_vm1, %v1050_v5, %v6592_v10  ;;  %v5340_v5 = vshrl.u32 %v5300_v45, 16 }
  0x28   : > { %4414 = vmatprep.subr.bf16.mxu1 %v4896_v27 }
  0x2a   : > { %4363 = vmatpush3.bf16.msra.mxu0 %v4895_v26  ;;  %v5274_v26 = vld [vmem:[%s5104_s26 + $0x58] sm:$0xff]  }
  0x2b   : > { %4415 = vmatpush3.bf16.msra.mxu1 %v4896_v27  ;;  %4452 = vmatprep.subr.bf16.mxu0 %v4900_v34  ;;  %v467_v27 = vor.u32 %v5251_v12, %v463_v20  ;;  %v5333_v1 = vshrl.u32 %v5274_v26, 16  ;;  %v5355_v20 = vld [vmem:[%s6587_s1 + $0x178] sm:$0xff]  }
  0x2c   : > { %4504 = vmatprep.subr.bf16.mxu1 %v4915_v52 }
  0x2d   : > { %4365 = vmatmul.mubr.bf16.vlgmr.msra.gmra.mxu0 %v416_v40  ;;  %v5293_v40 = vshll.u32 %v5274_v26, 16 }
  0x2e   : > { %4417 = vmatmul.mubr.bf16.vlgmr.msra.gmra.mxu1 %v5113_v13  ;;  %4453 = vmatpush3.bf16.msra.mxu0 %v4900_v34  ;;  %v4926_v34 = vld [vmem:[%s6587_s1 + $0xd0] sm:$0xff]  }
  0x2f   : > { %4368 = vmatprep.mubr.bf16.mxu0 %v424_v43  ;;  %4420 = vmatprep.mubr.bf16.mxu1 %v5120_v17  ;;  %v472_v43 = vsel %vm396_vm0, %v467_v27, %v471_v28 }
  0x30   : > { %4454 = vmatprep.subr.bf16.mxu0 %v4903_v44  ;;  %4505 = vmatpush3.bf16.msra.mxu1 %v4915_v52  ;;  %v487_v52 = vrot.slane %v5293_v40, 1 }
  0x31   : > { %4506 = vmatprep.subr.bf16.mxu1 %v4917_v56 }
  0x32   : > { %4455 = vmatpush3.bf16.msra.mxu0 %v4903_v44  ;;  %v5297_v44 = vshrl.u32 %v5257_v15, 16  ;;  %v491_v27 = vor.u32 %v5333_v1, %v487_v52 }
  0x33   : > { %4456 = vmatprep.subr.bf16.mxu0 %v4906_v48 }
  0x34   : > { %4507 = vmatpush3.bf16.msra.mxu1 %v4917_v56 }
  0x35   : > { %4369 = vmatmul.mubr.bf16.gmra.mxu0 %v432_v54  ;;  %4508 = vmatprep.subr.bf16.mxu1 %v4920_v0  ;;  %v5313_v54 = vld [vmem:[%s5104_s26 + $0x68] sm:$0xff]  }
  0x36   : > { %4421 = vmatmul.mubr.bf16.gmra.mxu1 %v5131_v22  ;;  %4372 = vmatprep.mubr.bf16.mxu0 %v440_v57  ;;  %v5318_v57 = vld [vmem:[%s5104_s26 + $0x90] sm:$0xf]  ;;  %v5336_v2 = vshll.u32 %v5313_v54, 16 }
  0x37   : > { %4424 = vmatprep.mubr.bf16.mxu1 %v5151_v31  ;;  %4457 = vmatpush3.bf16.msra.mxu0 %v4906_v48  ;;  %v479_v48 = vrot.slane %v5283_v33, 1 }
  0x38   : > { %4458 = vmatprep.subr.bf16.mxu0 %v4909_v60  ;;  %4509 = vmatpush3.bf16.msra.mxu1 %v4920_v0  ;;  %6618 = vst [vmem:[#allocation2_spill] sm:$0xff] %v5336_v2  ;;  %v503_v28 = vrot.slane %v5336_v2, 1 }
  0x39   : > { %4510 = vmatprep.subr.bf16.mxu1 %v4922_v7  ;;  %v483_v56 = vor.u32 %v5297_v44, %v479_v48  ;;  %v480_v0 = vsel %vm396_vm0, %v475_v50, %v479_v48  ;;  %v5386_v50 = vshrl.u32 %v5313_v54, 16 }
  0x3b   : > { %4459 = vmatpush3.bf16.msra.mxu0 %v4909_v60  ;;  %v5321_v60 = vshll.u32 %v5300_v45, 16  ;;  %6621 = vst [vmem:[#allocation5_spill] sm:$0xff] %v5386_v50 }
  0x3c   : > { %4460 = vmatprep.subr.bf16.mxu0 %v4912_v4  ;;  %4511 = vmatpush3.bf16.msra.mxu1 %v4922_v7  ;;  %v5343_v7 = vld [vmem:[%s5104_s26 + $0x70] sm:$0xff]  }
  0x3d   : > { %4373 = vmatmul.mubr.bf16.gmra.mxu0 %v448_v8  ;;  %4512 = vmatprep.subr.bf16.mxu1 %v4925_v21  ;;  %v5346_v8 = vld [vmem:[%s5104_s26 + $0x88] sm:$0xff]   ;;  %v5381_v48 = vshll.u32 %v5343_v7, 16 }
  0x3e   : > { %4425 = vmatmul.mubr.bf16.gmra.mxu1 %v5160_v35  ;;  %4376 = vmatprep.mubr.bf16.mxu0 %v456_v11  ;;  %6619 = vst [vmem:[#allocation3_spill] sm:$0xff] %v5346_v8  ;;  %v3868_v11 = vcombine.low %v5318_v57, %v5318_v57 }
  0x3f   : > { %4428 = vmatprep.mubr.bf16.mxu1 %v5183_v46  ;;  %4461 = vmatpush3.bf16.msra.mxu0 %v4912_v4  ;;  %v488_v4 = vsel %vm396_vm0, %v483_v56, %v487_v52  ;;  %6620 = vst [vmem:[#allocation4_spill] sm:$0xff] %v5381_v48  ;;  %v5392_v56 = vshrl.u32 %v5343_v7, 16 }
  0x40   : > { %4462 = vmatprep.subr.bf16.mxu0 %v4916_v18  ;;  %4513 = vmatpush3.bf16.msra.mxu1 %v4925_v21  ;;  %v5358_v21 = vrot.slane %v5346_v8, 1  ;;  %v1085_v23 = vrot.slane %v3868_v11, 1 }
  0x41   : > { %4514 = vmatprep.subr.bf16.mxu1 %v4926_v34  ;;  %6622 = vst [vmem:[#allocation6_spill] sm:$0xff] %v5392_v56 }
  0x43   : > { %4463 = vmatpush3.bf16.msra.mxu0 %v4916_v18  ;;  %v495_v18 = vrot.slane %v5321_v60, 1 }
  0x44   : > { %4464 = vmatprep.subr.bf16.mxu0 %v4921_v32  ;;  %4515 = vmatpush3.bf16.msra.mxu1 %v4926_v34  ;;  %v5366_v34 = vld [vmem:[%s5104_s26 + $0x78] sm:$0xff]  }
  0x45   : > { %4377 = vmatmul.mubr.bf16.gmra.mxu0 %v464_v36  ;;  %4516 = vmatprep.subr.bf16.mxu1 %v4931_v49  ;;  %v5370_v36 = vsel %vm1049_vm1, %v5358_v21, %v1085_v23 }
  0x46   : > { %4429 = vmatmul.mubr.bf16.gmra.mxu1 %v5194_v51  ;;  %4380 = vmatprep.mubr.bf16.mxu0 %v472_v43  ;;  %v5374_v43 = vrot.slane %v409_v24, 1 }
  0x47   : > { %4432 = vmatprep.mubr.bf16.mxu1 %v5221_v62  ;;  %4465 = vmatpush3.bf16.msra.mxu0 %v4921_v32  ;;  %v499_v32 = vor.u32 %v5340_v5, %v495_v18 }
  0x48   : > { %4466 = vmatprep.subr.bf16.mxu0 %v4928_v47  ;;  %4517 = vmatpush3.bf16.msra.mxu1 %v4931_v49  ;;  %v496_v49 = vsel %vm396_vm0, %v491_v27, %v495_v18 }
  0x49   : > { %4518 = vmatprep.subr.bf16.mxu1 %v4932_v63  ;;  %v504_v24 = vsel %vm396_vm0, %v499_v32, %v503_v28 }
  0x4b   : > { %4467 = vmatpush3.bf16.msra.mxu0 %v4928_v47  ;;  %v5378_v47 = vrot.slane %v405_v16, 2  ;;  %v5395_v16 = vshll.u32 %v5366_v34, 16 }
  0x4c   : > { %4556 = vmatprep.subr.bf16.mxu0 %v5326_v61  ;;  %4519 = vmatpush3.bf16.msra.mxu1 %v4932_v63  ;;  %v511_v63 = vrot.slane %v5381_v48, 1  ;;  %v5428_v48 = vshrl.u32 %v5346_v8, 16 }
  0x4d   : > { %4381 = vmatmul.mubr.bf16.gmra.mxu0 %v480_v0  ;;  %4608 = vmatprep.subr.bf16.mxu1 %v5355_v20  ;;  %6623 = vst [vmem:[#allocation7_spill] sm:$0xff] %v5395_v16  ;;  %v5399_v0 = vld [vmem:[%s5104_s26 + $0x80] sm:$0xff]   ;;  %v519_v23 = vrot.slane %v5395_v16, 1 }
  0x4e   : > { %4433 = vmatmul.mubr.bf16.gmra.mxu1 %v5232_v3  ;;  %4384 = vmatprep.mubr.bf16.mxu0 %v488_v4  ;;  %v507_v4 = vor.u32 %v5386_v50, %v503_v28  ;;  %v515_v18 = vor.u32 %v5392_v56, %v511_v63  ;;  %v5407_v27 = vshll.u32 %v5399_v0, 16  ;;  %v5418_v28 = vshll.u32 %v5346_v8, 16  ;;  %6628 = vst [vmem:[#allocation12_spill] sm:$0xff] %v5428_v48 }
  0x4f   : > { %4436 = vmatprep.mubr.bf16.mxu1 %v5257_v15  ;;  %v541_v56 = vshll.u32 %v3868_v11, 16 }
  0x50   : > { %6624 = vst [vmem:[#allocation8_spill] sm:$0xff] %v5407_v27  ;;  %v512_v32 = vsel %vm396_vm0, %v507_v4, %v511_v63  ;;  %v520_v52 = vsel %vm396_vm0, %v515_v18, %v519_v23  ;;  %6627 = vst [vmem:[#allocation11_spill] sm:$0xff] %v5418_v28  ;;  %v527_v10 = vrot.slane %v5407_v27, 1  ;;  %v535_v4 = vrot.slane %v5418_v28, 1 }
  0x51   : > { %v1053_v28 = vrot.slane %v5120_v17, 1 }
  0x55   : > { %4385 = vmatmul.mubr.bf16.gmra.mxu0 %v496_v49  ;;  %v5411_v49 = vshrl.u32 %v5366_v34, 16 }
  0x56   : > { %4437 = vmatmul.mubr.bf16.gmra.mxu1 %v5274_v26  ;;  %4388 = vmatprep.mubr.bf16.mxu0 %v504_v24  ;;  %v5415_v24 = vshrl.u32 %v5399_v0, 16 }
  0x57   : > { %4440 = vmatprep.mubr.bf16.mxu1 %v5300_v45  ;;  %6625 = vst [vmem:[#allocation9_spill] sm:$0xff] %v5411_v49  ;;  %v523_v16 = vor.u32 %v5411_v49, %v519_v23  ;;  %v543_v23 = vrot.slane %v541_v56, 1  ;;  %v1057_v56 = vrot.slane %v5151_v31, 1 }
  0x58   : > { %6626 = vst [vmem:[#allocation10_spill] sm:$0xff] %v5415_v24  ;;  %v531_v63 = vor.u32 %v5415_v24, %v527_v10 }
  0x59   : > { %v528_v18 = vsel %vm396_vm0, %v523_v16, %v527_v10  ;;  %v6629_v16 = vrot.slane %v5113_v13, 1 }
  0x5b   : > { %v1054_v11 = vsel %vm1049_vm1, %v6629_v16, %v1053_v28 }
  0x5d   : > { %4389 = vmatmul.mubr.bf16.gmra.mxu0 %v512_v32  ;;  %v536_v32 = vsel %vm396_vm0, %v531_v63, %v535_v4  ;;  %v1055_v63 = vrot.slane %v5131_v22, 1 }
  0x5e   : > { %4441 = vmatmul.mubr.bf16.gmra.mxu1 %v5313_v54  ;;  %4392 = vmatprep.mubr.bf16.mxu0 %v520_v52  ;;  %v539_v52 = vor.u32 %v5428_v48, %v535_v4  ;;  %v299_v4 = vld [vmem:[%s5104_s26 + $0x94] sm:$0xf]  ;;  %v4941_v48 = vld [vmem:[%s6587_s1 + $0x168] sm:$0xff]  }
  0x5f   : > { %4444 = vmatprep.mubr.bf16.mxu1 %v5343_v7 }
  0x60   : > { %v544_v10 = vsel %vm396_vm0, %v539_v52, %v543_v23  ;;  %v5447_v52 = vcombine.low %v5318_v57, %v299_v4  ;;  %v1058_v23 = vsel %vm1049_vm1, %v1055_v63, %v1057_v56 }
  0x65   : > { %4393 = vmatmul.mubr.bf16.gmra.mxu0 %v528_v18  ;;  %v300_v18 = vld [vmem:[%s5104_s26 + $0x98] sm:$0xf] }
  0x66   : > { %4445 = vmatmul.mubr.bf16.gmra.mxu1 %v5366_v34  ;;  %4396 = vmatprep.mubr.bf16.mxu0 %v536_v32  ;;  %v1056_v32 = vsel %vm1049_vm1, %v1053_v28, %v1055_v63  ;;  %v5456_v16 = vcombine.low %v300_v18, %v300_v18  ;;  %v6614_v28 = vshrl.u32 %v5447_v52, 16  ;;  %v1059_v63 = vrot.slane %v5160_v35, 1 }
  0x67   : > { %4448 = vmatprep.mubr.bf16.mxu1 %v5399_v0 }
  0x68   : > { %v1749_v4 = vshrl.u32 %v5456_v16, 16  ;;  %v1752_v18 = vshll.u32 %v5456_v16, 16  ;;  %v1742_v57 = vrot.slane %v6614_v28, 1  ;;  %v1060_v2 = vsel %vm1049_vm1, %v1057_v56, %v1059_v63  ;;  %v4937_v56 = vld [vmem:[%s6587_s1 + $0x118] sm:$0xff]  }
  0x6a   : > { %v1751_v27 = vrot.slane %v1749_v4, 1  ;;  %v1754_v24 = vrot.slane %v1752_v18, 2  ;;  %v4942_v4 = vld [vmem:[%s6587_s1 + $0x108] sm:$0xff]  }
  0x6d   : > { %4397 = vmatmul.mubr.bf16.gmra.mxu0 %v544_v10  ;;  %v4934_v10 = vld [vmem:[%s6587_s1 + $0x130] sm:$0xff]  }
  0x6e   : > { %4449 = vmatmul.mubr.bf16.gmra.mxu1 %v5346_v8  ;;  %4468 = vmatprep.mubr.bf16.mxu0 %v5265_v19  ;;  %v4940_v19 = vld [vmem:[%s6587_s1 + $0x170] sm:$0xff]  }
  0x6f   : > { %4520 = vmatprep.mubr.bf16.mxu1 %v1054_v11 }
  0x75   : > { %4469 = vmatmul.mubr.bf16.vlgmr.msra.gmra.mxu0 %v1054_v11  ;;  %v4935_v11 = vld [vmem:[%s6587_s1 + $0x128] sm:$0xff]  }
  0x76   : > { %4557 = vmatpush3.bf16.msra.mxu0 %v5326_v61  ;;  %4521 = vmatmul.mubr.bf16.vlgmr.msra.gmra.mxu1 %v1056_v32  ;;  %v1061_v61 = vrot.slane %v5183_v46, 1 }
  0x77   : > { %4472 = vmatprep.mubr.bf16.mxu0 %v1056_v32  ;;  %4524 = vmatprep.mubr.bf16.mxu1 %v1058_v23  ;;  %v6630_v32 = vshll.u32 %v5447_v52, 16 }
  0x78   : > { %4558 = vmatprep.subr.bf16.mxu0 %v4934_v10  ;;  %4609 = vmatpush3.bf16.msra.mxu1 %v5355_v20  ;;  %v1755_v20 = vor.u32 %v1754_v24, %v1751_v27  ;;  %v1062_v50 = vsel %vm1049_vm1, %v1059_v63, %v1061_v61  ;;  %v1063_v27 = vrot.slane %v5194_v51, 1  ;;  %v1065_v24 = vrot.slane %v5221_v62, 1 }
  0x79   : > { %v1745_v8 = vrot.slane %v6630_v32, 2  ;;  %4610 = vmatprep.subr.bf16.mxu1 %v4940_v19  ;;  %v4936_v32 = vld [vmem:[%s6587_s1 + $0x120] sm:$0xff]   ;;  %v1067_v63 = vrot.slane %v5232_v3, 1 }
  0x7a   : > { %4559 = vmatpush3.bf16.msra.mxu0 %v4934_v10  ;;  %v4943_v10 = vld [vmem:[%s6587_s1 + $0x160] sm:$0xff]  }
  0x7b   : > { %v5476_v49 = vor.u32 %v1745_v8, %v1742_v57  ;;  %4560 = vmatprep.subr.bf16.mxu0 %v4935_v11  ;;  %v4939_v57 = vld [vmem:[%s6587_s1 + $0x110] sm:$0xff]   ;;  %v1068_v18 = vsel %vm1049_vm1, %v1065_v24, %v1067_v63 }
  0x7c   : > { %4611 = vmatpush3.bf16.msra.mxu1 %v4940_v19  ;;  %v1064_v19 = vsel %vm1049_vm1, %v1061_v61, %v1063_v27 }
  0x7d   : > { %4473 = vmatmul.mubr.bf16.gmra.mxu0 %v1058_v23  ;;  %4612 = vmatprep.subr.bf16.mxu1 %v4941_v48  ;;  %v5488_v8 = vsel %vm1671_vm2, %v5476_v49, %v1755_v20  ;;  %v4944_v23 = vld [vmem:[%s6587_s1 + $0x158] sm:$0xff]   ;;  %v4946_v20 = vld [vmem:[%s6587_s1 + $0x100] sm:$0xff]  }
  0x7e   : > { %4525 = vmatmul.mubr.bf16.gmra.mxu1 %v1060_v2  ;;  %4476 = vmatprep.mubr.bf16.mxu0 %v1060_v2  ;;  %v1066_v2 = vsel %vm1049_vm1, %v1063_v27, %v1065_v24  ;;  %v1073_v27 = vrot.slane %v5300_v45, 1  ;;  %v5527_v24 = vld [vmem:[%s6587_s1 + $0x1b8] sm:$0xff]  }
  0x7f   : > { %4528 = vmatprep.mubr.bf16.mxu1 %v1062_v50  ;;  %4561 = vmatpush3.bf16.msra.mxu0 %v4935_v11  ;;  %v1069_v11 = vrot.slane %v5257_v15, 1 }
  0x80   : > { %4562 = vmatprep.subr.bf16.mxu0 %v4936_v32  ;;  %4613 = vmatpush3.bf16.msra.mxu1 %v4941_v48  ;;  %v4945_v48 = vld [vmem:[%s6587_s1 + $0x150] sm:$0xff]  }
  0x81   : > { %4614 = vmatprep.subr.bf16.mxu1 %v4943_v10  ;;  %v1070_v61 = vsel %vm1049_vm1, %v1067_v63, %v1069_v11 }
  0x83   : > { %4563 = vmatpush3.bf16.msra.mxu0 %v4936_v32  ;;  %v4949_v32 = vld [vmem:[%s6587_s1 + $0x140] sm:$0xff]  }
  0x84   : > { %4564 = vmatprep.subr.bf16.mxu0 %v4937_v56  ;;  %4615 = vmatpush3.bf16.msra.mxu1 %v4943_v10  ;;  %v1071_v10 = vrot.slane %v5274_v26, 1 }
  0x85   : > { %4477 = vmatmul.mubr.bf16.gmra.mxu0 %v1062_v50  ;;  %4616 = vmatprep.subr.bf16.mxu1 %v4944_v23  ;;  %v4948_v50 = vld [vmem:[%s6587_s1 + $0x148] sm:$0xff]  }
  0x86   : > { %4529 = vmatmul.mubr.bf16.gmra.mxu1 %v1064_v19  ;;  %4480 = vmatprep.mubr.bf16.mxu0 %v1064_v19  ;;  %v1074_v19 = vsel %vm1049_vm1, %v1071_v10, %v1073_v27 }
  0x87   : > { %4532 = vmatprep.mubr.bf16.mxu1 %v1066_v2  ;;  %4565 = vmatpush3.bf16.msra.mxu0 %v4937_v56  ;;  %v5532_v56 = vld [vmem:[%s6587_s1 + $0x1f8] sm:$0xff]  }
  0x88   : > { %4566 = vmatprep.subr.bf16.mxu0 %v4939_v57  ;;  %4617 = vmatpush3.bf16.msra.mxu1 %v4944_v23  ;;  %v1072_v23 = vsel %vm1049_vm1, %v1069_v11, %v1071_v10  ;;  %v1079_v11 = vrot.slane %v5366_v34, 1  ;;  %v1676_v10 = vrot.slane %v5135_v25, 2 }
  0x89   : > { %4618 = vmatprep.subr.bf16.mxu1 %v4945_v48 }
  0x8b   : > { %4567 = vmatpush3.bf16.msra.mxu0 %v4939_v57  ;;  %v1077_v57 = vrot.slane %v5343_v7, 1 }
  0x8c   : > { %4568 = vmatprep.subr.bf16.mxu0 %v4942_v4  ;;  %4619 = vmatpush3.bf16.msra.mxu1 %v4945_v48 }
  0x8d   : > { %4481 = vmatmul.mubr.bf16.gmra.mxu0 %v1066_v2  ;;  %4620 = vmatprep.subr.bf16.mxu1 %v4948_v50  ;;  %v1075_v2 = vrot.slane %v5313_v54, 1 }
  0x8e   : > { %4533 = vmatmul.mubr.bf16.gmra.mxu1 %v1068_v18  ;;  %4484 = vmatprep.mubr.bf16.mxu0 %v1068_v18 }
  0x8f   : > { %4536 = vmatprep.mubr.bf16.mxu1 %v1070_v61  ;;  %4569 = vmatpush3.bf16.msra.mxu0 %v4942_v4  ;;  %v1076_v48 = vsel %vm1049_vm1, %v1073_v27, %v1075_v2  ;;  %v1078_v63 = vsel %vm1049_vm1, %v1075_v2, %v1077_v57  ;;  %v1081_v4 = vrot.slane %v5399_v0, 1  ;;  %v2054_v2 = vrot.slane %v5113_v13, 2 }
  0x90   : > { %4570 = vmatprep.subr.bf16.mxu0 %v4946_v20  ;;  %4621 = vmatpush3.bf16.msra.mxu1 %v4948_v50  ;;  %v1080_v50 = vsel %vm1049_vm1, %v1077_v57, %v1079_v11  ;;  %v2055_v57 = vrot.slane %v5120_v17, 2  ;;  %v1684_v13 = vrot.slane %v5168_v39, 2 }
  0x91   : > { %4622 = vmatprep.subr.bf16.mxu1 %v4949_v32  ;;  %v1082_v18 = vsel %vm1049_vm1, %v1079_v11, %v1081_v4 }
  0x93   : > { %4571 = vmatpush3.bf16.msra.mxu0 %v4946_v20  ;;  %v1084_v20 = vsel %vm1049_vm1, %v1081_v4, %v5358_v21 }
  0x94   : > { %4623 = vmatpush3.bf16.msra.mxu1 %v4949_v32  ;;  %4660 = vmatprep.subr.bf16.mxu0 %v5527_v24  ;;  %v1675_v32 = vrot.slane %v5145_v29, 1 }
  0x95   : > { %4485 = vmatmul.mubr.bf16.gmra.mxu0 %v1070_v61  ;;  %4712 = vmatprep.subr.bf16.mxu1 %v5532_v56  ;;  %v1387_v61 = vrot.slane %v5447_v52, 1 }
  0x96   : > { %4537 = vmatmul.mubr.bf16.gmra.mxu1 %v1072_v23  ;;  %4488 = vmatprep.mubr.bf16.mxu0 %v1072_v23  ;;  %v1389_v23 = vrot.slane %v5456_v16, 1 }
  0x97   : > { %4540 = vmatprep.mubr.bf16.mxu1 %v1074_v19  ;;  %v1388_v27 = vsel %vm1049_vm1, %v5358_v21, %v1387_v61  ;;  %v6631_v21 = vor.u32 %v5378_v47, %v5374_v43  ;;  %v1687_v47 = vrot.slane %v5204_v55, 1 }
  0x98   : > { %v1390_v11 = vsel %vm1049_vm1, %v1387_v61, %v1389_v23  ;;  %v1692_v23 = vrot.slane %v5200_v53, 2 }
  0x9d   : > { %4489 = vmatmul.mubr.bf16.gmra.mxu0 %v1074_v19  ;;  %v1677_v19 = vor.u32 %v1676_v10, %v1675_v32  ;;  %v2059_v32 = vrot.slane %v5151_v31, 2  ;;  %v1688_v10 = vrot.slane %v5175_v42, 2  ;;  %v4951_v31 = vld [vmem:[%s6587_s1 + $0x1b0] sm:$0xff]  }
  0x9e   : > { %4541 = vmatmul.mubr.bf16.gmra.mxu1 %v1076_v48  ;;  %4492 = vmatprep.mubr.bf16.mxu0 %v1076_v48  ;;  %v1679_v48 = vrot.slane %v5165_v38, 1 }
  0x9f   : > { %4544 = vmatprep.mubr.bf16.mxu1 %v1078_v63  ;;  %v1678_v4 = vsel %vm1671_vm2, %v6631_v21, %v1677_v19  ;;  %v2063_v21 = vrot.slane %v5183_v46, 2  ;;  %v1699_v46 = vrot.slane %v5251_v12, 1 }
  0xa5   : > { %4493 = vmatmul.mubr.bf16.gmra.mxu0 %v1078_v63  ;;  %v1680_v63 = vrot.slane %v5148_v30, 2 }
  0xa6   : > { %4545 = vmatmul.mubr.bf16.gmra.mxu1 %v1080_v50  ;;  %4496 = vmatprep.mubr.bf16.mxu0 %v1080_v50  ;;  %v2056_v50 = vsel %vm2053_vm3, %v2054_v2, %v2055_v57 }
  0xa7   : > { %4548 = vmatprep.mubr.bf16.mxu1 %v1082_v18  ;;  %v1681_v17 = vor.u32 %v1680_v63, %v1679_v48  ;;  %v2061_v48 = vrot.slane %v5160_v35, 2  ;;  %v1695_v35 = vrot.slane %v5246_v9, 1 }
  0xa9   : > { %v1682_v43 = vsel %vm1671_vm2, %v1677_v19, %v1681_v17  ;;  %v4957_v19 = vld [vmem:[%s6587_s1 + $0x1f0] sm:$0xff]  }
  0xad   : > { %4497 = vmatmul.mubr.bf16.gmra.mxu0 %v1082_v18  ;;  %v1683_v18 = vrot.slane %v5172_v41, 1 }
  0xae   : > { %4549 = vmatmul.mubr.bf16.gmra.mxu1 %v1084_v20  ;;  %4500 = vmatprep.mubr.bf16.mxu0 %v1084_v20  ;;  %v2057_v20 = vrot.slane %v5131_v22, 2 }
  0xaf   : > { %4552 = vmatprep.mubr.bf16.mxu1 %v1388_v27  ;;  %v1685_v61 = vor.u32 %v1684_v13, %v1683_v18  ;;  %v5603_v18 = vsel %vm2053_vm3, %v2059_v32, %v2061_v48 }
  0xb0   : > { %v5573_v27 = vsel %vm2053_vm3, %v2055_v57, %v2057_v20  ;;  %v5579_v22 = vsel %vm2053_vm3, %v2057_v20, %v2059_v32  ;;  %v1689_v57 = vor.u32 %v1688_v10, %v1687_v47  ;;  %v4953_v20 = vld [vmem:[%s6587_s1 + $0x1a0] sm:$0xff]   ;;  %v2067_v10 = vrot.slane %v5221_v62, 2 }
  0xb1   : > { %v1686_v2 = vsel %vm1671_vm2, %v1681_v17, %v1685_v61  ;;  %v5609_v17 = vsel %vm2053_vm3, %v2061_v48, %v2063_v21  ;;  %v1708_v48 = vrot.slane %v5283_v33, 2 }
  0xb5   : > { %4501 = vmatmul.mubr.bf16.gmra.mxu0 %v5370_v36  ;;  %v1691_v36 = vrot.slane %v5211_v58, 1 }
  0xb6   : > { %4553 = vmatmul.mubr.bf16.gmra.mxu1 %v1390_v11  ;;  %4572 = vmatprep.mubr.bf16.mxu0 %v1678_v4  ;;  %v4952_v11 = vld [vmem:[%s6587_s1 + $0x1a8] sm:$0xff]   ;;  %v1690_v4 = vsel %vm1671_vm2, %v1685_v61, %v1689_v57  ;;  %v4960_v61 = vld [vmem:[%s6587_s1 + $0x1e0] sm:$0xff]  }
  0xb7   : > { %4624 = vmatprep.mubr.bf16.mxu1 %v2056_v50  ;;  %v1693_v63 = vor.u32 %v1692_v23, %v1691_v36  ;;  %v1696_v50 = vrot.slane %v5214_v59, 2  ;;  %v4954_v36 = vld [vmem:[%s6587_s1 + $0x198] sm:$0xff]  }
  0xb8   : > { %v4961_v23 = vld [vmem:[%s6587_s1 + $0x1d8] sm:$0xff]  }
  0xb9   : > { %v1694_v13 = vsel %vm1671_vm2, %v1689_v57, %v1693_v63  ;;  %v1697_v32 = vor.u32 %v1696_v50, %v1695_v35  ;;  %v1707_v57 = vrot.slane %v5297_v44, 1  ;;  %v2071_v50 = vrot.slane %v5257_v15, 2 }
  0xbb   : > { %v1709_v35 = vor.u32 %v1708_v48, %v1707_v57  ;;  %v6632_v48 = vld [vmem:[#allocation5_spill] sm:$0xff] }
  0xbd   : > { %4573 = vmatmul.mubr.bf16.vlgmr.msra.gmra.mxu0 %v1682_v43  ;;  %v2065_v43 = vrot.slane %v5194_v51, 2  ;;  %v1704_v51 = vrot.slane %v5254_v14, 2 }
  0xbe   : > { %4661 = vmatpush3.bf16.msra.mxu0 %v5527_v24  ;;  %4625 = vmatmul.mubr.bf16.vlgmr.msra.gmra.mxu1 %v5573_v27  ;;  %v4958_v24 = vld [vmem:[%s6587_s1 + $0x1e8] sm:$0xff]  }
  0xbf   : > { %4576 = vmatprep.mubr.bf16.mxu0 %v1686_v2  ;;  %4628 = vmatprep.mubr.bf16.mxu1 %v5579_v22  ;;  %v1698_v2 = vsel %vm1671_vm2, %v1693_v63, %v1697_v32  ;;  %v4956_v63 = vld [vmem:[%s6587_s1 + $0x190] sm:$0xff]  }
  0xc0   : > { %4662 = vmatprep.subr.bf16.mxu0 %v4951_v31  ;;  %4713 = vmatpush3.bf16.msra.mxu1 %v5532_v56  ;;  %v1700_v56 = vrot.slane %v5239_v6, 2 }
  0xc1   : > { %4714 = vmatprep.subr.bf16.mxu1 %v4957_v19 }
  0xc2   : > { %4663 = vmatpush3.bf16.msra.mxu0 %v4951_v31  ;;  %v1701_v47 = vor.u32 %v1700_v56, %v1699_v46  ;;  %v1703_v31 = vrot.slane %v5290_v37, 1  ;;  %v4964_v46 = vld [vmem:[%s6587_s1 + $0x1c8] sm:$0xff]  }
  0xc3   : > { %4664 = vmatprep.subr.bf16.mxu0 %v4952_v11 }
  0xc4   : > { %4715 = vmatpush3.bf16.msra.mxu1 %v4957_v19  ;;  %v5631_v19 = vsel %vm2053_vm3, %v2063_v21, %v2065_v43  ;;  %v1702_v62 = vsel %vm1671_vm2, %v1697_v32, %v1701_v47  ;;  %v4962_v21 = vld [vmem:[%s6587_s1 + $0x1d0] sm:$0xff]   ;;  %v1715_v32 = vrot.slane %v5340_v5, 1 }
  0xc5   : > { %4577 = vmatmul.mubr.bf16.gmra.mxu0 %v1690_v4  ;;  %4716 = vmatprep.subr.bf16.mxu1 %v4958_v24  ;;  %v2069_v4 = vrot.slane %v5232_v3, 2  ;;  %v1712_v3 = vrot.slane %v5293_v40, 2 }
  0xc6   : > { %4629 = vmatmul.mubr.bf16.gmra.mxu1 %v5603_v18  ;;  %4580 = vmatprep.mubr.bf16.mxu0 %v1694_v13  ;;  %v4959_v13 = vld [vmem:[%s6587_s1 + $0x188] sm:$0xff]  }
  0xc7   : > { %4632 = vmatprep.mubr.bf16.mxu1 %v5609_v17  ;;  %4665 = vmatpush3.bf16.msra.mxu0 %v4952_v11  ;;  %v5637_v11 = vsel %vm2053_vm3, %v2065_v43, %v2067_v10  ;;  %v1716_v43 = vrot.slane %v5321_v60, 2 }
  0xc8   : > { %4666 = vmatprep.subr.bf16.mxu0 %v4953_v20  ;;  %4717 = vmatpush3.bf16.msra.mxu1 %v4958_v24  ;;  %v1705_v24 = vor.u32 %v1704_v51, %v1703_v31  ;;  %v2075_v51 = vrot.slane %v5300_v45, 2  ;;  %v6634_v45 = vld [vmem:[#allocation6_spill] sm:$0xff] }
  0xc9   : > { %4718 = vmatprep.subr.bf16.mxu1 %v4960_v61  ;;  %v1717_v31 = vor.u32 %v1716_v43, %v1715_v32  ;;  %v6637_v43 = vld [vmem:[#allocation9_spill] sm:$0xff] }
  0xca   : > { %v1706_v56 = vsel %vm1671_vm2, %v1701_v47, %v1705_v24  ;;  %v1710_v15 = vsel %vm1671_vm2, %v1705_v24, %v1709_v35  ;;  %v4963_v47 = vld [vmem:[%s6587_s1 + $0x180] sm:$0xff]  }
  0xcb   : > { %4667 = vmatpush3.bf16.msra.mxu0 %v4953_v20  ;;  %v1711_v20 = vrot.slane %v5333_v1, 1 }
  0xcc   : > { %4668 = vmatprep.subr.bf16.mxu0 %v4954_v36  ;;  %4719 = vmatpush3.bf16.msra.mxu1 %v4960_v61  ;;  %v5659_v61 = vsel %vm2053_vm3, %v2067_v10, %v2069_v4  ;;  %v4965_v10 = vld [vmem:[%s6587_s1 + $0x1c0] sm:$0xff]  }
  0xcd   : > { %4581 = vmatmul.mubr.bf16.gmra.mxu0 %v1698_v2  ;;  %4720 = vmatprep.subr.bf16.mxu1 %v4961_v23  ;;  %v2073_v2 = vrot.slane %v5274_v26, 2 }
  0xce   : > { %4633 = vmatmul.mubr.bf16.gmra.mxu1 %v5631_v19  ;;  %4584 = vmatprep.mubr.bf16.mxu0 %v1702_v62  ;;  %v5680_v62 = vld [vmem:[%s6587_s1 + $0x238] sm:$0xff]  }
  0xcf   : > { %4636 = vmatprep.mubr.bf16.mxu1 %v5637_v11  ;;  %4669 = vmatpush3.bf16.msra.mxu0 %v4954_v36  ;;  %v5665_v36 = vsel %vm2053_vm3, %v2069_v4, %v2071_v50  ;;  %v5686_v26 = vsel %vm2053_vm3, %v2071_v50, %v2073_v2  ;;  %v2077_v50 = vrot.slane %v5313_v54, 2 }
  0xd0   : > { %4670 = vmatprep.subr.bf16.mxu0 %v4956_v63  ;;  %4721 = vmatpush3.bf16.msra.mxu1 %v4961_v23  ;;  %v1713_v23 = vor.u32 %v1712_v3, %v1711_v20  ;;  %v5692_v20 = vsel %vm2053_vm3, %v2073_v2, %v2075_v51 }
  0xd1   : > { %4722 = vmatprep.subr.bf16.mxu1 %v4962_v21  ;;  %6636 = vst [vmem:[#allocation5_spill] sm:$0xff] %v5692_v20  ;;  %v5703_v2 = vsel %vm2053_vm3, %v2075_v51, %v2077_v50 }
  0xd2   : > { %v1714_v57 = vsel %vm1671_vm2, %v1709_v35, %v1713_v23  ;;  %v1718_v4 = vsel %vm1671_vm2, %v1713_v23, %v1717_v31  ;;  %v6638_v23 = vld [vmem:[#allocation7_spill] sm:$0xff] }
  0xd3   : > { %4671 = vmatpush3.bf16.msra.mxu0 %v4956_v63  ;;  %v1719_v63 = vrot.slane %v6632_v48, 1 }
  0xd4   : > { %4672 = vmatprep.subr.bf16.mxu0 %v4959_v13  ;;  %4723 = vmatpush3.bf16.msra.mxu1 %v4962_v21  ;;  %v6633_v21 = vld [vmem:[#allocation2_spill] sm:$0xff] }
  0xd5   : > { %4585 = vmatmul.mubr.bf16.gmra.mxu0 %v1706_v56  ;;  %4724 = vmatprep.subr.bf16.mxu1 %v4964_v46  ;;  %v1720_v24 = vrot.slane %v6633_v21, 2 }
  0xd6   : > { %4637 = vmatmul.mubr.bf16.gmra.mxu1 %v5659_v61  ;;  %4588 = vmatprep.mubr.bf16.mxu0 %v1710_v15  ;;  %v2079_v15 = vrot.slane %v5343_v7, 2 }
  0xd7   : > { %4640 = vmatprep.mubr.bf16.mxu1 %v5665_v36  ;;  %4673 = vmatpush3.bf16.msra.mxu0 %v4959_v13  ;;  %v1723_v13 = vrot.slane %v6634_v45, 1  ;;  %v1721_v35 = vor.u32 %v1720_v24, %v1719_v63  ;;  %v6640_v24 = vld [vmem:[#allocation8_spill] sm:$0xff] }
  0xd8   : > { %4674 = vmatprep.subr.bf16.mxu0 %v4963_v47  ;;  %4725 = vmatpush3.bf16.msra.mxu1 %v4964_v46  ;;  %v6635_v46 = vld [vmem:[#allocation4_spill] sm:$0xff]  ;;  %v1732_v28 = vrot.slane %v6640_v24, 2  ;;  %v5709_v54 = vsel %vm2053_vm3, %v2077_v50, %v2079_v15  ;;  %v6643_v24 = vld [vmem:[#allocation11_spill] sm:$0xff] }
  0xd9   : > { %4726 = vmatprep.subr.bf16.mxu1 %v4965_v10  ;;  %v1724_v56 = vrot.slane %v6635_v46, 2  ;;  %v1722_v32 = vsel %vm1671_vm2, %v1717_v31, %v1721_v35  ;;  %6641 = vst [vmem:[#allocation2_spill] sm:$0xff] %v5709_v54  ;;  %v2081_v31 = vrot.slane %v5366_v34, 2 }
  0xdb   : > { %4675 = vmatpush3.bf16.msra.mxu0 %v4963_v47  ;;  %v1725_v3 = vor.u32 %v1724_v56, %v1723_v13  ;;  %v1727_v47 = vrot.slane %v6637_v43, 1  ;;  %v2083_v13 = vrot.slane %v5399_v0, 2  ;;  %v5719_v50 = vsel %vm2053_vm3, %v2079_v15, %v2081_v31 }
  0xdc   : > { %4727 = vmatpush3.bf16.msra.mxu1 %v4965_v10  ;;  %4764 = vmatprep.subr.bf16.mxu0 %v5680_v62  ;;  %v1728_v10 = vrot.slane %v6638_v23, 2  ;;  %6644 = vst [vmem:[#allocation6_spill] sm:$0xff] %v5719_v50 }
  0xdd   : > { %4589 = vmatmul.mubr.bf16.gmra.mxu0 %v1714_v57  ;;  %v1726_v57 = vsel %vm1671_vm2, %v1721_v35, %v1725_v3  ;;  %v6642_v35 = vld [vmem:[#allocation12_spill] sm:$0xff] }
  0xde   : > { %4641 = vmatmul.mubr.bf16.gmra.mxu1 %v5686_v26  ;;  %4592 = vmatprep.mubr.bf16.mxu0 %v1718_v4  ;;  %v6639_v4 = vld [vmem:[#allocation10_spill] sm:$0xff]  ;;  %v1729_v7 = vor.u32 %v1728_v10, %v1727_v47  ;;  %v5723_v47 = vsel %vm2053_vm3, %v2081_v31, %v2083_v13 }
  0xdf   : > { %4644 = vmatprep.mubr.bf16.mxu1 %v5692_v20  ;;  %v1731_v63 = vrot.slane %v6639_v4, 1  ;;  %v1735_v4 = vrot.slane %v6642_v35, 1  ;;  %v1736_v20 = vrot.slane %v6643_v24, 2 }
  0xe0   : > { %v1730_v56 = vsel %vm1671_vm2, %v1725_v3, %v1729_v7 }
  0xe1   : > { %v1733_v51 = vor.u32 %v1732_v28, %v1731_v63  ;;  %v1737_v0 = vor.u32 %v1736_v20, %v1735_v4  ;;  %v5731_v63 = vrot.slane %v5447_v52, 2 }
  0xe3   : > { %v1738_v24 = vsel %vm1671_vm2, %v1733_v51, %v1737_v0 }
  0xe5   : > { %4593 = vmatmul.mubr.bf16.gmra.mxu0 %v1722_v32  ;;  %v1734_v32 = vsel %vm1671_vm2, %v1729_v7, %v1733_v51  ;;  %v2679_v51 = vrot.slane %v5165_v38, 2 }
  0xe6   : > { %4645 = vmatmul.mubr.bf16.gmra.mxu1 %v5703_v2  ;;  %4596 = vmatprep.mubr.bf16.mxu0 %v1726_v57  ;;  %v6645_v57 = vld [vmem:[#allocation3_spill] sm:$0xff] }
  0xe7   : > { %4648 = vmatprep.mubr.bf16.mxu1 %v5709_v54  ;;  %v2085_v15 = vrot.slane %v6645_v57, 2  ;;  %v2677_v57 = vrot.slane %v5135_v25, 3 }
  0xe9   : > { %v5739_v4 = vsel %vm2053_vm3, %v2083_v13, %v2085_v15 }
  0xed   : > { %v4366_v10 = vpop.f32.mrf.mxu0  ;;  %4597 = vmatmul.mubr.bf16.gmra.mxu0 %v1730_v56 }
  0xee   : > { %v4418_v34 = vpop.f32.mrf.mxu1  ;;  %4649 = vmatmul.mubr.bf16.gmra.mxu1 %v5719_v50  ;;  %4600 = vmatprep.mubr.bf16.mxu0 %v1734_v32  ;;  %v1747_v32 = vsel %vm1671_vm2, %v1737_v0, %v5476_v49 }
  0xef   : > { %v5726_v28 = vadd.f32 %v4418_v34, %v4366_v10  ;;  %v645_v3 = vpop.f32.mrf.mxu0  ;;  %4652 = vmatprep.mubr.bf16.mxu1 %v5723_v47  ;;  %v5745_v10 = vsel %vm2053_vm3, %v2085_v15, %v5731_v63 }
  0xf0   : > { %v870_v7 = vpop.f32.mrf.mxu1 }
  0xf1   : > { %v5733_v31 = vadd.f32 %v870_v7, %v645_v3  ;;  %v4367_v54 = vpop.f32.mrf.mxu0  ;;  %v2676_v3 = vrot.slane %v5145_v29, 2  ;;  %v2089_v29 = vrot.slane %v5456_v16, 2 }
  0xf2   : > { %v4419_v56 = vpop.f32.mrf.mxu1 }
  0xf3   : > { %v5736_v50 = vadd.f32 %v4419_v56, %v4367_v54  ;;  %v648_v20 = vpop.f32.mrf.mxu0  ;;  %v2680_v54 = vrot.slane %v5148_v30, 3  ;;  %v2678_v15 = vor.u32 %v2677_v57, %v2676_v3  ;;  %v2687_v3 = vrot.slane %v5204_v55, 2 }
  0xf4   : > { %v873_v34 = vpop.f32.mrf.mxu1  ;;  %v2688_v57 = vrot.slane %v5175_v42, 3 }
  0xf5   : > { %6646 = vst [vmem:[#allocation4_spill] sm:$0xff] %v5736_v50  ;;  %v5751_v7 = vadd.f32 %v873_v34, %v648_v20  ;;  %v4370_v13 = vpop.f32.mrf.mxu0  ;;  %4601 = vmatmul.mubr.bf16.gmra.mxu0 %v1738_v24  ;;  %v2681_v38 = vor.u32 %v2680_v54, %v2679_v51 }
  0xf6   : > { %v4422_v56 = vpop.f32.mrf.mxu1  ;;  %4653 = vmatmul.mubr.bf16.gmra.mxu1 %v5739_v4  ;;  %4604 = vmatprep.mubr.bf16.mxu0 %v1747_v32  ;;  %v2090_v32 = vsel %vm2053_vm3, %v5731_v63, %v2089_v29 }
  0xf7   : > { %v5754_v49 = vadd.f32 %v4422_v56, %v4370_v13  ;;  %v661_v0 = vpop.f32.mrf.mxu0  ;;  %4656 = vmatprep.mubr.bf16.mxu1 %v5745_v10  ;;  %v2683_v13 = vrot.slane %v5172_v41, 2  ;;  %v2684_v56 = vrot.slane %v5168_v39, 3  ;;  %v2682_v16 = vsel %vm2675_vm4, %v2678_v15, %v2681_v38 }
  0xf8   : > { %v886_v25 = vpop.f32.mrf.mxu1  ;;  %v2689_v15 = vor.u32 %v2688_v57, %v2687_v3 }
  0xf9   : > { %6647 = vst [vmem:[#allocation9_spill] sm:$0xff] %v5754_v49  ;;  %v5758_v50 = vadd.f32 %v886_v25, %v661_v0  ;;  %v4371_v30 = vpop.f32.mrf.mxu0  ;;  %v2685_v39 = vor.u32 %v2684_v56, %v2683_v13  ;;  %v4967_v13 = vld [vmem:[%s6587_s1 + $0x230] sm:$0xff]   ;;  %v2695_v56 = vrot.slane %v5246_v9, 2 }
  0xfa   : > { %v4423_v20 = vpop.f32.mrf.mxu1 }
  0xfb   : > { %v5760_v24 = vadd.f32 %v4423_v20, %v4371_v30  ;;  %v664_v34 = vpop.f32.mrf.mxu0 }
  0xfc   : > { %v889_v49 = vpop.f32.mrf.mxu1 }
  0xfd   : > { %v5769_v51 = vadd.f32 %v889_v49, %v664_v34  ;;  %v4374_v54 = vpop.f32.mrf.mxu0  ;;  %4605 = vmatmul.mubr.bf16.gmra.mxu0 %v5488_v8  ;;  %v2686_v8 = vsel %vm2675_vm4, %v2681_v38, %v2685_v39  ;;  %v2691_v34 = vrot.slane %v5211_v58, 2 }
  0xfe   : > { %v4426_v0 = vpop.f32.mrf.mxu1  ;;  %4657 = vmatmul.mubr.bf16.gmra.mxu1 %v2090_v32  ;;  %4676 = vmatprep.mubr.bf16.mxu0 %v5573_v27  ;;  %v2692_v27 = vrot.slane %v5200_v53, 3 }
  0xff   : > { %v5773_v29 = vadd.f32 %v4426_v0, %v4374_v54  ;;  %v677_v41 = vpop.f32.mrf.mxu0  ;;  %4728 = vmatprep.mubr.bf16.mxu1 %v2682_v16  ;;  %v2690_v54 = vsel %vm2675_vm4, %v2685_v39, %v2689_v15  ;;  %v2696_v16 = vrot.slane %v5214_v59, 3  ;;  %v4968_v59 = vld [vmem:[%s6587_s1 + $0x228] sm:$0xff]  }
 0x100   : > { %v902_v25 = vpop.f32.mrf.mxu1  ;;  %v2693_v0 = vor.u32 %v2692_v27, %v2691_v34  ;;  %v2703_v27 = vrot.slane %v5290_v37, 2 }
 0x101   : > { %v5775_v30 = vadd.f32 %v902_v25, %v677_v41  ;;  %v4375_v55 = vpop.f32.mrf.mxu0  ;;  %v2697_v41 = vor.u32 %v2696_v16, %v2695_v56 }
 0x102   : > { %v4427_v42 = vpop.f32.mrf.mxu1 }
 0x103   : > { %v5777_v49 = vadd.f32 %v4427_v42, %v4375_v55  ;;  %v680_v20 = vpop.f32.mrf.mxu0  ;;  %v2694_v42 = vsel %vm2675_vm4, %v2689_v15, %v2693_v0  ;;  %v2698_v34 = vsel %vm2675_vm4, %v2693_v0, %v2697_v41 }
 0x104   : > { %v905_v32 = vpop.f32.mrf.mxu1 }
 0x105   : > { %v5788_v3 = vadd.f32 %v905_v32, %v680_v20  ;;  %v4378_v57 = vpop.f32.mrf.mxu0  ;;  %4677 = vmatmul.mubr.bf16.vlgmr.msra.gmra.mxu0 %v5579_v22  ;;  %v2700_v20 = vrot.slane %v5239_v6, 3  ;;  %v2704_v32 = vrot.slane %v5254_v14, 3 }
 0x106   : > { %v4430_v38 = vpop.f32.mrf.mxu1  ;;  %4765 = vmatpush3.bf16.msra.mxu0 %v5680_v62  ;;  %4729 = vmatmul.mubr.bf16.vlgmr.msra.gmra.mxu1 %v2686_v8 }
 0x107   : > { %v5792_v53 = vadd.f32 %v4430_v38, %v4378_v57  ;;  %v693_v58 = vpop.f32.mrf.mxu0  ;;  %4680 = vmatprep.mubr.bf16.mxu0 %v5603_v18  ;;  %4732 = vmatprep.mubr.bf16.mxu1 %v2690_v54  ;;  %v2699_v18 = vrot.slane %v5251_v12, 2  ;;  %v4969_v54 = vld [vmem:[%s6587_s1 + $0x220] sm:$0xff]   ;;  %v2705_v16 = vor.u32 %v2704_v32, %v2703_v27  ;;  %v4970_v57 = vld [vmem:[%s6587_s1 + $0x218] sm:$0xff]   ;;  %v4972_v32 = vld [vmem:[%s6587_s1 + $0x208] sm:$0xff]  }
 0x108   : > { %v918_v9 = vpop.f32.mrf.mxu1  ;;  %4766 = vmatprep.subr.bf16.mxu0 %v4967_v13 }
 0x109   : > { %v5798_v39 = vadd.f32 %v918_v9, %v693_v58  ;;  %v4379_v22 = vpop.f32.mrf.mxu0  ;;  %v2701_v37 = vor.u32 %v2700_v20, %v2699_v18  ;;  %v2712_v18 = vrot.slane %v5293_v40, 3  ;;  %v4971_v20 = vld [vmem:[%s6587_s1 + $0x210] sm:$0xff]  }
 0x10a   : > { %v4431_v25 = vpop.f32.mrf.mxu1  ;;  %4767 = vmatpush3.bf16.msra.mxu0 %v4967_v13 }
 0x10b   : > { %v5800_v62 = vadd.f32 %v4431_v25, %v4379_v22  ;;  %v696_v55 = vpop.f32.mrf.mxu0  ;;  %4768 = vmatprep.subr.bf16.mxu0 %v4968_v59  ;;  %v2702_v9 = vsel %vm2675_vm4, %v2697_v41, %v2701_v37  ;;  %v2707_v22 = vrot.slane %v5297_v44, 2 }
 0x10c   : > { %v921_v8 = vpop.f32.mrf.mxu1 }
 0x10d   : > { %v5811_v13 = vadd.f32 %v921_v8, %v696_v55  ;;  %v4382_v56 = vpop.f32.mrf.mxu0  ;;  %4681 = vmatmul.mubr.bf16.gmra.mxu0 %v5609_v17  ;;  %v2706_v55 = vsel %vm2675_vm4, %v2701_v37, %v2705_v16  ;;  %v2715_v37 = vrot.slane %v5340_v5, 2 }
 0x10e   : > { %v4434_v12 = vpop.f32.mrf.mxu1  ;;  %4733 = vmatmul.mubr.bf16.gmra.mxu1 %v2694_v42  ;;  %4684 = vmatprep.mubr.bf16.mxu0 %v5631_v19  ;;  %v2711_v42 = vrot.slane %v5333_v1, 2 }
 0x10f   : > { %v5815_v6 = vadd.f32 %v4434_v12, %v4382_v56  ;;  %v709_v15 = vpop.f32.mrf.mxu0  ;;  %4736 = vmatprep.mubr.bf16.mxu1 %v2698_v34  ;;  %4769 = vmatpush3.bf16.msra.mxu0 %v4968_v59  ;;  %v2708_v59 = vrot.slane %v5283_v33, 3 }
 0x110   : > { %v934_v14 = vpop.f32.mrf.mxu1  ;;  %4770 = vmatprep.subr.bf16.mxu0 %v4969_v54  ;;  %v2713_v27 = vor.u32 %v2712_v18, %v2711_v42 }
 0x111   : > { %v5820_v38 = vadd.f32 %v934_v14, %v709_v15  ;;  %v4383_v17 = vpop.f32.mrf.mxu0  ;;  %v2709_v1 = vor.u32 %v2708_v59, %v2707_v22  ;;  %v2716_v14 = vrot.slane %v5321_v60, 3 }
 0x112   : > { %v4435_v58 = vpop.f32.mrf.mxu1 }
 0x113   : > { %v5822_v0 = vadd.f32 %v4435_v58, %v4383_v17  ;;  %v712_v19 = vpop.f32.mrf.mxu0  ;;  %4771 = vmatpush3.bf16.msra.mxu0 %v4969_v54  ;;  %v2710_v15 = vsel %vm2675_vm4, %v2705_v16, %v2709_v1  ;;  %v2714_v17 = vsel %vm2675_vm4, %v2709_v1, %v2713_v27  ;;  %v2719_v58 = vrot.slane %v6632_v48, 2 }
 0x114   : > { %v937_v25 = vpop.f32.mrf.mxu1  ;;  %4772 = vmatprep.subr.bf16.mxu0 %v4970_v57  ;;  %v2717_v48 = vor.u32 %v2716_v14, %v2715_v37 }
 0x115   : > { %v5833_v8 = vadd.f32 %v937_v25, %v712_v19  ;;  %v4386_v41 = vpop.f32.mrf.mxu0  ;;  %4685 = vmatmul.mubr.bf16.gmra.mxu0 %v5637_v11  ;;  %v2720_v19 = vrot.slane %v6633_v21, 3 }
 0x116   : > { %v4438_v44 = vpop.f32.mrf.mxu1  ;;  %4737 = vmatmul.mubr.bf16.gmra.mxu1 %v2702_v9  ;;  %4688 = vmatprep.mubr.bf16.mxu0 %v5659_v61  ;;  %v4974_v9 = vld [vmem:[%s6587_s1 + $0x200] sm:$0xff]  }
 0x117   : > { %v5837_v33 = vadd.f32 %v4438_v44, %v4386_v41  ;;  %v725_v34 = vpop.f32.mrf.mxu0  ;;  %4740 = vmatprep.mubr.bf16.mxu1 %v2706_v55  ;;  %4773 = vmatpush3.bf16.msra.mxu0 %v4970_v57  ;;  %v2721_v25 = vor.u32 %v2720_v19, %v2719_v58  ;;  %v2718_v41 = vsel %vm2675_vm4, %v2713_v27, %v2717_v48  ;;  %v2724_v44 = vrot.slane %v6635_v46, 3 }
 0x118   : > { %v950_v40 = vpop.f32.mrf.mxu1  ;;  %4774 = vmatprep.subr.bf16.mxu0 %v4971_v20 }
 0x119   : > { %v5842_v54 = vadd.f32 %v950_v40, %v725_v34  ;;  %v4387_v11 = vpop.f32.mrf.mxu0  ;;  %v2722_v1 = vsel %vm2675_vm4, %v2717_v48, %v2721_v25  ;;  %v2727_v40 = vrot.slane %v6637_v43, 2 }
 0x11a   : > { %v4439_v56 = vpop.f32.mrf.mxu1 }
 0x11b   : > { %v5844_v12 = vadd.f32 %v4439_v56, %v4387_v11  ;;  %v728_v61 = vpop.f32.mrf.mxu0  ;;  %4775 = vmatpush3.bf16.msra.mxu0 %v4971_v20 }
 0x11c   : > { %v953_v57 = vpop.f32.mrf.mxu1  ;;  %4776 = vmatprep.subr.bf16.mxu0 %v4972_v32 }
 0x11d   : > { %v5855_v22 = vadd.f32 %v953_v57, %v728_v61  ;;  %v4390_v16 = vpop.f32.mrf.mxu0  ;;  %4689 = vmatmul.mubr.bf16.gmra.mxu0 %v5665_v36  ;;  %v6648_v61 = vld [vmem:[#allocation5_spill] sm:$0xff] }
 0x11e   : > { %v4442_v5 = vpop.f32.mrf.mxu1  ;;  %4741 = vmatmul.mubr.bf16.gmra.mxu1 %v2710_v15  ;;  %4692 = vmatprep.mubr.bf16.mxu0 %v5686_v26  ;;  %v2723_v26 = vrot.slane %v6634_v45, 2  ;;  %v301_v57 = vld [vmem:[%s5104_s26 + $0x9c] sm:$0xf] }
 0x11f   : > { %v5859_v60 = vadd.f32 %v4442_v5, %v4390_v16  ;;  %v741_v59 = vpop.f32.mrf.mxu0  ;;  %4744 = vmatprep.mubr.bf16.mxu1 %v2714_v17  ;;  %4777 = vmatpush3.bf16.msra.mxu0 %v4972_v32  ;;  %v2728_v32 = vrot.slane %v6638_v23, 3  ;;  %v6649_v16 = vld [vmem:[#allocation10_spill] sm:$0xff]  ;;  %v6650_v5 = vld [vmem:[#allocation8_spill] sm:$0xff] }
 0x120   : > { %v966_v21 = vpop.f32.mrf.mxu1  ;;  %4778 = vmatprep.subr.bf16.mxu0 %v4974_v9  ;;  %v2725_v27 = vor.u32 %v2724_v44, %v2723_v26 }
 0x121   : > { %v5861_v55 = vadd.f32 %v966_v21, %v741_v59  ;;  %v4391_v42 = vpop.f32.mrf.mxu0  ;;  %v2729_v43 = vor.u32 %v2728_v32, %v2727_v40  ;;  %v2732_v59 = vrot.slane %v6650_v5, 3  ;;  %v6653_v40 = vld [vmem:[#allocation6_spill] sm:$0xff] }
 0x122   : > { %v4443_v18 = vpop.f32.mrf.mxu1 }
 0x123   : > { %v5863_v20 = vadd.f32 %v4443_v18, %v4391_v42  ;;  %v744_v36 = vpop.f32.mrf.mxu0  ;;  %4779 = vmatpush3.bf16.msra.mxu0 %v4974_v9  ;;  %v2726_v9 = vsel %vm2675_vm4, %v2721_v25, %v2725_v27  ;;  %v2730_v21 = vsel %vm2675_vm4, %v2725_v27, %v2729_v43  ;;  %v2735_v42 = vrot.slane %v6642_v35, 2  ;;  %v6651_v18 = vld [vmem:[#allocation11_spill] sm:$0xff] }
 0x124   : > { %v969_v34 = vpop.f32.mrf.mxu1 }
 0x125   : > { %v5871_v11 = vadd.f32 %v969_v34, %v744_v36  ;;  %v4394_v56 = vpop.f32.mrf.mxu0  ;;  %4693 = vmatmul.mubr.bf16.gmra.mxu0 %v6648_v61  ;;  %v2736_v36 = vrot.slane %v6651_v18, 3 }
 0x126   : > { %v4446_v15 = vpop.f32.mrf.mxu1  ;;  %4745 = vmatmul.mubr.bf16.gmra.mxu1 %v2718_v41  ;;  %4696 = vmatprep.mubr.bf16.mxu0 %v5703_v2  ;;  %v2731_v2 = vrot.slane %v6649_v16, 2  ;;  %v4976_v41 = vld [vmem:[%s5104_s26 + $0x98] sm:$0xf]  ;;  %v6654_v16 = vshrl.u32 %v5447_v52, 16 }
 0x127   : > { %v5875_v45 = vadd.f32 %v4446_v15, %v4394_v56  ;;  %v757_v46 = vpop.f32.mrf.mxu0  ;;  %4748 = vmatprep.mubr.bf16.mxu1 %v2722_v1  ;;  %v5889_v26 = vcombine.low %v4976_v41, %v301_v57  ;;  %v6652_v1 = vld [vmem:[#allocation2_spill] sm:$0xff]  ;;  %v2737_v15 = vor.u32 %v2736_v36, %v2735_v42 }
 0x128   : > { %v982_v37 = vpop.f32.mrf.mxu1  ;;  %v2733_v35 = vor.u32 %v2732_v59, %v2731_v2  ;;  %v2739_v5 = vrot.slane %v6654_v16, 2  ;;  %v6655_v2 = vshll.u32 %v5447_v52, 16 }
 0x129   : > { %v5877_v14 = vadd.f32 %v982_v37, %v757_v46  ;;  %v4395_v23 = vpop.f32.mrf.mxu0  ;;  %v2744_v46 = vshrl.u32 %v5889_v26, 16  ;;  %v2747_v27 = vshll.u32 %v5889_v26, 16 }
 0x12a   : > { %v4447_v17 = vpop.f32.mrf.mxu1  ;;  %v2740_v59 = vrot.slane %v6655_v2, 3  ;;  %v2738_v42 = vsel %vm2675_vm4, %v2733_v35, %v2737_v15 }
 0x12b   : > { %v5880_v58 = vadd.f32 %v4447_v17, %v4395_v23  ;;  %v760_v19 = vpop.f32.mrf.mxu0  ;;  %v2746_v18 = vrot.slane %v2744_v46, 2  ;;  %v2749_v36 = vrot.slane %v2747_v27, 3 }
 0x12c   : > { %v985_v48 = vpop.f32.mrf.mxu1 }
 0x12d   : > { %v5891_v44 = vadd.f32 %v985_v48, %v760_v19  ;;  %v4398_v34 = vpop.f32.mrf.mxu0  ;;  %4697 = vmatmul.mubr.bf16.gmra.mxu0 %v6652_v1  ;;  %v5911_v48 = vld [vmem:[%s5104_s26 + $0xa0] ss:$0 sps:$4 sm:$0xff]   ;;  %v2750_v27 = vor.u32 %v2749_v36, %v2746_v18 }
 0x12e   : > { %v4450_v25 = vpop.f32.mrf.mxu1  ;;  %4749 = vmatmul.mubr.bf16.gmra.mxu1 %v2726_v9  ;;  %4700 = vmatprep.mubr.bf16.mxu0 %v6653_v40  ;;  %v2734_v9 = vsel %vm2675_vm4, %v2729_v43, %v2733_v35  ;;  %v2391_v40 = vrot.slane %v5889_v26, 2  ;;  %v2756_v35 = vshll.u32 %v5911_v48, 16 }
 0x12f   : > { %v5895_v32 = vadd.f32 %v4450_v25, %v4398_v34  ;;  %v773_v56 = vpop.f32.mrf.mxu0  ;;  %4752 = vmatprep.mubr.bf16.mxu1 %v2730_v21  ;;  %v2741_v25 = vor.u32 %v2740_v59, %v2739_v5 }
 0x130   : > { %v998_v61 = vpop.f32.mrf.mxu1  ;;  %v2392_v2 = vsel %vm2053_vm3, %v5731_v63, %v2391_v40  ;;  %v2393_v63 = vrot.slane %v5911_v48, 2 }
 0x131   : > { %v5899_v37 = vadd.f32 %v998_v61, %v773_v56  ;;  %v4399_v23 = vpop.f32.mrf.mxu0  ;;  %v2753_v56 = vshrl.u32 %v5911_v48, 16  ;;  %v2742_v5 = vsel %vm2675_vm4, %v2737_v15, %v2741_v25  ;;  %v6657_v15 = vld [vmem:[#allocation9_spill] sm:$0xff] }
 0x132   : > { %v4451_v57 = vpop.f32.mrf.mxu1 }
 0x133   : > { %v5901_v17 = vadd.f32 %v4451_v57, %v4399_v23  ;;  %v5903_v19 = vpop.f32.mrf.mxu0  ;;  %v6656_v23 = vld [vmem:[#allocation4_spill] sm:$0xff]  ;;  %v2755_v59 = vrot.slane %v2753_v56, 2 }
 0x134   : > { %v5913_v21 = vpop.f32.mrf.mxu1 }
 0x135   : > { %v4470_v41 = vpop.f32.mrf.mxu0  ;;  %4701 = vmatmul.mubr.bf16.gmra.mxu0 %v5723_v47 }
 0x136   : > { %v1332_v34 = vadd.f32 %v4470_v41, %v5726_v28  ;;  %v4522_v43 = vpop.f32.mrf.mxu1  ;;  %4753 = vmatmul.mubr.bf16.gmra.mxu1 %v2734_v9  ;;  %4704 = vmatprep.mubr.bf16.mxu0 %v5739_v4  ;;  %v2751_v41 = vsel %vm2675_vm4, %v2741_v25, %v2750_v27 }
 0x137   : > { %v1187_v1 = vpop.f32.mrf.mxu0  ;;  %4756 = vmatprep.mubr.bf16.mxu1 %v2738_v42  ;;  %v2758_v42 = vrot.slane %v2756_v35, 3  ;;  %v4977_v35 = vld [vmem:[%s5104_s26 + $0x10] sm:$0xff]  }
 0x138   : > { %v1330_v61 = vadd.f32 %v1187_v1, %v5733_v31  ;;  %v5923_v46 = vadd.f32 %v4522_v43, %v1332_v34  ;;  %v1475_v47 = vpop.f32.mrf.mxu1 }
 0x139   : > { %v4471_v28 = vpop.f32.mrf.mxu0 }
 0x13a   : > { %v1333_v57 = vadd.f32 %v4471_v28, %v6656_v23  ;;  %v5926_v9 = vadd.f32 %v1475_v47, %v1330_v61  ;;  %v4523_v4 = vpop.f32.mrf.mxu1  ;;  %v3058_v61 = vrot.slane %v4977_v35, 3  ;;  %v4978_v47 = vld [vmem:[%s5104_s26 + $0x18] sm:$0xff]  }
 0x13b   : > { %v1190_v16 = vpop.f32.mrf.mxu0  ;;  %v3059_v28 = vrot.slane %v4978_v47, 3 }
 0x13c   : > { %v5932_v31 = vadd.f32 %v1190_v16, %v5751_v7  ;;  %v5934_v18 = vadd.f32 %v4523_v4, %v1333_v57  ;;  %v5936_v36 = vpop.f32.mrf.mxu1  ;;  %v2759_v7 = vor.u32 %v2758_v42, %v2755_v59 }
 0x13d   : > { %v4474_v34 = vpop.f32.mrf.mxu0  ;;  %4705 = vmatmul.mubr.bf16.gmra.mxu0 %v5745_v10 }
 0x13e   : > { %v1336_v43 = vadd.f32 %v4474_v34, %v6657_v15  ;;  %v4526_v1 = vpop.f32.mrf.mxu1  ;;  %4757 = vmatmul.mubr.bf16.gmra.mxu1 %v2742_v5  ;;  %4708 = vmatprep.mubr.bf16.mxu0 %v2392_v2  ;;  %v2394_v2 = vsel %vm2053_vm3, %v2391_v40, %v2393_v63  ;;  %v2760_v42 = vsel %vm2675_vm4, %v2750_v27, %v2759_v7  ;;  %v4979_v40 = vld [vmem:[%s5104_s26 + $0x20] sm:$0xff]   ;;  %v4980_v27 = vld [vmem:[%s5104_s26 + $0x28] sm:$0xff]  }
 0x13f   : > { %v1203_v56 = vpop.f32.mrf.mxu0  ;;  %4760 = vmatprep.mubr.bf16.mxu1 %v2751_v41  ;;  %v3060_v41 = vsel %vm3057_vm5, %v3058_v61, %v3059_v28  ;;  %v3061_v63 = vrot.slane %v4979_v40, 3  ;;  %v3063_v7 = vrot.slane %v4980_v27, 3 }
 0x140   : > { %v1334_v23 = vadd.f32 %v1203_v56, %v5758_v50  ;;  %v5945_v25 = vadd.f32 %v4526_v1, %v1336_v43  ;;  %v1491_v57 = vpop.f32.mrf.mxu1 }
 0x141   : > { %v4475_v10 = vpop.f32.mrf.mxu0 }
 0x142   : > { %v1337_v4 = vadd.f32 %v4475_v10, %v5760_v24  ;;  %v5948_v16 = vadd.f32 %v1491_v57, %v1334_v23  ;;  %v4527_v5 = vpop.f32.mrf.mxu1  ;;  %v3062_v10 = vsel %vm3057_vm5, %v3059_v28, %v3061_v63  ;;  %v4982_v28 = vld [vmem:[%s5104_s26 + $0x38] sm:$0xff]  }
 0x143   : > { %v1206_v59 = vpop.f32.mrf.mxu0  ;;  %v3067_v40 = vrot.slane %v4982_v28, 3 }
 0x144   : > { %v5954_v50 = vadd.f32 %v1206_v59, %v5769_v51  ;;  %v5956_v34 = vadd.f32 %v4527_v5, %v1337_v4  ;;  %v5958_v15 = vpop.f32.mrf.mxu1  ;;  %v3064_v5 = vsel %vm3057_vm5, %v3061_v63, %v3063_v7 }
 0x145   : > { %v4478_v24 = vpop.f32.mrf.mxu0  ;;  %4709 = vmatmul.mubr.bf16.gmra.mxu0 %v2394_v2 }
 0x146   : > { %v1340_v43 = vadd.f32 %v4478_v24, %v5773_v29  ;;  %v4530_v1 = vpop.f32.mrf.mxu1  ;;  %4761 = vmatmul.mubr.bf16.gmra.mxu1 %v2760_v42  ;;  %4780 = vmatprep.mubr.bf16.mxu0 %v3060_v41  ;;  %v4981_v24 = vld [vmem:[%s5104_s26 + $0x30] sm:$0xff]  }
 0x147   : > { %v1219_v56 = vpop.f32.mrf.mxu0 }
 0x148   : > { %v1338_v35 = vadd.f32 %v1219_v56, %v5775_v30  ;;  %v5964_v51 = vadd.f32 %v4530_v1, %v1340_v43  ;;  %v1507_v61 = vpop.f32.mrf.mxu1  ;;  %v3065_v43 = vrot.slane %v4981_v24, 3 }
 0x149   : > { %v4479_v47 = vpop.f32.mrf.mxu0 }
 0x14a   : > { %v1341_v23 = vadd.f32 %v4479_v47, %v5777_v49  ;;  %v5967_v57 = vadd.f32 %v1507_v61, %v1338_v35  ;;  %v4531_v29 = vpop.f32.mrf.mxu1 }
 0x14b   : > { %v1222_v4 = vpop.f32.mrf.mxu0 }
 0x14c   : > { %v5972_v2 = vadd.f32 %v1222_v4, %v5788_v3  ;;  %v5974_v30 = vadd.f32 %v4531_v29, %v1341_v23  ;;  %v5976_v59 = vpop.f32.mrf.mxu1  ;;  %v3068_v29 = vsel %vm3057_vm5, %v3065_v43, %v3067_v40 }
 0x14d   : > { %v4482_v42 = vpop.f32.mrf.mxu0  ;;  %4781 = vmatmul.mubr.bf16.vlgmr.msra.gmra.mxu0 %v3062_v10 }
 0x14e   : > { %v1344_v49 = vadd.f32 %v4482_v42, %v5792_v53  ;;  %v4534_v41 = vpop.f32.mrf.mxu1  ;;  %4784 = vmatprep.mubr.bf16.mxu0 %v3064_v5  ;;  %v3066_v53 = vsel %vm3057_vm5, %v3063_v7, %v3065_v43  ;;  %v3471_v7 = vld [vmem:[%s6589_s3] sm:$0xf] }
 0x14f   : > { %v1235_v1 = vpop.f32.mrf.mxu0  ;;  %4854 = vmatprep.subr.msk.bf16.mxu1 %vm3534_vm6, %v3471_v7 }
 0x150   : > { %v1342_v63 = vadd.f32 %v1235_v1, %v5798_v39  ;;  %v5982_v56 = vadd.f32 %v4534_v41, %v1344_v49  ;;  %v1523_v3 = vpop.f32.mrf.mxu1  ;;  %v4983_v49 = vld [vmem:[%s5104_s26 + $0x40] sm:$0xff]   ;;  %v3536_v1 = vsel %vm3534_vm6, %v3471_v7, 0  ;;  %v4985_v7 = vld [vmem:[%s5104_s26 + $0x50] sm:$0xff]  }
 0x151   : > { %v4483_v27 = vpop.f32.mrf.mxu0  ;;  %v3069_v41 = vrot.slane %v4983_v49, 3  ;;  %4817 = vmatpush3.bf16.msra.mxu1 %v3536_v1 }
 0x152   : > { %v1345_v35 = vadd.f32 %v4483_v27, %v5800_v62  ;;  %v5985_v61 = vadd.f32 %v1523_v3, %v1342_v63  ;;  %v4535_v47 = vpop.f32.mrf.mxu1 }
 0x153   : > { %v1238_v23 = vpop.f32.mrf.mxu0 }
 0x154   : > { %v5990_v10 = vadd.f32 %v1238_v23, %v5811_v13  ;;  %v5992_v39 = vadd.f32 %v4535_v47, %v1345_v35  ;;  %v5994_v4 = vpop.f32.mrf.mxu1  ;;  %v4984_v13 = vld [vmem:[%s5104_s26 + $0x48] sm:$0xff]  }
 0x155   : > { %v4486_v5 = vpop.f32.mrf.mxu0  ;;  %4785 = vmatmul.mubr.bf16.gmra.mxu0 %v3066_v53  ;;  %v3071_v43 = vrot.slane %v4984_v13, 3  ;;  %v3070_v53 = vsel %vm3057_vm5, %v3067_v40, %v3069_v41  ;;  %v4986_v40 = vld [vmem:[%s5104_s26 + $0x58] sm:$0xff]  }
 0x156   : > { %v1348_v62 = vadd.f32 %v4486_v5, %v5815_v6  ;;  %v4538_v42 = vpop.f32.mrf.mxu1  ;;  %4788 = vmatprep.mubr.bf16.mxu0 %v3068_v29  ;;  %v3075_v1 = vrot.slane %v4986_v40, 3 }
 0x157   : > { %v1251_v24 = vpop.f32.mrf.mxu0  ;;  %v3072_v29 = vsel %vm3057_vm5, %v3069_v41, %v3071_v43 }
 0x158   : > { %v1346_v28 = vadd.f32 %v1251_v24, %v5820_v38  ;;  %v6003_v63 = vadd.f32 %v4538_v42, %v1348_v62  ;;  %v1539_v3 = vpop.f32.mrf.mxu1  ;;  %v3073_v24 = vrot.slane %v4985_v7, 3  ;;  %v4987_v7 = vld [vmem:[%s5104_s26 + $0x60] sm:$0xff]  }
 0x159   : > { %v4487_v6 = vpop.f32.mrf.mxu0 }
 0x15a   : > { %v1349_v27 = vadd.f32 %v4487_v6, %v5822_v0  ;;  %v6006_v35 = vadd.f32 %v1539_v3, %v1346_v28  ;;  %v4539_v47 = vpop.f32.mrf.mxu1 }
 0x15b   : > { %v1254_v23 = vpop.f32.mrf.mxu0 }
 0x15c   : > { %v6011_v5 = vadd.f32 %v1254_v23, %v5833_v8  ;;  %v6013_v38 = vadd.f32 %v4539_v47, %v1349_v27  ;;  %v6015_v62 = vpop.f32.mrf.mxu1  ;;  %v3074_v47 = vsel %vm3057_vm5, %v3071_v43, %v3073_v24  ;;  %v3076_v23 = vsel %vm3057_vm5, %v3073_v24, %v3075_v1  ;;  %v4988_v43 = vld [vmem:[%s5104_s26 + $0x68] sm:$0xff]  }
 0x15d   : > { %v4490_v42 = vpop.f32.mrf.mxu0  ;;  %4789 = vmatmul.mubr.bf16.gmra.mxu0 %v3070_v53 }
 0x15e   : > { %v1352_v0 = vadd.f32 %v4490_v42, %v5837_v33  ;;  %v4542_v49 = vpop.f32.mrf.mxu1  ;;  %4792 = vmatprep.mubr.bf16.mxu0 %v3072_v29 }
 0x15f   : > { %v1267_v13 = vpop.f32.mrf.mxu0 }
 0x160   : > { %v1350_v41 = vadd.f32 %v1267_v13, %v5842_v54  ;;  %v6021_v28 = vadd.f32 %v4542_v49, %v1352_v0  ;;  %v1555_v8 = vpop.f32.mrf.mxu1  ;;  %v3077_v13 = vrot.slane %v4987_v7, 3 }
 0x161   : > { %v4491_v3 = vpop.f32.mrf.mxu0 }
 0x162   : > { %v1353_v6 = vadd.f32 %v4491_v3, %v5844_v12  ;;  %v6024_v27 = vadd.f32 %v1555_v8, %v1350_v41  ;;  %v4543_v33 = vpop.f32.mrf.mxu1  ;;  %v3079_v41 = vrot.slane %v4988_v43, 3 }
 0x163   : > { %v1270_v53 = vpop.f32.mrf.mxu0 }
 0x164   : > { %v6029_v29 = vadd.f32 %v1270_v53, %v5855_v22  ;;  %v6031_v54 = vadd.f32 %v4543_v33, %v1353_v6  ;;  %v6033_v42 = vpop.f32.mrf.mxu1 }
 0x165   : > { %v4494_v0 = vpop.f32.mrf.mxu0  ;;  %4793 = vmatmul.mubr.bf16.gmra.mxu0 %v3074_v47  ;;  %v3078_v47 = vsel %vm3057_vm5, %v3075_v1, %v3077_v13  ;;  %v4990_v1 = vld [vmem:[%s5104_s26 + $0x78] sm:$0xff]  }
 0x166   : > { %v1356_v12 = vadd.f32 %v4494_v0, %v5859_v60  ;;  %v4546_v49 = vpop.f32.mrf.mxu1  ;;  %4796 = vmatprep.mubr.bf16.mxu0 %v3076_v23  ;;  %v3080_v23 = vsel %vm3057_vm5, %v3077_v13, %v3079_v41 }
 0x167   : > { %v1283_v40 = vpop.f32.mrf.mxu0 }
 0x168   : > { %v1354_v24 = vadd.f32 %v1283_v40, %v5861_v55  ;;  %v6039_v8 = vadd.f32 %v4546_v49, %v1356_v12  ;;  %v1571_v22 = vpop.f32.mrf.mxu1  ;;  %v4989_v40 = vld [vmem:[%s5104_s26 + $0x70] sm:$0xff]  }
 0x169   : > { %v4495_v3 = vpop.f32.mrf.mxu0  ;;  %v3081_v43 = vrot.slane %v4989_v40, 3 }
 0x16a   : > { %v1357_v6 = vadd.f32 %v4495_v3, %v5863_v20  ;;  %v6042_v33 = vadd.f32 %v1571_v22, %v1354_v24  ;;  %v4547_v60 = vpop.f32.mrf.mxu1  ;;  %v3083_v22 = vrot.slane %v4990_v1, 3  ;;  %v4991_v1 = vld [vmem:[%s5104_s26 + $0x80] sm:$0xff]  }
 0x16b   : > { %v1286_v53 = vpop.f32.mrf.mxu0 }
 0x16c   : > { %v6047_v0 = vadd.f32 %v1286_v53, %v5871_v11  ;;  %v6049_v55 = vadd.f32 %v4547_v60, %v1357_v6  ;;  %v6051_v12 = vpop.f32.mrf.mxu1 }
 0x16d   : > { %v4498_v49 = vpop.f32.mrf.mxu0  ;;  %4797 = vmatmul.mubr.bf16.gmra.mxu0 %v3078_v47  ;;  %v3082_v47 = vsel %vm3057_vm5, %v3079_v41, %v3081_v43  ;;  %v4992_v41 = vld [vmem:[%s5104_s26 + $0x88] sm:$0xff]  }
 0x16e   : > { %v1360_v20 = vadd.f32 %v4498_v49, %v5875_v45  ;;  %v4550_v7 = vpop.f32.mrf.mxu1  ;;  %4800 = vmatprep.mubr.bf16.mxu0 %v3080_v23  ;;  %v3084_v49 = vsel %vm3057_vm5, %v3081_v43, %v3083_v22 }
 0x16f   : > { %v1299_v24 = vpop.f32.mrf.mxu0 }
 0x170   : > { %v1358_v13 = vadd.f32 %v1299_v24, %v5877_v14  ;;  %v6057_v3 = vadd.f32 %v4550_v7, %v1360_v20  ;;  %v1587_v11 = vpop.f32.mrf.mxu1 }
 0x171   : > { %v4499_v6 = vpop.f32.mrf.mxu0 }
 0x172   : > { %v1361_v60 = vadd.f32 %v4499_v6, %v5880_v58  ;;  %v6060_v53 = vadd.f32 %v1587_v11, %v1358_v13  ;;  %v4551_v45 = vpop.f32.mrf.mxu1  ;;  %v3085_v13 = vrot.slane %v4991_v1, 3  ;;  %v3087_v6 = vrot.slane %v4992_v41, 3 }
 0x173   : > { %v1302_v23 = vpop.f32.mrf.mxu0 }
 0x174   : > { %6658 = vst [vmem:[#allocation7_spill] sm:$0xff] %v6060_v53  ;;  %v6065_v40 = vadd.f32 %v1302_v23, %v5891_v44  ;;  %v6067_v14 = vadd.f32 %v4551_v45, %v1361_v60  ;;  %v6069_v20 = vpop.f32.mrf.mxu1  ;;  %v1002_v45 = vadd.f32 %v5913_v21, %v5903_v19  ;;  %v3088_v1 = vsel %vm3057_vm5, %v3085_v13, %v3087_v6 }
 0x175   : > { %v4502_v7 = vpop.f32.mrf.mxu0  ;;  %4801 = vmatmul.mubr.bf16.gmra.mxu0 %v3082_v47 }
 0x176   : > { %6659 = vst [vmem:[#allocation12_spill] sm:$0xff] %v6067_v14  ;;  %v1364_v58 = vadd.f32 %v4502_v7, %v5895_v32  ;;  %v4554_v24 = vpop.f32.mrf.mxu1  ;;  %4804 = vmatprep.mubr.bf16.mxu0 %v3084_v49  ;;  %v3086_v49 = vsel %vm3057_vm5, %v3083_v22, %v3085_v13  ;;  %v3091_v22 = vrot.slane %v5889_v26, 3 }
 0x177   : > { %v1315_v11 = vpop.f32.mrf.mxu0 }
 0x178   : > { %v1362_v43 = vadd.f32 %v1315_v11, %v5899_v37  ;;  %v6075_v53 = vadd.f32 %v4554_v24, %v1364_v58  ;;  %v1603_v44 = vpop.f32.mrf.mxu1 }
 0x179   : > { %v4503_v60 = vpop.f32.mrf.mxu0 }
 0x17a   : > { %v1365_v47 = vadd.f32 %v4503_v60, %v5901_v17  ;;  %v6080_v23 = vadd.f32 %v1603_v44, %v1362_v43  ;;  %v4555_v32 = vpop.f32.mrf.mxu1  ;;  %v3089_v17 = vrot.slane %v5447_v52, 3 }
 0x17b   : > { %v1318_v7 = vpop.f32.mrf.mxu0 }
 0x17c   : > { %v1363_v41 = vadd.f32 %v1318_v7, %v1002_v45  ;;  %v6084_v14 = vadd.f32 %v4555_v32, %v1365_v47  ;;  %v1606_v37 = vpop.f32.mrf.mxu1  ;;  %v1619_v45 = vadd.f32 %v5936_v36, %v5932_v31  ;;  %v3092_v7 = vsel %vm3057_vm5, %v3089_v17, %v3091_v22 }
 0x17d   : > { %v4574_v58 = vpop.f32.mrf.mxu0  ;;  %4805 = vmatmul.mubr.bf16.gmra.mxu0 %v3086_v49  ;;  %v3090_v49 = vsel %vm3057_vm5, %v3087_v6, %v3089_v17 }
 0x17e   : > { %v6086_v24 = vadd.f32 %v1606_v37, %v1363_v41  ;;  %v2002_v19 = vadd.f32 %v4574_v58, %v5923_v46  ;;  %v4626_v21 = vpop.f32.mrf.mxu1  ;;  %4808 = vmatprep.mubr.bf16.mxu0 %v3088_v1 }
 0x17f   : > { %v1857_v11 = vpop.f32.mrf.mxu0 }
 0x180   : > { %v2000_v43 = vadd.f32 %v1857_v11, %v5926_v9  ;;  %v6092_v13 = vadd.f32 %v4626_v21, %v2002_v19  ;;  %v2191_v44 = vpop.f32.mrf.mxu1  ;;  %v1623_v11 = vadd.f32 %v5958_v15, %v5954_v50 }
 0x181   : > { %v4575_v60 = vpop.f32.mrf.mxu0 }
 0x182   : > { %v2003_v47 = vadd.f32 %v4575_v60, %v5934_v18  ;;  %v6097_v32 = vadd.f32 %v2191_v44, %v2000_v43  ;;  %v4627_v46 = vpop.f32.mrf.mxu1  ;;  %v3093_v18 = vrot.slane %v5911_v48, 3 }
 0x183   : > { %v1860_v52 = vpop.f32.mrf.mxu0 }
 0x184   : > { %v2001_v26 = vadd.f32 %v1860_v52, %v1619_v45  ;;  %v6101_v1 = vadd.f32 %v4627_v46, %v2003_v47  ;;  %v2194_v9 = vpop.f32.mrf.mxu1  ;;  %v3094_v60 = vsel %vm3057_vm5, %v3091_v22, %v3093_v18  ;;  %v1627_v22 = vadd.f32 %v5976_v59, %v5972_v2 }
 0x185   : > { %v4578_v41 = vpop.f32.mrf.mxu0  ;;  %4809 = vmatmul.mubr.bf16.gmra.mxu0 %v3090_v49 }
 0x186   : > { %v2006_v37 = vadd.f32 %v4578_v41, %v5945_v25  ;;  %v6104_v58 = vadd.f32 %v2194_v9, %v2001_v26  ;;  %v4630_v31 = vpop.f32.mrf.mxu1  ;;  %4812 = vmatprep.mubr.bf16.mxu0 %v3092_v7 }
 0x187   : > { %v1873_v36 = vpop.f32.mrf.mxu0 }
 0x188   : > { %v2004_v6 = vadd.f32 %v1873_v36, %v5948_v16  ;;  %v6108_v19 = vadd.f32 %v4630_v31, %v2006_v37  ;;  %v2207_v21 = vpop.f32.mrf.mxu1 }
 0x189   : > { %v4579_v17 = vpop.f32.mrf.mxu0 }
 0x18a   : > { %v2007_v43 = vadd.f32 %v4579_v17, %v5956_v34  ;;  %v6113_v44 = vadd.f32 %v2207_v21, %v2004_v6  ;;  %v4631_v25 = vpop.f32.mrf.mxu1 }
 0x18b   : > { %v1876_v45 = vpop.f32.mrf.mxu0 }
 0x18c   : > { %v2005_v47 = vadd.f32 %v1876_v45, %v1623_v11  ;;  %v6116_v48 = vadd.f32 %v4631_v25, %v2007_v43  ;;  %v2210_v46 = vpop.f32.mrf.mxu1 }
 0x18d   : > { %v4582_v16 = vpop.f32.mrf.mxu0  ;;  %4813 = vmatmul.mubr.bf16.gmra.mxu0 %v3094_v60  ;;  %v1631_v60 = vadd.f32 %v5994_v4, %v5990_v10 }
 0x18e   : > { %v2010_v49 = vadd.f32 %v4582_v16, %v5964_v51  ;;  %v6119_v52 = vadd.f32 %v2210_v46, %v2005_v47  ;;  %v4634_v7 = vpop.f32.mrf.mxu1 }
 0x18f   : > { %v1889_v50 = vpop.f32.mrf.mxu0 }
 0x190   : > { %v2008_v34 = vadd.f32 %v1889_v50, %v5967_v57  ;;  %v6122_v15 = vadd.f32 %v4634_v7, %v2010_v49  ;;  %v2223_v26 = vpop.f32.mrf.mxu1 }
 0x191   : > { %v4583_v9 = vpop.f32.mrf.mxu0 }
 0x192   : > { %v2011_v41 = vadd.f32 %v4583_v9, %v5974_v30  ;;  %v6127_v37 = vadd.f32 %v2223_v26, %v2008_v34  ;;  %v4635_v31 = vpop.f32.mrf.mxu1 }
 0x193   : > { %v1892_v18 = vpop.f32.mrf.mxu0 }
 0x194   : > { %v2009_v51 = vadd.f32 %v1892_v18, %v1627_v22  ;;  %v6129_v36 = vadd.f32 %v4635_v31, %v2011_v41  ;;  %v2226_v6 = vpop.f32.mrf.mxu1  ;;  %v1635_v41 = vadd.f32 %v6015_v62, %v6011_v5 }
 0x195   : > { %v4586_v21 = vpop.f32.mrf.mxu0 }
 0x196   : > { %v2014_v57 = vadd.f32 %v4586_v21, %v5982_v56  ;;  %v6132_v17 = vadd.f32 %v2226_v6, %v2009_v51  ;;  %v4638_v11 = vpop.f32.mrf.mxu1 }
 0x197   : > { %v1905_v43 = vpop.f32.mrf.mxu0 }
 0x198   : > { %v2012_v25 = vadd.f32 %v1905_v43, %v5985_v61  ;;  %v6135_v2 = vadd.f32 %v4638_v11, %v2014_v57  ;;  %v2239_v30 = vpop.f32.mrf.mxu1 }
 0x199   : > { %v4587_v59 = vpop.f32.mrf.mxu0 }
 0x19a   : > { %v2015_v45 = vadd.f32 %v4587_v59, %v5992_v39  ;;  %v6140_v47 = vadd.f32 %v2239_v30, %v2012_v25  ;;  %v4639_v46 = vpop.f32.mrf.mxu1 }
 0x19b   : > { %v1908_v16 = vpop.f32.mrf.mxu0 }
 0x19c   : > { %v2013_v56 = vadd.f32 %v1908_v16, %v1631_v60  ;;  %v6142_v49 = vadd.f32 %v4639_v46, %v2015_v45  ;;  %v2242_v7 = vpop.f32.mrf.mxu1  ;;  %v1639_v60 = vadd.f32 %v6033_v42, %v6029_v29 }
 0x19d   : > { %v4590_v50 = vpop.f32.mrf.mxu0 }
 0x19e   : > { %v2018_v61 = vadd.f32 %v4590_v50, %v6003_v63  ;;  %v6145_v34 = vadd.f32 %v2242_v7, %v2013_v56  ;;  %v4642_v26 = vpop.f32.mrf.mxu1 }
 0x19f   : > { %v1921_v9 = vpop.f32.mrf.mxu0 }
 0x1a0   : > { %v2016_v22 = vadd.f32 %v1921_v9, %v6006_v35  ;;  %v6148_v10 = vadd.f32 %v4642_v26, %v2018_v61  ;;  %v2255_v39 = vpop.f32.mrf.mxu1 }
 0x1a1   : > { %v4591_v4 = vpop.f32.mrf.mxu0 }
 0x1a2   : > { %v2019_v31 = vadd.f32 %v4591_v4, %v6013_v38  ;;  %v6153_v18 = vadd.f32 %v2255_v39, %v2016_v22  ;;  %v4643_v51 = vpop.f32.mrf.mxu1  ;;  %v1643_v4 = vadd.f32 %v6051_v12, %v6047_v0 }
 0x1a3   : > { %v1924_v6 = vpop.f32.mrf.mxu0 }
 0x1a4   : > { %v2017_v63 = vadd.f32 %v1924_v6, %v1635_v41  ;;  %v6155_v21 = vadd.f32 %v4643_v51, %v2019_v31  ;;  %v2258_v57 = vpop.f32.mrf.mxu1 }
 0x1a5   : > { %v4594_v11 = vpop.f32.mrf.mxu0 }
 0x1a6   : > { %v2022_v35 = vadd.f32 %v4594_v11, %v6021_v28  ;;  %v6158_v43 = vadd.f32 %v2258_v57, %v2017_v63  ;;  %v4646_v25 = vpop.f32.mrf.mxu1 }
 0x1a7   : > { %v1937_v30 = vpop.f32.mrf.mxu0 }
 0x1a8   : > { %v2020_v59 = vadd.f32 %v1937_v30, %v6024_v27  ;;  %v6161_v5 = vadd.f32 %v4646_v25, %v2022_v35  ;;  %v2271_v38 = vpop.f32.mrf.mxu1 }
 0x1a9   : > { %v4595_v62 = vpop.f32.mrf.mxu0 }
 0x1aa   : > { %v2023_v45 = vadd.f32 %v4595_v62, %v6031_v54  ;;  %v6166_v46 = vadd.f32 %v2271_v38, %v2020_v59  ;;  %v4647_v16 = vpop.f32.mrf.mxu1  ;;  %v6660_v59 = vld [vmem:[#allocation7_spill] sm:$0xff]  ;;  %v1647_v62 = vadd.f32 %v6069_v20, %v6065_v40 }
 0x1ab   : > { %v1940_v56 = vpop.f32.mrf.mxu0 }
 0x1ac   : > { %v2021_v28 = vadd.f32 %v1940_v56, %v1639_v60  ;;  %v6168_v7 = vadd.f32 %v4647_v16, %v2023_v45  ;;  %v2274_v50 = vpop.f32.mrf.mxu1  ;;  %v6661_v60 = vld [vmem:[#allocation12_spill] sm:$0xff] }
 0x1ad   : > { %v4598_v61 = vpop.f32.mrf.mxu0 }
 0x1ae   : > { %v2026_v27 = vadd.f32 %v4598_v61, %v6039_v8  ;;  %v6171_v26 = vadd.f32 %v2274_v50, %v2021_v28  ;;  %v4650_v9 = vpop.f32.mrf.mxu1 }
 0x1af   : > { %v1953_v22 = vpop.f32.mrf.mxu0 }
 0x1b0   : > { %v2024_v39 = vadd.f32 %v1953_v22, %v6042_v33  ;;  %v6174_v29 = vadd.f32 %v4650_v9, %v2026_v27  ;;  %v2287_v54 = vpop.f32.mrf.mxu1 }
 0x1b1   : > { %v4599_v42 = vpop.f32.mrf.mxu0 }
 0x1b2   : > { %v2027_v41 = vadd.f32 %v4599_v42, %v6049_v55  ;;  %v6179_v31 = vadd.f32 %v2287_v54, %v2024_v39  ;;  %v4651_v51 = vpop.f32.mrf.mxu1 }
 0x1b3   : > { %v1956_v6 = vpop.f32.mrf.mxu0 }
 0x1b4   : > { %v2025_v8 = vadd.f32 %v1956_v6, %v1643_v4  ;;  %v6181_v63 = vadd.f32 %v4651_v51, %v2027_v41  ;;  %v2290_v57 = vpop.f32.mrf.mxu1 }
 0x1b5   : > { %v4602_v11 = vpop.f32.mrf.mxu0 }
 0x1b6   : > { %v2030_v33 = vadd.f32 %v4602_v11, %v6057_v3  ;;  %v6184_v35 = vadd.f32 %v2290_v57, %v2025_v8  ;;  %v4654_v25 = vpop.f32.mrf.mxu1 }
 0x1b7   : > { %v1969_v30 = vpop.f32.mrf.mxu0 }
 0x1b8   : > { %v2028_v38 = vadd.f32 %v1969_v30, %v6660_v59  ;;  %v6187_v0 = vadd.f32 %v4654_v25, %v2030_v33  ;;  %v2303_v55 = vpop.f32.mrf.mxu1 }
 0x1b9   : > { %v4603_v12 = vpop.f32.mrf.mxu0 }
 0x1ba   : > { %v2031_v45 = vadd.f32 %v4603_v12, %v6661_v60  ;;  %v6192_v16 = vadd.f32 %v2303_v55, %v2028_v38  ;;  %v4655_v56 = vpop.f32.mrf.mxu1 }
 0x1bb   : > { %v1972_v28 = vpop.f32.mrf.mxu0 }
 0x1bc   : > { %v2029_v3 = vadd.f32 %v1972_v28, %v1647_v62  ;;  %v6194_v50 = vadd.f32 %v4655_v56, %v2031_v45  ;;  %v2306_v61 = vpop.f32.mrf.mxu1 }
 0x1bd   : > { %v4606_v27 = vpop.f32.mrf.mxu0 }
 0x1be   : > { %v2034_v9 = vadd.f32 %v4606_v27, %v6075_v53  ;;  %v6197_v22 = vadd.f32 %v2306_v61, %v2029_v3  ;;  %v4658_v39 = vpop.f32.mrf.mxu1 }
 0x1bf   : > { %v1985_v54 = vpop.f32.mrf.mxu0 }
 0x1c0   : > { %v2032_v42 = vadd.f32 %v1985_v54, %v6080_v23  ;;  %v6200_v40 = vadd.f32 %v4658_v39, %v2034_v9  ;;  %v2319_v20 = vpop.f32.mrf.mxu1 }
 0x1c1   : > { %v4607_v4 = vpop.f32.mrf.mxu0 }
 0x1c2   : > { %v2035_v41 = vadd.f32 %v4607_v4, %v6084_v14  ;;  %v6203_v51 = vadd.f32 %v2319_v20, %v2032_v42  ;;  %v4659_v6 = vpop.f32.mrf.mxu1 }
 0x1c3   : > { %v1988_v8 = vpop.f32.mrf.mxu0 }
 0x1c4   : > { %v2033_v57 = vadd.f32 %v1988_v8, %v6086_v24  ;;  %v6206_v11 = vadd.f32 %v4659_v6, %v2035_v41  ;;  %v2322_v53 = vpop.f32.mrf.mxu1 }
 0x1c5   : > { %v4678_v33 = vpop.f32.mrf.mxu0 }
 0x1c6   : > { %v6208_v25 = vadd.f32 %v2322_v53, %v2033_v57  ;;  %v6211_v23 = vadd.f32 %v4678_v33, %v6092_v13  ;;  %v6213_v30 = vpop.f32.mrf.mxu1 }
 0x1c7   : > { %v2479_v59 = vpop.f32.mrf.mxu0 }
 0x1c8   : > { %v6216_v14 = vadd.f32 %v2479_v59, %v6097_v32  ;;  %v6218_v38 = vpop.f32.mrf.mxu1 }
 0x1c9   : > { %v4679_v55 = vpop.f32.mrf.mxu0 }
 0x1ca   : > { %v6221_v24 = vadd.f32 %v4679_v55, %v6101_v1  ;;  %v6223_v62 = vpop.f32.mrf.mxu1 }
 0x1cb   : > { %v2482_v12 = vpop.f32.mrf.mxu0 }
 0x1cc   : > { %v6226_v60 = vadd.f32 %v2482_v12, %v6104_v58  ;;  %v6231_v56 = vpop.f32.mrf.mxu1 }
 0x1cd   : > { %v4682_v13 = vpop.f32.mrf.mxu0 }
 0x1ce   : > { %v6229_v45 = vadd.f32 %v4682_v13, %v6108_v19  ;;  %v6239_v61 = vpop.f32.mrf.mxu1 }
 0x1cf   : > { %v2495_v32 = vpop.f32.mrf.mxu0 }
 0x1d0   : > { %v6234_v28 = vadd.f32 %v2495_v32, %v6113_v44  ;;  %v6247_v39 = vpop.f32.mrf.mxu1 }
 0x1d1   : > { %v4683_v3 = vpop.f32.mrf.mxu0 }
 0x1d2   : > { %v6237_v1 = vadd.f32 %v4683_v3, %v6116_v48  ;;  %v6255_v20 = vpop.f32.mrf.mxu1 }
 0x1d3   : > { %v2498_v27 = vpop.f32.mrf.mxu0 }
 0x1d4   : > { %v6242_v58 = vadd.f32 %v2498_v27, %v6119_v52  ;;  %v6263_v6 = vpop.f32.mrf.mxu1 }
 0x1d5   : > { %v4686_v9 = vpop.f32.mrf.mxu0 }
 0x1d6   : > { %v6245_v19 = vadd.f32 %v4686_v9, %v6122_v15  ;;  %v6271_v53 = vpop.f32.mrf.mxu1 }
 0x1d7   : > { %v2511_v54 = vpop.f32.mrf.mxu0 }
 0x1d8   : > { %v6250_v44 = vadd.f32 %v2511_v54, %v6127_v37  ;;  %v6279_v55 = vpop.f32.mrf.mxu1 }
 0x1d9   : > { %v4687_v42 = vpop.f32.mrf.mxu0 }
 0x1da   : > { %v6253_v48 = vadd.f32 %v4687_v42, %v6129_v36  ;;  %v6287_v32 = vpop.f32.mrf.mxu1 }
 0x1db   : > { %v2514_v4 = vpop.f32.mrf.mxu0 }
 0x1dc   : > { %v6258_v52 = vadd.f32 %v2514_v4, %v6132_v17  ;;  %v6295_v9 = vpop.f32.mrf.mxu1 }
 0x1dd   : > { %v4690_v41 = vpop.f32.mrf.mxu0 }
 0x1de   : > { %v6261_v15 = vadd.f32 %v4690_v41, %v6135_v2  ;;  %v6303_v4 = vpop.f32.mrf.mxu1 }
 0x1df   : > { %v2527_v8 = vpop.f32.mrf.mxu0 }
 0x1e0   : > { %v6266_v37 = vadd.f32 %v2527_v8, %v6140_v47 }
 0x1e1   : > { %v4691_v57 = vpop.f32.mrf.mxu0 }
 0x1e2   : > { %v6269_v36 = vadd.f32 %v4691_v57, %v6142_v49  ;;  %v6311_v57 = vpop.f32.mrf.mxu1 }
 0x1e3   : > { %v2530_v33 = vpop.f32.mrf.mxu0 }
 0x1e4   : > { %v6274_v17 = vadd.f32 %v2530_v33, %v6145_v34 }
 0x1e5   : > { %v4694_v59 = vpop.f32.mrf.mxu0 }
 0x1e6   : > { %v6277_v2 = vadd.f32 %v4694_v59, %v6148_v10 }
 0x1e7   : > { %v2543_v12 = vpop.f32.mrf.mxu0 }
 0x1e8   : > { %v6282_v47 = vadd.f32 %v2543_v12, %v6153_v18  ;;  %v6319_v12 = vpop.f32.mrf.mxu1 }
 0x1e9   : > { %v4695_v13 = vpop.f32.mrf.mxu0 }
 0x1ea   : > { %v6285_v49 = vadd.f32 %v4695_v13, %v6155_v21 }
 0x1eb   : > { %v2546_v3 = vpop.f32.mrf.mxu0 }
 0x1ec   : > { %v6290_v34 = vadd.f32 %v2546_v3, %v6158_v43 }
 0x1ed   : > { %v4698_v27 = vpop.f32.mrf.mxu0 }
 0x1ee   : > { %v6293_v10 = vadd.f32 %v4698_v27, %v6161_v5  ;;  %v6327_v27 = vpop.f32.mrf.mxu1 }
 0x1ef   : > { %v2559_v54 = vpop.f32.mrf.mxu0 }
 0x1f0   : > { %v6298_v18 = vadd.f32 %v2559_v54, %v6166_v46 }
 0x1f1   : > { %v4699_v42 = vpop.f32.mrf.mxu0 }
 0x1f2   : > { %v6301_v21 = vadd.f32 %v4699_v42, %v6168_v7 }
 0x1f3   : > { %v2562_v41 = vpop.f32.mrf.mxu0 }
 0x1f4   : > { %v6306_v43 = vadd.f32 %v2562_v41, %v6171_v26  ;;  %v6335_v41 = vpop.f32.mrf.mxu1 }
 0x1f5   : > { %v4702_v8 = vpop.f32.mrf.mxu0 }
 0x1f6   : > { %v6309_v5 = vadd.f32 %v4702_v8, %v6174_v29 }
 0x1f7   : > { %v2575_v33 = vpop.f32.mrf.mxu0 }
 0x1f8   : > { %v6314_v46 = vadd.f32 %v2575_v33, %v6179_v31 }
 0x1f9   : > { %v4703_v59 = vpop.f32.mrf.mxu0 }
 0x1fa   : > { %v6317_v7 = vadd.f32 %v4703_v59, %v6181_v63  ;;  %v6343_v59 = vpop.f32.mrf.mxu1 }
 0x1fb   : > { %v2578_v13 = vpop.f32.mrf.mxu0 }
 0x1fc   : > { %v6322_v26 = vadd.f32 %v2578_v13, %v6184_v35 }
 0x1fd   : > { %v4706_v3 = vpop.f32.mrf.mxu0 }
 0x1fe   : > { %v6325_v29 = vadd.f32 %v4706_v3, %v6187_v0 }
 0x1ff   : > { %v2591_v54 = vpop.f32.mrf.mxu0 }
 0x200   : > { %v6330_v31 = vadd.f32 %v2591_v54, %v6192_v16  ;;  %v6351_v54 = vpop.f32.mrf.mxu1 }
 0x201   : > { %v4707_v42 = vpop.f32.mrf.mxu0 }
 0x202   : > { %v6333_v63 = vadd.f32 %v4707_v42, %v6194_v50 }
 0x203   : > { %v2594_v8 = vpop.f32.mrf.mxu0 }
 0x204   : > { %v6338_v35 = vadd.f32 %v2594_v8, %v6197_v22  ;;  %v3006_v22 = vadd.f32 %v6213_v30, %v6211_v23 }
 0x205   : > { %v4710_v33 = vpop.f32.mrf.mxu0 }
 0x206   : > { %v6341_v0 = vadd.f32 %v4710_v33, %v6200_v40  ;;  %v3004_v33 = vadd.f32 %v6218_v38, %v6216_v14 }
 0x207   : > { %v2607_v13 = vpop.f32.mrf.mxu0 }
 0x208   : > { %6662 = vst [vmem:[#allocation3_spill] sm:$0xff] %v6341_v0  ;;  %v6346_v16 = vadd.f32 %v2607_v13, %v6203_v51  ;;  %v6360_v51 = vpop.f32.mrf.mxu1 }
 0x209   : > { %v4711_v3 = vpop.f32.mrf.mxu0 }
 0x20a   : > { %6663 = vst [vmem:[#allocation5_spill] sm:$0xff] %v6346_v16  ;;  %v6349_v50 = vadd.f32 %v4711_v3, %v6206_v11  ;;  %v6365_v11 = vld [vmem:[%s6588_s2] ss:$0 sm:$0xff]  ;;  %v3007_v3 = vadd.f32 %v6223_v62, %v6221_v24  ;;  %v6372_v38 = vpop.f32.mrf.mxu1  ;;  %v3008_v24 = vadd.f32 %v6247_v39, %v6234_v28  ;;  %v3009_v28 = vadd.f32 %v6263_v6, %v6242_v58 }
 0x20b   : > { %v2610_v42 = vpop.f32.mrf.mxu0  ;;  %v3012_v58 = vadd.f32 %v6279_v55, %v6250_v44  ;;  %v3013_v44 = vadd.f32 %v6295_v9, %v6258_v52  ;;  %v3016_v52 = vadd.f32 %v6311_v57, %v6266_v37  ;;  %v3017_v37 = vadd.f32 %v6327_v27, %v6274_v17 }
 0x20c   : > { %6664 = vst [vmem:[#allocation10_spill] sm:$0xff] %v6349_v50  ;;  %v6356_v8 = vadd.f32 %v2610_v42, %v6208_v25  ;;  %v3005_v25 = vadd.f32 %v6231_v56, %v6226_v60  ;;  %v3020_v17 = vadd.f32 %v6343_v59, %v6282_v47  ;;  %v3021_v47 = vadd.f32 %v6360_v51, %v6290_v34 }
 0x20d   : > { %v4782_v40 = vpop.f32.mrf.mxu0 }
 0x20e   : > { %6665 = vst [vmem:[#allocation8_spill] sm:$0xff] %v6356_v8  ;;  %v3340_v0 = vadd.f32 %v4782_v40, %v3006_v22  ;;  %v3010_v40 = vadd.f32 %v6239_v61, %v6229_v45 }
 0x20f   : > { %v3195_v13 = vpop.f32.mrf.mxu0 }
 0x210   : > { %v3338_v23 = vadd.f32 %v3195_v13, %v3004_v33  ;;  %v3383_v42 = vadd.f32 %v6365_v11, %v3340_v0  ;;  %v3011_v13 = vadd.f32 %v6255_v20, %v6237_v1  ;;  %v3014_v1 = vadd.f32 %v6271_v53, %v6245_v19 }
 0x211   : > { %v4783_v30 = vpop.f32.mrf.mxu0  ;;  %v3015_v19 = vadd.f32 %v6287_v32, %v6253_v48  ;;  %v3018_v48 = vadd.f32 %v6303_v4, %v6261_v15  ;;  %v3019_v15 = vadd.f32 %v6319_v12, %v6269_v36  ;;  %v3022_v36 = vadd.f32 %v6335_v41, %v6277_v2 }
 0x212   : > { %v3341_v14 = vadd.f32 %v4783_v30, %v3007_v3  ;;  %v3381_v8 = vadd.f32 %v6365_v11, %v3338_v23  ;;  %v3419_v33 = vmax.f32 %v3383_v42, 0.0  ;;  %v6383_v3 = vpop.f32.mrf.mxu1  ;;  %v3023_v2 = vadd.f32 %v6351_v54, %v6285_v49 }
 0x213   : > { %v3198_v22 = vpop.f32.mrf.mxu0 }
 0x214   : > { %v3384_v50 = vadd.f32 %v6365_v11, %v3341_v14  ;;  %v3339_v16 = vadd.f32 %v3198_v22, %v3005_v25  ;;  %v3417_v61 = vmax.f32 %v3381_v8, 0.0  ;;  %v6388_v42 = vpop.f32.mrf.mxu1 }
 0x215   : > { %v4786_v62 = vpop.f32.mrf.mxu0 }
 0x216   : > { %v3420_v60 = vmax.f32 %v3384_v50, 0.0  ;;  %v3382_v56 = vadd.f32 %v6365_v11, %v3339_v16  ;;  %v3344_v0 = vadd.f32 %v4786_v62, %v3010_v40  ;;  %v6401_v53 = vpop.f32.mrf.mxu1 }
 0x217   : > { %v3211_v45 = vpop.f32.mrf.mxu0 }
 0x218   : > { %v3454_v23 = vpack.c.bf16 %v3420_v60, %v3419_v33  ;;  %v3418_v30 = vmax.f32 %v3382_v56, 0.0  ;;  %v3342_v14 = vadd.f32 %v3211_v45, %v3008_v24  ;;  %v3387_v50 = vadd.f32 %v6365_v11, %v3344_v0 }
 0x219   : > { %v4787_v25 = vpop.f32.mrf.mxu0 }
 0x21a   : > { %v3453_v39 = vpack.c.bf16 %v3418_v30, %v3417_v61  ;;  %v3345_v16 = vadd.f32 %v4787_v25, %v3011_v13  ;;  %v3385_v20 = vadd.f32 %v6365_v11, %v3342_v14  ;;  %v3423_v24 = vmax.f32 %v3387_v50, 0.0  ;;  %v6406_v25 = vpop.f32.mrf.mxu1 }
 0x21b   : > { %v3214_v22 = vpop.f32.mrf.mxu0 }
 0x21c   : > { %v3388_v8 = vadd.f32 %v6365_v11, %v3345_v16  ;;  %v3343_v40 = vadd.f32 %v3214_v22, %v3009_v28  ;;  %4818 = vmatprep.mubr.msk.bf16.mxu1 %vm3479_vm7, %v3453_v39  ;;  %v3421_v0 = vmax.f32 %v3385_v20, 0.0  ;;  %v6419_v4 = vpop.f32.mrf.mxu1 }
 0x21d   : > { %v4790_v6 = vpop.f32.mrf.mxu0  ;;  %4819 = vmatmul.mubr.msk.bf16.vlgmr.msra.gmra.mxu1 %vm3479_vm7, %v3454_v23 }
 0x21e   : > { %v3424_v62 = vmax.f32 %v3388_v8, 0.0  ;;  %v3386_v33 = vadd.f32 %v6365_v11, %v3343_v40  ;;  %v3348_v60 = vadd.f32 %v4790_v6, %v3014_v1 }
 0x21f   : > { %v3227_v56 = vpop.f32.mrf.mxu0 }
 0x220   : > { %v3456_v13 = vpack.c.bf16 %v3424_v62, %v3423_v24  ;;  %v3422_v45 = vmax.f32 %v3386_v33, 0.0  ;;  %v3346_v61 = vadd.f32 %v3227_v56, %v3012_v58  ;;  %v3391_v23 = vadd.f32 %v6365_v11, %v3348_v60 }
 0x221   : > { %v4791_v30 = vpop.f32.mrf.mxu0 }
 0x222   : > { %v3455_v55 = vpack.c.bf16 %v3422_v45, %v3421_v0  ;;  %v3349_v14 = vadd.f32 %v4791_v30, %v3015_v19  ;;  %v3389_v32 = vadd.f32 %v6365_v11, %v3346_v61  ;;  %v3427_v16 = vmax.f32 %v3391_v23, 0.0  ;;  %v6424_v19 = vpop.f32.mrf.mxu1 }
 0x223   : > { %v3230_v28 = vpop.f32.mrf.mxu0 }
 0x224   : > { %v3392_v39 = vadd.f32 %v6365_v11, %v3349_v14  ;;  %v3347_v50 = vadd.f32 %v3230_v28, %v3013_v44  ;;  %4822 = vmatprep.mubr.msk.bf16.mxu1 %vm3479_vm7, %v3455_v55  ;;  %v3425_v40 = vmax.f32 %v3389_v32, 0.0  ;;  %v2960_v41 = vpop.f32.mrf.mxu1 }
 0x225   : > { %v4794_v9 = vpop.f32.mrf.mxu0  ;;  %4823 = vmatmul.mubr.msk.bf16.gmra.mxu1 %vm3479_vm7, %v3456_v13 }
 0x226   : > { %v3428_v22 = vmax.f32 %v3392_v39, 0.0  ;;  %v3390_v1 = vadd.f32 %v6365_v11, %v3347_v50  ;;  %v3352_v20 = vadd.f32 %v4794_v9, %v3018_v48 }
 0x227   : > { %v3243_v8 = vpop.f32.mrf.mxu0 }
 0x228   : > { %v3458_v58 = vpack.c.bf16 %v3428_v22, %v3427_v16  ;;  %v3426_v6 = vmax.f32 %v3390_v1, 0.0  ;;  %v3350_v24 = vadd.f32 %v3243_v8, %v3016_v52  ;;  %v3395_v33 = vadd.f32 %v6365_v11, %v3352_v20  ;;  %v4758_v52 = vpop.f32.mrf.mxu1 }
 0x229   : > { %v4795_v62 = vpop.f32.mrf.mxu0  ;;  %v3026_v16 = vadd.f32 %v6372_v38, %v6293_v10  ;;  %v3024_v1 = vadd.f32 %v6383_v3, %v6298_v18  ;;  %v3027_v10 = vadd.f32 %v6388_v42, %v6301_v21  ;;  %v3025_v18 = vadd.f32 %v6401_v53, %v6306_v43 }
 0x22a   : > { %v3457_v57 = vpack.c.bf16 %v3426_v6, %v3425_v40  ;;  %v3353_v60 = vadd.f32 %v4795_v62, %v3019_v15  ;;  %v3393_v12 = vadd.f32 %v6365_v11, %v3350_v24  ;;  %v3431_v45 = vmax.f32 %v3395_v33, 0.0  ;;  %v2973_v38 = vpop.f32.mrf.mxu1 }
 0x22b   : > { %v3246_v56 = vpop.f32.mrf.mxu0 }
 0x22c   : > { %v3396_v0 = vadd.f32 %v6365_v11, %v3353_v60  ;;  %v3351_v13 = vadd.f32 %v3246_v56, %v3017_v37  ;;  %4826 = vmatprep.mubr.msk.bf16.mxu1 %vm3479_vm7, %v3457_v57  ;;  %v3429_v23 = vmax.f32 %v3393_v12, 0.0  ;;  %v4759_v60 = vpop.f32.mrf.mxu1 }
 0x22d   : > { %v4798_v27 = vpop.f32.mrf.mxu0  ;;  %4827 = vmatmul.mubr.msk.bf16.gmra.mxu1 %vm3479_vm7, %v3458_v58 }
 0x22e   : > { %v3432_v61 = vmax.f32 %v3396_v0, 0.0  ;;  %v3394_v30 = vadd.f32 %v6365_v11, %v3351_v13  ;;  %v3356_v44 = vadd.f32 %v4798_v27, %v3022_v36  ;;  %v3030_v36 = vadd.f32 %v6406_v25, %v6309_v5  ;;  %v2976_v25 = vpop.f32.mrf.mxu1 }
 0x22f   : > { %v3259_v55 = vpop.f32.mrf.mxu0  ;;  %v3028_v0 = vadd.f32 %v6419_v4, %v6314_v46  ;;  %v3031_v5 = vadd.f32 %v6424_v19, %v6317_v7  ;;  %v3029_v46 = vadd.f32 %v2960_v41, %v6322_v26 }
 0x230   : > { %v3460_v14 = vpack.c.bf16 %v3432_v61, %v3431_v45  ;;  %v3430_v28 = vmax.f32 %v3394_v30, 0.0  ;;  %v3354_v48 = vadd.f32 %v3259_v55, %v3020_v17  ;;  %v3399_v39 = vadd.f32 %v6365_v11, %v3356_v44 }
 0x231   : > { %v4799_v32 = vpop.f32.mrf.mxu0 }
 0x232   : > { %v3459_v59 = vpack.c.bf16 %v3430_v28, %v3429_v23  ;;  %v3357_v50 = vadd.f32 %v4799_v32, %v3023_v2  ;;  %v3397_v49 = vadd.f32 %v6365_v11, %v3354_v48  ;;  %v3435_v51 = vmax.f32 %v3399_v39, 0.0  ;;  %v4762_v28 = vpop.f32.mrf.mxu1 }
 0x233   : > { %v3262_v9 = vpop.f32.mrf.mxu0  ;;  %v3034_v32 = vadd.f32 %v4758_v52, %v6325_v29 }
 0x234   : > { %v3400_v54 = vadd.f32 %v6365_v11, %v3357_v50  ;;  %v3355_v22 = vadd.f32 %v3262_v9, %v3021_v47  ;;  %4830 = vmatprep.mubr.msk.bf16.mxu1 %vm3479_vm7, %v3459_v59  ;;  %v3433_v58 = vmax.f32 %v3397_v49, 0.0  ;;  %v3032_v59 = vadd.f32 %v2973_v38, %v6330_v31  ;;  %v2989_v29 = vpop.f32.mrf.mxu1  ;;  %v6666_v38 = vld [vmem:[#allocation3_spill] sm:$0xff] }
 0x235   : > { %v4802_v34 = vpop.f32.mrf.mxu0  ;;  %4831 = vmatmul.mubr.msk.bf16.gmra.mxu1 %vm3479_vm7, %v3460_v14 }
 0x236   : > { %v3436_v20 = vmax.f32 %v3400_v54, 0.0  ;;  %v3398_v15 = vadd.f32 %v6365_v11, %v3355_v22  ;;  %v3360_v8 = vadd.f32 %v4802_v34, %v3026_v16  ;;  %v3035_v16 = vadd.f32 %v4759_v60, %v6333_v63 }
 0x237   : > { %v3275_v40 = vpop.f32.mrf.mxu0 }
 0x238   : > { %v3462_v6 = vpack.c.bf16 %v3436_v20, %v3435_v51  ;;  %v3434_v24 = vmax.f32 %v3398_v15, 0.0  ;;  %v3358_v62 = vadd.f32 %v3275_v40, %v3024_v1  ;;  %v3403_v57 = vadd.f32 %v6365_v11, %v3360_v8  ;;  %v4763_v8 = vpop.f32.mrf.mxu1 }
 0x239   : > { %v4803_v37 = vpop.f32.mrf.mxu0  ;;  %v3033_v51 = vadd.f32 %v2976_v25, %v6338_v35  ;;  %v3038_v40 = vadd.f32 %v4762_v28, %v6666_v38  ;;  %v6498_v28 = vld [vmem:[%s6590_s4] ss:$0 sm:$0xff] }
 0x23a   : > { %v3461_v3 = vpack.c.bf16 %v3434_v24, %v3433_v58  ;;  %v3361_v33 = vadd.f32 %v4803_v37, %v3027_v10  ;;  %v3401_v21 = vadd.f32 %v6365_v11, %v3358_v62  ;;  %v3439_v53 = vmax.f32 %v3403_v57, 0.0  ;;  %v6667_v24 = vld [vmem:[#allocation5_spill] sm:$0xff] }
 0x23b   : > { %v3278_v56 = vpop.f32.mrf.mxu0  ;;  %v3036_v62 = vadd.f32 %v2989_v29, %v6667_v24 }
 0x23c   : > { %v3404_v42 = vadd.f32 %v6365_v11, %v3361_v33  ;;  %v3359_v12 = vadd.f32 %v3278_v56, %v3025_v18  ;;  %4834 = vmatprep.mubr.msk.bf16.mxu1 %vm3479_vm7, %v3461_v3  ;;  %v3437_v61 = vmax.f32 %v3401_v21, 0.0  ;;  %v6668_v33 = vld [vmem:[#allocation10_spill] sm:$0xff]  ;;  %v2992_v56 = vpop.f32.mrf.mxu1 }
 0x23d   : > { %v4806_v43 = vpop.f32.mrf.mxu0  ;;  %4835 = vmatmul.mubr.msk.bf16.gmra.mxu1 %vm3479_vm7, %v3462_v6  ;;  %v3039_v60 = vadd.f32 %v4763_v8, %v6668_v33 }
 0x23e   : > { %v3440_v13 = vmax.f32 %v3404_v42, 0.0  ;;  %v3402_v17 = vadd.f32 %v6365_v11, %v3359_v12  ;;  %v3364_v27 = vadd.f32 %v4806_v43, %v3030_v36 }
 0x23f   : > { %v3291_v45 = vpop.f32.mrf.mxu0 }
 0x240   : > { %v3464_v30 = vpack.c.bf16 %v3440_v13, %v3439_v53  ;;  %v3438_v44 = vmax.f32 %v3402_v17, 0.0  ;;  %v3362_v2 = vadd.f32 %v3291_v45, %v3028_v0  ;;  %v3407_v23 = vadd.f32 %v6365_v11, %v3364_v27  ;;  %v6669_v53 = vld [vmem:[#allocation8_spill] sm:$0xff] }
 0x241   : > { %v4807_v55 = vpop.f32.mrf.mxu0  ;;  %v3037_v13 = vadd.f32 %v2992_v56, %v6669_v53 }
 0x242   : > { %v3463_v4 = vpack.c.bf16 %v3438_v44, %v3437_v61  ;;  %v3365_v14 = vadd.f32 %v4807_v55, %v3031_v5  ;;  %v3405_v47 = vadd.f32 %v6365_v11, %v3362_v2  ;;  %v3443_v26 = vmax.f32 %v3407_v23, 0.0 }
 0x243   : > { %v3294_v48 = vpop.f32.mrf.mxu0 }
 0x244   : > { %v3408_v7 = vadd.f32 %v6365_v11, %v3365_v14  ;;  %v3363_v19 = vadd.f32 %v3294_v48, %v3029_v46  ;;  %4838 = vmatprep.mubr.msk.bf16.mxu1 %vm3479_vm7, %v3463_v4  ;;  %v3441_v49 = vmax.f32 %v3405_v47, 0.0 }
 0x245   : > { %v4810_v39 = vpop.f32.mrf.mxu0  ;;  %4839 = vmatmul.mubr.msk.bf16.gmra.mxu1 %vm3479_vm7, %v3464_v30 }
 0x246   : > { %v3444_v41 = vmax.f32 %v3408_v7, 0.0  ;;  %v3406_v50 = vadd.f32 %v6365_v11, %v3363_v19  ;;  %v3368_v9 = vadd.f32 %v4810_v39, %v3034_v32 }
 0x247   : > { %v3307_v52 = vpop.f32.mrf.mxu0 }
 0x248   : > { %v3466_v54 = vpack.c.bf16 %v3444_v41, %v3443_v26  ;;  %v3442_v22 = vmax.f32 %v3406_v50, 0.0  ;;  %v3366_v1 = vadd.f32 %v3307_v52, %v3032_v59  ;;  %v3411_v20 = vadd.f32 %v6365_v11, %v3368_v9 }
 0x249   : > { %v4811_v34 = vpop.f32.mrf.mxu0 }
 0x24a   : > { %v3465_v31 = vpack.c.bf16 %v3442_v22, %v3441_v49  ;;  %v3369_v15 = vadd.f32 %v4811_v34, %v3035_v16  ;;  %v3409_v58 = vadd.f32 %v6365_v11, %v3366_v1  ;;  %v3447_v35 = vmax.f32 %v3411_v20, 0.0 }
 0x24b   : > { %v3310_v10 = vpop.f32.mrf.mxu0 }
 0x24c   : > { %v3412_v63 = vadd.f32 %v6365_v11, %v3369_v15  ;;  %v3367_v6 = vadd.f32 %v3310_v10, %v3033_v51  ;;  %4842 = vmatprep.mubr.msk.bf16.mxu1 %vm3479_vm7, %v3465_v31  ;;  %v3445_v21 = vmax.f32 %v3409_v58, 0.0 }
 0x24d   : > { %v4814_v37 = vpop.f32.mrf.mxu0  ;;  %4843 = vmatmul.mubr.msk.bf16.gmra.mxu1 %vm3479_vm7, %v3466_v54 }
 0x24e   : > { %v3448_v18 = vmax.f32 %v3412_v63, 0.0  ;;  %v3410_v3 = vadd.f32 %v6365_v11, %v3367_v6  ;;  %v3372_v57 = vadd.f32 %v4814_v37, %v3038_v40 }
 0x24f   : > { %v3323_v36 = vpop.f32.mrf.mxu0 }
 0x250   : > { %v3468_v42 = vpack.c.bf16 %v3448_v18, %v3447_v35  ;;  %v3446_v12 = vmax.f32 %v3410_v3, 0.0  ;;  %v3370_v0 = vadd.f32 %v3323_v36, %v3036_v62  ;;  %v3415_v27 = vadd.f32 %v6365_v11, %v3372_v57 }
 0x251   : > { %v4815_v43 = vpop.f32.mrf.mxu0 }
 0x252   : > { %v3467_v17 = vpack.c.bf16 %v3446_v12, %v3445_v21  ;;  %v3373_v5 = vadd.f32 %v4815_v43, %v3039_v60  ;;  %v3413_v45 = vadd.f32 %v6365_v11, %v3370_v0  ;;  %v3451_v44 = vmax.f32 %v3415_v27, 0.0 }
 0x253   : > { %v3326_v25 = vpop.f32.mrf.mxu0 }
 0x254   : > { %v3416_v61 = vadd.f32 %v6365_v11, %v3373_v5  ;;  %v3371_v30 = vadd.f32 %v3326_v25, %v3037_v13  ;;  %4846 = vmatprep.mubr.msk.bf16.mxu1 %vm3479_vm7, %v3467_v17  ;;  %v3449_v46 = vmax.f32 %v3413_v45, 0.0 }
 0x255   : > { %4847 = vmatmul.mubr.msk.bf16.gmra.mxu1 %vm3479_vm7, %v3468_v42 }
 0x256   : > { %v3452_v2 = vmax.f32 %v3416_v61, 0.0  ;;  %v3414_v55 = vadd.f32 %v6365_v11, %v3371_v30 }
 0x258   : > { %v3470_v4 = vpack.c.bf16 %v3452_v2, %v3451_v44  ;;  %v3450_v23 = vmax.f32 %v3414_v55, 0.0 }
 0x25a   : > { %v3469_v14 = vpack.c.bf16 %v3450_v23, %v3449_v46 }
 0x25c   : > { %4850 = vmatprep.mubr.msk.bf16.mxu1 %vm3479_vm7, %v3469_v14 }
 0x25d   : > { %4851 = vmatmul.mubr.msk.bf16.gmra.mxu1 %vm3479_vm7, %v3470_v4 }
 0x2dd   : > { %v4820_v11 = vpop.f32.mrf.mxu1 }
 0x2de   : > { %v3581_v48 = vadd.f32 %v4820_v11, %v6498_v28 }
 0x2df   : > { %v3572_v32 = vpop.f32.mrf.mxu1 }
 0x2e0   : > { %3717 = vst [vmem:[%s6503_s12 + $0x10] sm:$0xff] %v3581_v48  ;;  %v3573_v47 = vadd.f32 %v6498_v28, %v3572_v32 }
 0x2e1   : > { %v4821_v7 = vpop.f32.mrf.mxu1 }
 0x2e2   : > { %3715 = vst [vmem:[%s6503_s12] sm:$0xff] %v3573_v47  ;;  %v3584_v19 = vadd.f32 %v4821_v7, %v6498_v28 }
 0x2e3   : > { %v3575_v59 = vpop.f32.mrf.mxu1 }
 0x2e4   : > { %3718 = vst [vmem:[%s6503_s12 + $0x18] sm:$0xff] %v3584_v19  ;;  %v3576_v39 = vadd.f32 %v6498_v28, %v3575_v59 }
 0x2e5   : > { %v4824_v26 = vpop.f32.mrf.mxu1 }
 0x2e6   : > { %3716 = vst [vmem:[%s6503_s12 + $0x8] sm:$0xff] %v3576_v39  ;;  %v3597_v41 = vadd.f32 %v4824_v26, %v6498_v28 }
 0x2e7   : > { %v3588_v50 = vpop.f32.mrf.mxu1 }
 0x2e8   : > { %3721 = vst [vmem:[%s6503_s12 + $0x30] sm:$0xff] %v3597_v41  ;;  %v3589_v9 = vadd.f32 %v6498_v28, %v3588_v50 }
 0x2e9   : > { %v4825_v16 = vpop.f32.mrf.mxu1 }
 0x2ea   : > { %3719 = vst [vmem:[%s6503_s12 + $0x20] sm:$0xff] %v3589_v9  ;;  %v3600_v29 = vadd.f32 %v4825_v16, %v6498_v28 }
 0x2eb   : > { %v3591_v52 = vpop.f32.mrf.mxu1 }
 0x2ec   : > { %3722 = vst [vmem:[%s6503_s12 + $0x38] sm:$0xff] %v3600_v29  ;;  %v3592_v49 = vadd.f32 %v6498_v28, %v3591_v52 }
 0x2ed   : > { %v4828_v54 = vpop.f32.mrf.mxu1 }
 0x2ee   : > { %3720 = vst [vmem:[%s6503_s12 + $0x28] sm:$0xff] %v3592_v49  ;;  %v3613_v22 = vadd.f32 %v4828_v54, %v6498_v28 }
 0x2ef   : > { %v3604_v1 = vpop.f32.mrf.mxu1 }
 0x2f0   : > { %3725 = vst [vmem:[%s6503_s12 + $0x50] sm:$0xff] %v3613_v22  ;;  %v3605_v34 = vadd.f32 %v6498_v28, %v3604_v1 }
 0x2f1   : > { %v4829_v51 = vpop.f32.mrf.mxu1 }
 0x2f2   : > { %3723 = vst [vmem:[%s6503_s12 + $0x40] sm:$0xff] %v3605_v34  ;;  %v3616_v31 = vadd.f32 %v4829_v51, %v6498_v28 }
 0x2f3   : > { %v3607_v20 = vpop.f32.mrf.mxu1 }
 0x2f4   : > { %3726 = vst [vmem:[%s6503_s12 + $0x58] sm:$0xff] %v3616_v31  ;;  %v3608_v15 = vadd.f32 %v6498_v28, %v3607_v20 }
 0x2f5   : > { %v4832_v8 = vpop.f32.mrf.mxu1 }
 0x2f6   : > { %3724 = vst [vmem:[%s6503_s12 + $0x48] sm:$0xff] %v3608_v15  ;;  %v3629_v10 = vadd.f32 %v4832_v8, %v6498_v28 }
 0x2f7   : > { %v3620_v38 = vpop.f32.mrf.mxu1 }
 0x2f8   : > { %3729 = vst [vmem:[%s6503_s12 + $0x70] sm:$0xff] %v3629_v10  ;;  %v3621_v40 = vadd.f32 %v6498_v28, %v3620_v38 }
 0x2f9   : > { %v4833_v58 = vpop.f32.mrf.mxu1 }
 0x2fa   : > { %3727 = vst [vmem:[%s6503_s12 + $0x60] sm:$0xff] %v3621_v40  ;;  %v3632_v63 = vadd.f32 %v4833_v58, %v6498_v28 }
 0x2fb   : > { %v3623_v6 = vpop.f32.mrf.mxu1 }
 0x2fc   : > { %3730 = vst [vmem:[%s6503_s12 + $0x78] sm:$0xff] %v3632_v63  ;;  %v3624_v24 = vadd.f32 %v6498_v28, %v3623_v6 }
 0x2fd   : > { %v4836_v62 = vpop.f32.mrf.mxu1 }
 0x2fe   : > { %3728 = vst [vmem:[%s6503_s12 + $0x68] sm:$0xff] %v3624_v24  ;;  %v3645_v37 = vadd.f32 %v4836_v62, %v6498_v28 }
 0x2ff   : > { %v3636_v35 = vpop.f32.mrf.mxu1 }
 0x300   : > { %3733 = vst [vmem:[%s6503_s12 + $0x90] sm:$0xff] %v3645_v37  ;;  %v3637_v18 = vadd.f32 %v6498_v28, %v3636_v35 }
 0x301   : > { %v4837_v3 = vpop.f32.mrf.mxu1 }
 0x302   : > { %3731 = vst [vmem:[%s6503_s12 + $0x80] sm:$0xff] %v3637_v18  ;;  %v3648_v57 = vadd.f32 %v4837_v3, %v6498_v28 }
 0x303   : > { %v3639_v33 = vpop.f32.mrf.mxu1 }
 0x304   : > { %3734 = vst [vmem:[%s6503_s12 + $0x98] sm:$0xff] %v3648_v57  ;;  %v3640_v60 = vadd.f32 %v6498_v28, %v3639_v33 }
 0x305   : > { %v4840_v56 = vpop.f32.mrf.mxu1 }
 0x306   : > { %3732 = vst [vmem:[%s6503_s12 + $0x88] sm:$0xff] %v3640_v60  ;;  %v3661_v36 = vadd.f32 %v4840_v56, %v6498_v28 }
 0x307   : > { %v3652_v21 = vpop.f32.mrf.mxu1 }
 0x308   : > { %3737 = vst [vmem:[%s6503_s12 + $0xb0] sm:$0xff] %v3661_v36  ;;  %v3653_v42 = vadd.f32 %v6498_v28, %v3652_v21 }
 0x309   : > { %v4841_v12 = vpop.f32.mrf.mxu1 }
 0x30a   : > { %3735 = vst [vmem:[%s6503_s12 + $0xa0] sm:$0xff] %v3653_v42  ;;  %v3664_v0 = vadd.f32 %v4841_v12, %v6498_v28 }
 0x30b   : > { %v3655_v43 = vpop.f32.mrf.mxu1 }
 0x30c   : > { %3738 = vst [vmem:[%s6503_s12 + $0xb8] sm:$0xff] %v3664_v0  ;;  %v3656_v53 = vadd.f32 %v6498_v28, %v3655_v43 }
 0x30d   : > { %v4844_v13 = vpop.f32.mrf.mxu1 }
 0x30e   : > { %3736 = vst [vmem:[%s6503_s12 + $0xa8] sm:$0xff] %v3656_v53  ;;  %v3677_v17 = vadd.f32 %v4844_v13, %v6498_v28 }
 0x30f   : > { %v3668_v27 = vpop.f32.mrf.mxu1 }
 0x310   : > { %3741 = vst [vmem:[%s6503_s12 + $0xd0] sm:$0xff] %v3677_v17  ;;  %v3669_v5 = vadd.f32 %v6498_v28, %v3668_v27 }
 0x311   : > { %v4845_v25 = vpop.f32.mrf.mxu1 }
 0x312   : > { %3739 = vst [vmem:[%s6503_s12 + $0xc0] sm:$0xff] %v3669_v5  ;;  %v3680_v45 = vadd.f32 %v4845_v25, %v6498_v28 }
 0x313   : > { %v3671_v61 = vpop.f32.mrf.mxu1 }
 0x314   : > { %3742 = vst [vmem:[%s6503_s12 + $0xd8] sm:$0xff] %v3680_v45  ;;  %v3672_v30 = vadd.f32 %v6498_v28, %v3671_v61 }
 0x315   : > { %v4848_v44 = vpop.f32.mrf.mxu1 }
 0x316   : > { %3740 = vst [vmem:[%s6503_s12 + $0xc8] sm:$0xff] %v3672_v30  ;;  %v3693_v2 = vadd.f32 %v4848_v44, %v6498_v28 }
 0x317   : > { %v3684_v55 = vpop.f32.mrf.mxu1 }
 0x318   : > { %3745 = vst [vmem:[%s6503_s12 + $0xf0] sm:$0xff] %v3693_v2  ;;  %v3685_v46 = vadd.f32 %v6498_v28, %v3684_v55 }
 0x319   : > { %v4849_v4 = vpop.f32.mrf.mxu1 }
 0x31a   : > { %3743 = vst [vmem:[%s6503_s12 + $0xe0] sm:$0xff] %v3685_v46  ;;  %v3696_v23 = vadd.f32 %v4849_v4, %v6498_v28 }
 0x31b   : > { %v3687_v14 = vpop.f32.mrf.mxu1 }
 0x31c   : > { %3746 = vst [vmem:[%s6503_s12 + $0xf8] sm:$0xff] %v3696_v23  ;;  %v3688_v11 = vadd.f32 %v6498_v28, %v3687_v14 }
 0x31d   : > { %v4852_v48 = vpop.f32.mrf.mxu1 }
 0x31e   : > { %3744 = vst [vmem:[%s6503_s12 + $0xe8] sm:$0xff] %v3688_v11  ;;  %v3709_v32 = vadd.f32 %v4852_v48, %v6498_v28 }
 0x31f   : > { %v3700_v47 = vpop.f32.mrf.mxu1 }
 0x320   : > { %3749 = vst [vmem:[%s6503_s12 + $0x110] sm:$0xff] %v3709_v32  ;;  %v3701_v7 = vadd.f32 %v6498_v28, %v3700_v47 }
 0x321   : > { %v4853_v19 = vpop.f32.mrf.mxu1 }
 0x322   : > { %3747 = vst [vmem:[%s6503_s12 + $0x100] sm:$0xff] %v3701_v7  ;;  %v3712_v59 = vadd.f32 %v4853_v19, %v6498_v28 }
 0x323   : > { %v3703_v39 = vpop.f32.mrf.mxu1 }
 0x324   : > { %3750 = vst [vmem:[%s6503_s12 + $0x118] sm:$0xff] %v3712_v59  ;;  %v3704_v26 = vadd.f32 %v6498_v28, %v3703_v39 }
 0x326   : > { %3748 = vst [vmem:[%s6503_s12 + $0x108] sm:$0xff] %v3704_v26 }
 0x327 PF: > { %s15_s20 = sadd.s32 1, %s5015_s20   ;;  %s6670_s18 = smov %s5011_s19 }
 0x328   : > { %p12_p5 = scmp.ge.s32.totalorder %s15_s20, 4   ;;  %s6671_s19 = smov %s6673_s21 }
 0x32a   :  { %14 = sbr.rel (!%p12_p5) target bundleno = 2 (0x2), region = 78 }

</bundles_post_ra>
